<compile_context>
chip_gen: v7x
topology: tpu7x:2x2x1
jax: 0.10.0
libtpu: 0.0.40
codegen_flags: <defaults>
</compile_context>

<pallas_src>
import functools

import numpy as np

import jax
import jax.numpy as jnp
from jax.experimental import pallas as pl
from jax.experimental.pallas import tpu as pltpu


# ----------------------------------------------------------------------------
# geometry helpers
# ----------------------------------------------------------------------------

def _round_up(n, m):
    return ((n + m - 1) // m) * m


def _choose_stride(h, w):
    """Smallest flat-row stride s >= w+2 such that h*s is a multiple of 128."""
    for s in range(w + 2, w + 2 + 129):
        if (h * s) % 128 == 0:
            return s
    return w + 2


def _geom(h, w):
    s = _choose_stride(h, w)
    n_out = h * s                                   # flat output lanes per image
    n_flat = _round_up((h + 2) * s + 2, 128)        # zero-padded flat input lanes
    offsets = tuple(ky * s + kx for ky in range(3) for kx in range(3))
    return s, n_out, n_flat, offsets


# ----------------------------------------------------------------------------
# trace-time constant builders (numpy; baked into the XLA graph)
# ----------------------------------------------------------------------------

def _np_valid_mask(b, h, w, s):
    m = np.zeros((h, s), np.float32)
    m[:, :w] = 1.0
    return np.tile(m.reshape(1, h * s), (1, b))


def _np_pool_matrix(h, w, s_in, s_out, n_flat_out):
    """AvgPool2d(2) from (h,w) flat stride s_in -> next conv's zero-padded flat."""
    p = np.zeros((h * s_in, n_flat_out), np.float32)
    for i in range(h):
        for j in range(w):
            p[i * s_in + j, (i // 2 + 1) * s_out + (j // 2 + 1)] = 0.25
    return p


def _np_embed_matrix(h, w, s_in, s_out, n_flat_out):
    """Re-embed a conv output (flat stride s_in) into a zero-padded flat layout."""
    e = np.zeros((h * s_in, n_flat_out), np.float32)
    for i in range(h):
        for j in range(w):
            e[i * s_in + j, (i + 1) * s_out + (j + 1)] = 1.0
    return e


def _np_upsample_matrix(h, w, s_in, s_out, n_flat_out):
    """Bilinear x2 (align_corners=False, PyTorch) from (h,w) stride s_in into the
    next conv's zero-padded flat layout (2h, 2w) with row stride s_out."""
    def src_weights(dst, size):
        src = max((dst + 0.5) * 0.5 - 0.5, 0.0)
        i0 = int(np.floor(src))
        lam = src - i0
        i1 = min(i0 + 1, size - 1)
        return ((i0, 1.0 - lam), (i1, lam))

    u = np.zeros((h * s_in, n_flat_out), np.float32)
    for r in range(2 * h):
        for c in range(2 * w):
            dst = (r + 1) * s_out + (c + 1)
            for (si, wr) in src_weights(r, h):
                for (sj, wc) in src_weights(c, w):
                    if wr * wc != 0.0:
                        u[si * s_in + sj, dst] += wr * wc
    return u


# ----------------------------------------------------------------------------
# Pallas kernels
# ----------------------------------------------------------------------------

def _bn_relu(y, valid, gamma, beta, inv_n, eps, relu=True):
    """Train-mode BatchNorm (biased batch stats over `valid` lanes) + activation."""
    yv = y * valid                                  # valid broadcast hoisted/reused
    mean = jnp.sum(yv, axis=1, keepdims=True) * inv_n
    var = jnp.sum(yv * y, axis=1, keepdims=True) * inv_n - mean * mean
    scale = gamma * jax.lax.rsqrt(var + eps)
    out = (y - mean) * scale + beta
    if relu:
        out = jnp.maximum(out, 0.0)
    return out


def _fused_forward_kernel(
        x_ref, w1a_ref, w2_ref, w3_ref, w4t_ref, bnp_ref,
        pool_ref, up_ref, emb_ref, v1_ref, v2_ref,
        o_ref,
        cols1, pad2, cols2, pad3, pad4,
        *, batch, c, c_pad, cm, geom1, geom2, inv_n1, inv_n2, eps):
    s1, n_out1, _, offs1 = geom1
    s2, n_out2, _, offs2 = geom2

    v1 = v1_ref[...]                       # (1, B*n_out1) valid-lane mask, stages 1/4
    v2 = v2_ref[...]                       # (1, B*n_out2) valid-lane mask, stages 2/3
    bnp = bnp_ref[...]                     # (cm, 8) = [g1 b1 g2 b2 g3 b3 g4 b4]

    # ---- stage 1: mask conv1 (cm ch) + scale-aware adaption conv (c ch) ----
    # One im2col pack for the whole batch, ONE MXU matmul serving both convs
    # (their tap-packed weights are stacked on the M axis by the host).
    for b in range(batch):
        for t, off in enumerate(offs1):
            cols1[t * c_pad:(t + 1) * c_pad, b * n_out1:(b + 1) * n_out1] = (
                x_ref[b, :, off:off + n_out1].astype(jnp.bfloat16))
    y_all = jnp.dot(w1a_ref[...], cols1[...],
                    preferred_element_type=jnp.float32)        # (m1, B*n_out1) f32
    y1 = _bn_relu(y_all[:cm], v1, bnp[:, 0:1], bnp[:, 1:2], inv_n1, eps)
    adapt = y_all[cm:cm + c]                                   # no bias / no BN

    # ---- AvgPool2d(2), written straight into conv2's zero-padded flat layout
    #      via a constant 0/0.25 matrix (MXU is idle; no strided gathers) ----
    pool_m = pool_ref[...]
    for b in range(batch):
        pad2[b] = jnp.dot(y1[:, b * n_out1:(b + 1) * n_out1], pool_m,
                          preferred_element_type=jnp.float32)

    # ---- stage 2: conv2 + BN + ReLU ----
    for b in range(batch):
        for t, off in enumerate(offs2):
            cols2[t * cm:(t + 1) * cm, b * n_out2:(b + 1) * n_out2] = (
                pad2[b, :, off:off + n_out2].astype(jnp.bfloat16))
    y2 = jnp.dot(w2_ref[...], cols2[...], preferred_element_type=jnp.float32)
    y2 = _bn_relu(y2, v2, bnp[:, 2:3], bnp[:, 3:4], inv_n2, eps)

    # ---- re-embed y2 into conv3's zero-padded flat layout (constant 0/1 matrix:
    #      avoids unaligned shifted stores and drops garbage lanes for free) ----
    emb_m = emb_ref[...]
    for b in range(batch):
        pad3[b] = jnp.dot(y2[:, b * n_out2:(b + 1) * n_out2], emb_m,
                          preferred_element_type=jnp.float32)

    # ---- stage 3: conv3 + BN + ReLU (reuses the cols2 scratch) ----
    for b in range(batch):
        for t, off in enumerate(offs2):
            cols2[t * cm:(t + 1) * cm, b * n_out2:(b + 1) * n_out2] = (
                pad3[b, :, off:off + n_out2].astype(jnp.bfloat16))
    y3 = jnp.dot(w3_ref[...], cols2[...], preferred_element_type=jnp.float32)
    y3 = _bn_relu(y3, v2, bnp[:, 4:5], bnp[:, 5:6], inv_n2, eps)

    # ---- bilinear x2 upsample straight into conv4's zero-padded flat layout ----
    up_m = up_ref[...]
    for b in range(batch):
        pad4[b] = jnp.dot(y3[:, b * n_out2:(b + 1) * n_out2], up_m,
                          preferred_element_type=jnp.float32)

    # ---- stage 4: conv4 (cm -> 1) as 9 shifted VPU MACs (M=1 matmul would waste
    #      the MXU and pay full im2col store amplification), BN + sigmoid ----
    w4 = w4t_ref[...]                                           # (cm, 9)
    s_imgs = []
    for b in range(batch):
        acc = None
        for t, off in enumerate(offs1):
            term = w4[:, t:t + 1] * pad4[b, :, off:off + n_out1]
            acc = term if acc is None else acc + term
        s_imgs.append(jnp.sum(acc, axis=0, keepdims=True))      # (1, n_out1)

    v1i = v1[:, 0:n_out1]                                        # per-image valid mask
    tot = jnp.zeros((1, 1), jnp.float32)
    totsq = jnp.zeros((1, 1), jnp.float32)
    for sb in s_imgs:
        sv = sb * v1i
        tot = tot + jnp.sum(sv, axis=1, keepdims=True)
        totsq = totsq + jnp.sum(sv * sb, axis=1, keepdims=True)
    mean4 = tot * inv_n1
    var4 = totsq * inv_n1 - mean4 * mean4
    scale4 = bnp[0:1, 6:7] * jax.lax.rsqrt(var4 + eps)
    beta4 = bnp[0:1, 7:8]

    # ---- combine: out = adaption * mask + x (residual read from the flat x) ----
    for b in range(batch):
        yb = (s_imgs[b] - mean4) * scale4 + beta4
        mask_b = pl.reciprocal(1.0 + jnp.exp(-yb), approx=True)  # sigmoid on EUP
        adapt_b = adapt[:, b * n_out1:(b + 1) * n_out1]
        xres_b = x_ref[b, 0:c, s1 + 1:s1 + 1 + n_out1]
        o_ref[b] = adapt_b * mask_b + xres_b                     # (c, n_out1), 3x128 lanes


def _routing_fuse_kernel(s_ref, w1_ref, b1_ref, w2_ref, b2_ref, pool_ref, o_ref):
    """Routing MLP (Linear(2,64)+ReLU+Linear(64,E)+Softmax) and expert fusion."""
    s = s_ref[...]                                                   # (1, 2)
    h = s[:, 0:1] * w1_ref[0:1, :] + s[:, 1:2] * w1_ref[1:2, :] + b1_ref[...]
    h = jnp.maximum(h, 0.0)
    logits = jnp.dot(h, w2_ref[...], preferred_element_type=jnp.float32) + b2_ref[...]
    logits = logits - jnp.max(logits, axis=1, keepdims=True)
    e = jnp.exp(logits)
    r = e / jnp.sum(e, axis=1, keepdims=True)        # exact division (E is tiny)
    o_ref[...] = jnp.dot(r, pool_ref[...], preferred_element_type=jnp.float32)


# ----------------------------------------------------------------------------
# weight packing + wrappers
# ----------------------------------------------------------------------------

def _pack_conv_weight(w_oihw, cin_pad):
    """(Cout, Cin, 3, 3) -> (Cout, 9*cin_pad); column = (ky*3+kx)*cin_pad + ci."""
    cout, cin, kh, kw = w_oihw.shape
    wp = jnp.pad(w_oihw, ((0, 0), (0, cin_pad - cin), (0, 0), (0, 0)))
    return jnp.transpose(wp, (0, 2, 3, 1)).reshape(cout, kh * kw * cin_pad)


def fused_adaption_weight(scales, w1, b1, w2, b2, weight_pool, cin_pad):
    """scales: (1,2); weight_pool: (E, Cout, Cin, 3, 3) -> (Cout, 9*cin_pad)."""
    e, cout, cin, kh, kw = weight_pool.shape
    pool = jnp.pad(weight_pool, ((0, 0), (0, 0), (0, cin_pad - cin), (0, 0), (0, 0)))
    pool = jnp.transpose(pool, (0, 1, 3, 4, 2)).reshape(e, cout * kh * kw * cin_pad)
    k = pool.shape[1]
    fused = pl.pallas_call(
        _routing_fuse_kernel,
        out_shape=jax.ShapeDtypeStruct((1, k), jnp.float32),
        grid=(1,),
        in_specs=[pl.BlockSpec((1, 2), lambda i: (0, 0)),
                  pl.BlockSpec((2, 64), lambda i: (0, 0)),
                  pl.BlockSpec((1, 64), lambda i: (0, 0)),
                  pl.BlockSpec((64, e), lambda i: (0, 0)),
                  pl.BlockSpec((1, e), lambda i: (0, 0)),
                  pl.BlockSpec((e, k), lambda i: (0, 0))],
        out_specs=pl.BlockSpec((1, k), lambda i: (0, 0)),
        compiler_params=pltpu.CompilerParams(dimension_semantics=("arbitrary",)),
    )(scales, w1, b1.reshape(1, 64), w2, b2.reshape(1, e), pool)
    return fused.reshape(cout, kh * kw * cin_pad)


def scale_aware_feature_adaption(params, x, w_scale, h_scale):
    """x: (B, C, H, W) f32; w_scale/h_scale: (1, 1) f32.  Returns (B, C, H, W)."""
    p = params
    b, c, h, w = x.shape
    assert h % 2 == 0 and w % 2 == 0, "AvgPool2d(2) / Upsample(x2) need even H, W"
    cm = 16                                          # mask-branch width (module spec)
    c_pad = _round_up(c, 8)

    geom1 = _geom(h, w)                              # stages 1 / 4 / adaption / output
    geom2 = _geom(h // 2, w // 2)                    # pooled stages 2 / 3
    s1, n_out1, n_flat1, _ = geom1
    s2, n_out2, n_flat2, _ = geom2

    # ----- routing MLP + expert weight fusion (tiny Pallas kernel) -----
    # The module calls self.adaption(x, h_scale, w_scale) whose forward signature
    # is (x, w_scale, h_scale); its routing input cat([h, w], 1) is therefore
    # cat([w_scale, h_scale], 1) in the OUTER argument names.
    scales = jnp.concatenate([w_scale, h_scale], axis=1).astype(jnp.float32)
    wa = fused_adaption_weight(scales, p["rt_w1"], p["rt_b1"], p["rt_w2"],
                               p["rt_b2"], p["weight_pool"], c_pad)  # (c, 9*c_pad)

    # ----- weight / parameter packing (host side, tiny) -----
    m1 = _round_up(cm + c, 8)
    w1 = _pack_conv_weight(p["mask_w1"], c_pad)                       # (cm, 9*c_pad)
    w1a = jnp.concatenate(
        [w1, wa, jnp.zeros((m1 - cm - c, w1.shape[1]), jnp.float32)],
        axis=0).astype(jnp.bfloat16)                                  # (m1, 9*c_pad)
    w2 = _pack_conv_weight(p["mask_w2"], cm).astype(jnp.bfloat16)     # (cm, 9*cm)
    w3 = _pack_conv_weight(p["mask_w3"], cm).astype(jnp.bfloat16)
    w4t = p["mask_w4"].reshape(cm, 9)                                 # (cin, tap) f32

    # Conv biases cancel exactly under train-mode BatchNorm (z - mean(z) removes
    # any per-channel constant), so only gamma/beta are passed, merged into one
    # (cm, 8) slab: [g1 b1 g2 b2 g3 b3 g4 b4] (stage-4 entries live in row 0).
    bnp = jnp.zeros((cm, 8), jnp.float32)
    bnp = bnp.at[:, 0].set(p["bn1_g"]).at[:, 1].set(p["bn1_b"])
    bnp = bnp.at[:, 2].set(p["bn2_g"]).at[:, 3].set(p["bn2_b"])
    bnp = bnp.at[:, 4].set(p["bn3_g"]).at[:, 5].set(p["bn3_b"])
    bnp = bnp.at[0, 6].set(p["bn4_g"][0]).at[0, 7].set(p["bn4_b"][0])

    # ----- trace-time constants: pool / upsample / re-embed matrices, masks -----
    pool_m = jnp.asarray(_np_pool_matrix(h, w, s1, s2, n_flat2))
    up_m = jnp.asarray(_np_upsample_matrix(h // 2, w // 2, s2, s1, n_flat1))
    emb_m = jnp.asarray(_np_embed_matrix(h // 2, w // 2, s2, s2, n_flat2))
    v1 = jnp.asarray(_np_valid_mask(b, h, w, s1))                     # (1, B*n_out1)
    v2 = jnp.asarray(_np_valid_mask(b, h // 2, w // 2, s2))           # (1, B*n_out2)

    # ----- the only activation-layout glue: x -> zero-padded flat layout -----
    xf = jnp.pad(x, ((0, 0), (0, c_pad - c), (1, 1), (1, s1 - w - 1)))
    xf = xf.reshape(b, c_pad, (h + 2) * s1)
    xf = jnp.pad(xf, ((0, 0), (0, 0), (0, n_flat1 - (h + 2) * s1)))

    kernel = functools.partial(
        _fused_forward_kernel, batch=b, c=c, c_pad=c_pad, cm=cm,
        geom1=geom1, geom2=geom2,
        inv_n1=1.0 / (b * h * w), inv_n2=1.0 / (b * (h // 2) * (w // 2)), eps=1e-5)

    out_flat = pl.pallas_call(
        kernel,
        out_shape=jax.ShapeDtypeStruct((b, c, n_out1), jnp.float32),
        grid=(1,),
        in_specs=[
            pl.BlockSpec((b, c_pad, n_flat1), lambda i: (0, 0, 0)),   # x (flat)
            pl.BlockSpec((m1, 9 * c_pad), lambda i: (0, 0)),          # conv1 + adaption w
            pl.BlockSpec((cm, 9 * cm), lambda i: (0, 0)),             # conv2 w
            pl.BlockSpec((cm, 9 * cm), lambda i: (0, 0)),             # conv3 w
            pl.BlockSpec((cm, 9), lambda i: (0, 0)),                  # conv4 w (VPU path)
            pl.BlockSpec((cm, 8), lambda i: (0, 0)),                  # BN gamma/beta slab
            pl.BlockSpec((n_out1, n_flat2), lambda i: (0, 0)),        # pool matrix
            pl.BlockSpec((n_out2, n_flat1), lambda i: (0, 0)),        # upsample matrix
            pl.BlockSpec((n_out2, n_flat2), lambda i: (0, 0)),        # re-embed matrix
            pl.BlockSpec((1, b * n_out1), lambda i: (0, 0)),          # valid mask 1/4
            pl.BlockSpec((1, b * n_out2), lambda i: (0, 0)),          # valid mask 2/3
        ],
        out_specs=pl.BlockSpec((b, c, n_out1), lambda i: (0, 0, 0)),
        scratch_shapes=[
            pltpu.VMEM((9 * c_pad, b * n_out1), jnp.bfloat16),        # cols1
            pltpu.VMEM((b, cm, n_flat2), jnp.float32),                # pad2
            pltpu.VMEM((9 * cm, b * n_out2), jnp.bfloat16),           # cols2 (reused)
            pltpu.VMEM((b, cm, n_flat2), jnp.float32),                # pad3
            pltpu.VMEM((b, cm, n_flat1), jnp.float32),                # pad4
        ],
        compiler_params=pltpu.CompilerParams(dimension_semantics=("arbitrary",)),
    )(xf, w1a, w2, w3, w4t, bnp, pool_m, up_m, emb_m, v1, v2)

    return out_flat.reshape(b, c, h, s1)[:, :, :, :w]


# ----------------------------------------------------------------------------
# Deterministic parameter init (synthetic; shapes follow the module __init__)
# ----------------------------------------------------------------------------

def init_params(key, channels, num_experts=4):
    keys = jax.random.split(key, 24)
    it = iter(keys)

    def nrm(shape, scale=0.1):
        return scale * jax.random.normal(next(it), shape, dtype=jnp.float32)

    # NOTE: mask_b* conv biases are kept for spec fidelity but are mathematically
    # inert: they cancel exactly under train-mode BatchNorm.
    return {
        "mask_w1": nrm((16, channels, 3, 3), 0.2), "mask_b1": nrm((16,)),
        "bn1_g": 1.0 + nrm((16,)), "bn1_b": nrm((16,)),
        "mask_w2": nrm((16, 16, 3, 3), 0.2), "mask_b2": nrm((16,)),
        "bn2_g": 1.0 + nrm((16,)), "bn2_b": nrm((16,)),
        "mask_w3": nrm((16, 16, 3, 3), 0.2), "mask_b3": nrm((16,)),
        "bn3_g": 1.0 + nrm((16,)), "bn3_b": nrm((16,)),
        "mask_w4": nrm((1, 16, 3, 3), 0.2), "mask_b4": nrm((1,)),
        "bn4_g": 1.0 + nrm((1,)), "bn4_b": nrm((1,)),
        "rt_w1": nrm((2, 64), 0.5), "rt_b1": nrm((64,)),
        "rt_w2": nrm((64, num_experts), 0.3), "rt_b2": nrm((num_experts,)),
        "weight_pool": nrm((num_experts, channels, channels, 3, 3), 0.2),
    }


if __name__ == "__main__":
    key = jax.random.PRNGKey(0)
    k_param, k_x = jax.random.split(key)

    B, C, H, W = 2, 4, 16, 16
    params = init_params(k_param, channels=C)

    x = jax.random.normal(k_x, (B, C, H, W), dtype=jnp.float32)       # NCHW, like PyTorch
    w_scale = jnp.array([[1.5]], dtype=jnp.float32)
    h_scale = jnp.array([[2.0]], dtype=jnp.float32)

    forward = jax.jit(scale_aware_feature_adaption)
    out = forward(params, x, w_scale, h_scale)
    jax.block_until_ready(out)

    assert out.shape == (B, C, H, W)
    assert bool(jnp.all(jnp.isfinite(out)))
    print("KERNEL_OK")
</pallas_src>

<mosaic_0001>
module attributes {stable_mosaic.version = 11 : i64} {
  func.func @_routing_fuse_kernel(%arg0: i32, %arg1: memref<1x2xf32, #tpu.memory_space<vmem>>, %arg2: memref<2x64xf32, #tpu.memory_space<vmem>>, %arg3: memref<1x64xf32, #tpu.memory_space<vmem>>, %arg4: memref<64x4xf32, #tpu.memory_space<vmem>>, %arg5: memref<1x4xf32, #tpu.memory_space<vmem>>, %arg6: memref<4x288xf32, #tpu.memory_space<vmem>>, %arg7: memref<1x288xf32, #tpu.memory_space<vmem>>) attributes {dimension_semantics = [#tpu.dimension_semantics<arbitrary>], iteration_bounds = array<i64: 1>, scalar_prefetch = 0 : i64, scratch_operands = 0 : i64, tpu.core_type = #tpu.core_type<tc>, window_params = [{pipeline_mode = #tpu.pipeline_mode<synchronous>, transform_indices = @transform_0, window_bounds = array<i64: 1, 2>}, {pipeline_mode = #tpu.pipeline_mode<synchronous>, transform_indices = @transform_1, window_bounds = array<i64: 2, 64>}, {pipeline_mode = #tpu.pipeline_mode<synchronous>, transform_indices = @transform_2, window_bounds = array<i64: 1, 64>}, {pipeline_mode = #tpu.pipeline_mode<synchronous>, transform_indices = @transform_3, window_bounds = array<i64: 64, 4>}, {pipeline_mode = #tpu.pipeline_mode<synchronous>, transform_indices = @transform_4, window_bounds = array<i64: 1, 4>}, {pipeline_mode = #tpu.pipeline_mode<synchronous>, transform_indices = @transform_5, window_bounds = array<i64: 4, 288>}, {pipeline_mode = #tpu.pipeline_mode<synchronous>, transform_indices = @transform_6, window_bounds = array<i64: 1, 288>}]} {
    %c0 = arith.constant 0 : index
    %c0_0 = arith.constant 0 : index
    %0 = vector.load %arg1[%c0, %c0_0] : memref<1x2xf32, #tpu.memory_space<vmem>>, vector<1x2xf32>
    %1 = vector.extract_strided_slice %0 {offsets = [0, 0], sizes = [1, 1], strides = [1, 1]} : vector<1x2xf32> to vector<1x1xf32>
    %c0_1 = arith.constant 0 : index
    %c0_2 = arith.constant 0 : index
    %2 = vector.load %arg2[%c0_1, %c0_2] : memref<2x64xf32, #tpu.memory_space<vmem>>, vector<1x64xf32>
    %3 = vector.broadcast %1 : vector<1x1xf32> to vector<1x64xf32>
    %4 = arith.mulf %3, %2 : vector<1x64xf32>
    %5 = vector.extract_strided_slice %0 {offsets = [0, 1], sizes = [1, 1], strides = [1, 1]} : vector<1x2xf32> to vector<1x1xf32>
    %c1 = arith.constant 1 : index
    %c0_3 = arith.constant 0 : index
    %6 = vector.load %arg2[%c1, %c0_3] : memref<2x64xf32, #tpu.memory_space<vmem>>, vector<1x64xf32>
    %7 = vector.broadcast %5 : vector<1x1xf32> to vector<1x64xf32>
    %8 = arith.mulf %7, %6 : vector<1x64xf32>
    %9 = arith.addf %4, %8 : vector<1x64xf32>
    %c0_4 = arith.constant 0 : index
    %c0_5 = arith.constant 0 : index
    %10 = vector.load %arg3[%c0_4, %c0_5] : memref<1x64xf32, #tpu.memory_space<vmem>>, vector<1x64xf32>
    %11 = arith.addf %9, %10 : vector<1x64xf32>
    %cst = arith.constant 0.000000e+00 : f32
    %12 = vector.broadcast %cst : f32 to vector<1x64xf32>
    %13 = arith.maximumf %11, %12 : vector<1x64xf32>
    %c0_6 = arith.constant 0 : index
    %c0_7 = arith.constant 0 : index
    %14 = vector.load %arg4[%c0_6, %c0_7] : memref<64x4xf32, #tpu.memory_space<vmem>>, vector<64x4xf32>
    %cst_8 = arith.constant dense<0.000000e+00> : vector<1x4xf32>
    %15 = tpu.matmul %13, %14, %cst_8 {dimension_numbers = #tpu.dot_dimension_numbers<[1], [0], [0], [1], [0, 0, 1, 1], [], []>} : vector<1x64xf32>, vector<64x4xf32>, vector<1x4xf32> -> vector<1x4xf32>
    %c0_9 = arith.constant 0 : index
    %c0_10 = arith.constant 0 : index
    %16 = vector.load %arg5[%c0_9, %c0_10] : memref<1x4xf32, #tpu.memory_space<vmem>>, vector<1x4xf32>
    %17 = arith.addf %15, %16 : vector<1x4xf32>
    %cst_11 = arith.constant dense<0xFF800000> : vector<1xf32>
    %18 = vector.multi_reduction <maximumf>, %17, %cst_11 [1] : vector<1x4xf32> to vector<1xf32>
    %19 = vector.shape_cast %18 : vector<1xf32> to vector<1x1xf32>
    %20 = vector.broadcast %19 : vector<1x1xf32> to vector<1x4xf32>
    %21 = arith.subf %17, %20 : vector<1x4xf32>
    %22 = math.exp %21 : vector<1x4xf32>
    %cst_12 = arith.constant dense<0.000000e+00> : vector<1xf32>
    %23 = vector.multi_reduction <add>, %22, %cst_12 [1] : vector<1x4xf32> to vector<1xf32>
    %24 = vector.shape_cast %23 : vector<1xf32> to vector<1x1xf32>
    %25 = vector.broadcast %24 : vector<1x1xf32> to vector<1x4xf32>
    %26 = arith.divf %22, %25 : vector<1x4xf32>
    %c0_13 = arith.constant 0 : index
    %c0_14 = arith.constant 0 : index
    %27 = vector.load %arg6[%c0_13, %c0_14] : memref<4x288xf32, #tpu.memory_space<vmem>>, vector<4x288xf32>
    %cst_15 = arith.constant dense<0.000000e+00> : vector<1x288xf32>
    %28 = tpu.matmul %26, %27, %cst_15 {dimension_numbers = #tpu.dot_dimension_numbers<[1], [0], [0], [1], [0, 0, 1, 1], [], []>} : vector<1x4xf32>, vector<4x288xf32>, vector<1x288xf32> -> vector<1x288xf32>
    %c0_16 = arith.constant 0 : index
    %c0_17 = arith.constant 0 : index
    %29 = vector.load %arg7[%c0_16, %c0_17] : memref<1x288xf32, #tpu.memory_space<vmem>>, vector<1x288xf32>
    tpu.vector_store %arg7[%c0_16, %c0_17], %28 {strides = array<i32>} : memref<1x288xf32, #tpu.memory_space<vmem>>, vector<1x288xf32>,
    return
  }
  func.func @transform_0(%arg0: i32) -> (i32, i32) {
    %c0_i32 = arith.constant 0 : i32
    %c0_i32_0 = arith.constant 0 : i32
    %c0_i32_1 = arith.constant 0 : i32
    return %c0_i32, %c0_i32_0 : i32, i32
  }
  func.func @transform_1(%arg0: i32) -> (i32, i32) {
    %c0_i32 = arith.constant 0 : i32
    %c0_i32_0 = arith.constant 0 : i32
    %c0_i32_1 = arith.constant 0 : i32
    return %c0_i32, %c0_i32_0 : i32, i32
  }
  func.func @transform_2(%arg0: i32) -> (i32, i32) {
    %c0_i32 = arith.constant 0 : i32
    %c0_i32_0 = arith.constant 0 : i32
    %c0_i32_1 = arith.constant 0 : i32
    return %c0_i32, %c0_i32_0 : i32, i32
  }
  func.func @transform_3(%arg0: i32) -> (i32, i32) {
    %c0_i32 = arith.constant 0 : i32
    %c0_i32_0 = arith.constant 0 : i32
    %c0_i32_1 = arith.constant 0 : i32
    return %c0_i32, %c0_i32_0 : i32, i32
  }
  func.func @transform_4(%arg0: i32) -> (i32, i32) {
    %c0_i32 = arith.constant 0 : i32
    %c0_i32_0 = arith.constant 0 : i32
    %c0_i32_1 = arith.constant 0 : i32
    return %c0_i32, %c0_i32_0 : i32, i32
  }
  func.func @transform_5(%arg0: i32) -> (i32, i32) {
    %c0_i32 = arith.constant 0 : i32
    %c0_i32_0 = arith.constant 0 : i32
    %c0_i32_1 = arith.constant 0 : i32
    return %c0_i32, %c0_i32_0 : i32, i32
  }
  func.func @transform_6(%arg0: i32) -> (i32, i32) {
    %c0_i32 = arith.constant 0 : i32
    %c0_i32_0 = arith.constant 0 : i32
    %c0_i32_1 = arith.constant 0 : i32
    return %c0_i32, %c0_i32_0 : i32, i32
  }
}

module attributes {stable_mosaic.version = 11 : i64} {
  func.func @_fused_forward_kernel(%arg0: i32, %arg1: memref<2x8x512xf32, #tpu.memory_space<vmem>>, %arg2: memref<24x72xbf16, #tpu.memory_space<vmem>>, %arg3: memref<16x144xbf16, #tpu.memory_space<vmem>>, %arg4: memref<16x144xbf16, #tpu.memory_space<vmem>>, %arg5: memref<16x9xf32, #tpu.memory_space<vmem>>, %arg6: memref<16x8xf32, #tpu.memory_space<vmem>>, %arg7: memref<384x256xf32, #tpu.memory_space<vmem>>, %arg8: memref<128x512xf32, #tpu.memory_space<vmem>>, %arg9: memref<128x256xf32, #tpu.memory_space<vmem>>, %arg10: memref<1x768xf32, #tpu.memory_space<vmem>>, %arg11: memref<1x256xf32, #tpu.memory_space<vmem>>, %arg12: memref<2x4x384xf32, #tpu.memory_space<vmem>>, %arg13: memref<72x768xbf16, #tpu.memory_space<vmem>>, %arg14: memref<2x16x256xf32, #tpu.memory_space<vmem>>, %arg15: memref<144x256xbf16, #tpu.memory_space<vmem>>, %arg16: memref<2x16x256xf32, #tpu.memory_space<vmem>>, %arg17: memref<2x16x512xf32, #tpu.memory_space<vmem>>) attributes {dimension_semantics = [#tpu.dimension_semantics<arbitrary>], iteration_bounds = array<i64: 1>, scalar_prefetch = 0 : i64, scratch_operands = 5 : i64, tpu.core_type = #tpu.core_type<tc>, window_params = [{pipeline_mode = #tpu.pipeline_mode<synchronous>, transform_indices = @transform_0, window_bounds = array<i64: 2, 8, 512>}, {pipeline_mode = #tpu.pipeline_mode<synchronous>, transform_indices = @transform_1, window_bounds = array<i64: 24, 72>}, {pipeline_mode = #tpu.pipeline_mode<synchronous>, transform_indices = @transform_2, window_bounds = array<i64: 16, 144>}, {pipeline_mode = #tpu.pipeline_mode<synchronous>, transform_indices = @transform_3, window_bounds = array<i64: 16, 144>}, {pipeline_mode = #tpu.pipeline_mode<synchronous>, transform_indices = @transform_4, window_bounds = array<i64: 16, 9>}, {pipeline_mode = #tpu.pipeline_mode<synchronous>, transform_indices = @transform_5, window_bounds = array<i64: 16, 8>}, {pipeline_mode = #tpu.pipeline_mode<synchronous>, transform_indices = @transform_6, window_bounds = array<i64: 384, 256>}, {pipeline_mode = #tpu.pipeline_mode<synchronous>, transform_indices = @transform_7, window_bounds = array<i64: 128, 512>}, {pipeline_mode = #tpu.pipeline_mode<synchronous>, transform_indices = @transform_8, window_bounds = array<i64: 128, 256>}, {pipeline_mode = #tpu.pipeline_mode<synchronous>, transform_indices = @transform_9, window_bounds = array<i64: 1, 768>}, {pipeline_mode = #tpu.pipeline_mode<synchronous>, transform_indices = @transform_10, window_bounds = array<i64: 1, 256>}, {pipeline_mode = #tpu.pipeline_mode<synchronous>, transform_indices = @transform_11, window_bounds = array<i64: 2, 4, 384>}]} {
    %c0 = arith.constant 0 : index
    %c0_0 = arith.constant 0 : index
    %0 = vector.load %arg10[%c0, %c0_0] : memref<1x768xf32, #tpu.memory_space<vmem>>, vector<1x768xf32>
    %c0_1 = arith.constant 0 : index
    %c0_2 = arith.constant 0 : index
    %1 = vector.load %arg11[%c0_1, %c0_2] : memref<1x256xf32, #tpu.memory_space<vmem>>, vector<1x256xf32>
    %c0_3 = arith.constant 0 : index
    %c0_4 = arith.constant 0 : index
    %2 = vector.load %arg6[%c0_3, %c0_4] : memref<16x8xf32, #tpu.memory_space<vmem>>, vector<16x8xf32>
    %c0_5 = arith.constant 0 : index
    %c0_6 = arith.constant 0 : index
    %c0_7 = arith.constant 0 : index
    %3 = vector.load %arg1[%c0_5, %c0_6, %c0_7] : memref<2x8x512xf32, #tpu.memory_space<vmem>>, vector<1x8x384xf32>
    %4 = vector.shape_cast %3 : vector<1x8x384xf32> to vector<8x384xf32>
    %5 = arith.truncf %4 : vector<8x384xf32> to vector<8x384xbf16>
    %c0_8 = arith.constant 0 : index
    %c0_9 = arith.constant 0 : index
    %6 = vector.load %arg13[%c0_8, %c0_9] : memref<72x768xbf16, #tpu.memory_space<vmem>>, vector<8x384xbf16>
    tpu.vector_store %arg13[%c0_8, %c0_9], %5 {strides = array<i32>} : memref<72x768xbf16, #tpu.memory_space<vmem>>, vector<8x384xbf16>,
    %c0_10 = arith.constant 0 : index
    %c0_11 = arith.constant 0 : index
    %c1 = arith.constant 1 : index
    %7 = vector.load %arg1[%c0_10, %c0_11, %c1] : memref<2x8x512xf32, #tpu.memory_space<vmem>>, vector<1x8x384xf32>
    %8 = vector.shape_cast %7 : vector<1x8x384xf32> to vector<8x384xf32>
    %9 = arith.truncf %8 : vector<8x384xf32> to vector<8x384xbf16>
    %c8 = arith.constant 8 : index
    %c0_12 = arith.constant 0 : index
    %10 = vector.load %arg13[%c8, %c0_12] : memref<72x768xbf16, #tpu.memory_space<vmem>>, vector<8x384xbf16>
    tpu.vector_store %arg13[%c8, %c0_12], %9 {strides = array<i32>} : memref<72x768xbf16, #tpu.memory_space<vmem>>, vector<8x384xbf16>,
    %c0_13 = arith.constant 0 : index
    %c0_14 = arith.constant 0 : index
    %c2 = arith.constant 2 : index
    %11 = vector.load %arg1[%c0_13, %c0_14, %c2] : memref<2x8x512xf32, #tpu.memory_space<vmem>>, vector<1x8x384xf32>
    %12 = vector.shape_cast %11 : vector<1x8x384xf32> to vector<8x384xf32>
    %13 = arith.truncf %12 : vector<8x384xf32> to vector<8x384xbf16>
    %c16 = arith.constant 16 : index
    %c0_15 = arith.constant 0 : index
    %14 = vector.load %arg13[%c16, %c0_15] : memref<72x768xbf16, #tpu.memory_space<vmem>>, vector<8x384xbf16>
    tpu.vector_store %arg13[%c16, %c0_15], %13 {strides = array<i32>} : memref<72x768xbf16, #tpu.memory_space<vmem>>, vector<8x384xbf16>,
    %c0_16 = arith.constant 0 : index
    %c0_17 = arith.constant 0 : index
    %c24 = arith.constant 24 : index
    %15 = vector.load %arg1[%c0_16, %c0_17, %c24] : memref<2x8x512xf32, #tpu.memory_space<vmem>>, vector<1x8x384xf32>
    %16 = vector.shape_cast %15 : vector<1x8x384xf32> to vector<8x384xf32>
    %17 = arith.truncf %16 : vector<8x384xf32> to vector<8x384xbf16>
    %c24_18 = arith.constant 24 : index
    %c0_19 = arith.constant 0 : index
    %18 = vector.load %arg13[%c24_18, %c0_19] : memref<72x768xbf16, #tpu.memory_space<vmem>>, vector<8x384xbf16>
    tpu.vector_store %arg13[%c24_18, %c0_19], %17 {strides = array<i32>} : memref<72x768xbf16, #tpu.memory_space<vmem>>, vector<8x384xbf16>,
    %c0_20 = arith.constant 0 : index
    %c0_21 = arith.constant 0 : index
    %c25 = arith.constant 25 : index
    %19 = vector.load %arg1[%c0_20, %c0_21, %c25] : memref<2x8x512xf32, #tpu.memory_space<vmem>>, vector<1x8x384xf32>
    %20 = vector.shape_cast %19 : vector<1x8x384xf32> to vector<8x384xf32>
    %21 = arith.truncf %20 : vector<8x384xf32> to vector<8x384xbf16>
    %c32 = arith.constant 32 : index
    %c0_22 = arith.constant 0 : index
    %22 = vector.load %arg13[%c32, %c0_22] : memref<72x768xbf16, #tpu.memory_space<vmem>>, vector<8x384xbf16>
    tpu.vector_store %arg13[%c32, %c0_22], %21 {strides = array<i32>} : memref<72x768xbf16, #tpu.memory_space<vmem>>, vector<8x384xbf16>,
    %c0_23 = arith.constant 0 : index
    %c0_24 = arith.constant 0 : index
    %c26 = arith.constant 26 : index
    %23 = vector.load %arg1[%c0_23, %c0_24, %c26] : memref<2x8x512xf32, #tpu.memory_space<vmem>>, vector<1x8x384xf32>
    %24 = vector.shape_cast %23 : vector<1x8x384xf32> to vector<8x384xf32>
    %25 = arith.truncf %24 : vector<8x384xf32> to vector<8x384xbf16>
    %c40 = arith.constant 40 : index
    %c0_25 = arith.constant 0 : index
    %26 = vector.load %arg13[%c40, %c0_25] : memref<72x768xbf16, #tpu.memory_space<vmem>>, vector<8x384xbf16>
    tpu.vector_store %arg13[%c40, %c0_25], %25 {strides = array<i32>} : memref<72x768xbf16, #tpu.memory_space<vmem>>, vector<8x384xbf16>,
    %c0_26 = arith.constant 0 : index
    %c0_27 = arith.constant 0 : index
    %c48 = arith.constant 48 : index
    %27 = vector.load %arg1[%c0_26, %c0_27, %c48] : memref<2x8x512xf32, #tpu.memory_space<vmem>>, vector<1x8x384xf32>
    %28 = vector.shape_cast %27 : vector<1x8x384xf32> to vector<8x384xf32>
    %29 = arith.truncf %28 : vector<8x384xf32> to vector<8x384xbf16>
    %c48_28 = arith.constant 48 : index
    %c0_29 = arith.constant 0 : index
    %30 = vector.load %arg13[%c48_28, %c0_29] : memref<72x768xbf16, #tpu.memory_space<vmem>>, vector<8x384xbf16>
    tpu.vector_store %arg13[%c48_28, %c0_29], %29 {strides = array<i32>} : memref<72x768xbf16, #tpu.memory_space<vmem>>, vector<8x384xbf16>,
    %c0_30 = arith.constant 0 : index
    %c0_31 = arith.constant 0 : index
    %c49 = arith.constant 49 : index
    %31 = vector.load %arg1[%c0_30, %c0_31, %c49] : memref<2x8x512xf32, #tpu.memory_space<vmem>>, vector<1x8x384xf32>
    %32 = vector.shape_cast %31 : vector<1x8x384xf32> to vector<8x384xf32>
    %33 = arith.truncf %32 : vector<8x384xf32> to vector<8x384xbf16>
    %c56 = arith.constant 56 : index
    %c0_32 = arith.constant 0 : index
    %34 = vector.load %arg13[%c56, %c0_32] : memref<72x768xbf16, #tpu.memory_space<vmem>>, vector<8x384xbf16>
    tpu.vector_store %arg13[%c56, %c0_32], %33 {strides = array<i32>} : memref<72x768xbf16, #tpu.memory_space<vmem>>, vector<8x384xbf16>,
    %c0_33 = arith.constant 0 : index
    %c0_34 = arith.constant 0 : index
    %c50 = arith.constant 50 : index
    %35 = vector.load %arg1[%c0_33, %c0_34, %c50] : memref<2x8x512xf32, #tpu.memory_space<vmem>>, vector<1x8x384xf32>
    %36 = vector.shape_cast %35 : vector<1x8x384xf32> to vector<8x384xf32>
    %37 = arith.truncf %36 : vector<8x384xf32> to vector<8x384xbf16>
    %c64 = arith.constant 64 : index
    %c0_35 = arith.constant 0 : index
    %38 = vector.load %arg13[%c64, %c0_35] : memref<72x768xbf16, #tpu.memory_space<vmem>>, vector<8x384xbf16>
    tpu.vector_store %arg13[%c64, %c0_35], %37 {strides = array<i32>} : memref<72x768xbf16, #tpu.memory_space<vmem>>, vector<8x384xbf16>,
    %c1_36 = arith.constant 1 : index
    %c0_37 = arith.constant 0 : index
    %c0_38 = arith.constant 0 : index
    %39 = vector.load %arg1[%c1_36, %c0_37, %c0_38] : memref<2x8x512xf32, #tpu.memory_space<vmem>>, vector<1x8x384xf32>
    %40 = vector.shape_cast %39 : vector<1x8x384xf32> to vector<8x384xf32>
    %41 = arith.truncf %40 : vector<8x384xf32> to vector<8x384xbf16>
    %c0_39 = arith.constant 0 : index
    %c384 = arith.constant 384 : index
    %42 = vector.load %arg13[%c0_39, %c384] : memref<72x768xbf16, #tpu.memory_space<vmem>>, vector<8x384xbf16>
    tpu.vector_store %arg13[%c0_39, %c384], %41 {strides = array<i32>} : memref<72x768xbf16, #tpu.memory_space<vmem>>, vector<8x384xbf16>,
    %c1_40 = arith.constant 1 : index
    %c0_41 = arith.constant 0 : index
    %c1_42 = arith.constant 1 : index
    %43 = vector.load %arg1[%c1_40, %c0_41, %c1_42] : memref<2x8x512xf32, #tpu.memory_space<vmem>>, vector<1x8x384xf32>
    %44 = vector.shape_cast %43 : vector<1x8x384xf32> to vector<8x384xf32>
    %45 = arith.truncf %44 : vector<8x384xf32> to vector<8x384xbf16>
    %c8_43 = arith.constant 8 : index
    %c384_44 = arith.constant 384 : index
    %46 = vector.load %arg13[%c8_43, %c384_44] : memref<72x768xbf16, #tpu.memory_space<vmem>>, vector<8x384xbf16>
    tpu.vector_store %arg13[%c8_43, %c384_44], %45 {strides = array<i32>} : memref<72x768xbf16, #tpu.memory_space<vmem>>, vector<8x384xbf16>,
    %c1_45 = arith.constant 1 : index
    %c0_46 = arith.constant 0 : index
    %c2_47 = arith.constant 2 : index
    %47 = vector.load %arg1[%c1_45, %c0_46, %c2_47] : memref<2x8x512xf32, #tpu.memory_space<vmem>>, vector<1x8x384xf32>
    %48 = vector.shape_cast %47 : vector<1x8x384xf32> to vector<8x384xf32>
    %49 = arith.truncf %48 : vector<8x384xf32> to vector<8x384xbf16>
    %c16_48 = arith.constant 16 : index
    %c384_49 = arith.constant 384 : index
    %50 = vector.load %arg13[%c16_48, %c384_49] : memref<72x768xbf16, #tpu.memory_space<vmem>>, vector<8x384xbf16>
    tpu.vector_store %arg13[%c16_48, %c384_49], %49 {strides = array<i32>} : memref<72x768xbf16, #tpu.memory_space<vmem>>, vector<8x384xbf16>,
    %c1_50 = arith.constant 1 : index
    %c0_51 = arith.constant 0 : index
    %c24_52 = arith.constant 24 : index
    %51 = vector.load %arg1[%c1_50, %c0_51, %c24_52] : memref<2x8x512xf32, #tpu.memory_space<vmem>>, vector<1x8x384xf32>
    %52 = vector.shape_cast %51 : vector<1x8x384xf32> to vector<8x384xf32>
    %53 = arith.truncf %52 : vector<8x384xf32> to vector<8x384xbf16>
    %c24_53 = arith.constant 24 : index
    %c384_54 = arith.constant 384 : index
    %54 = vector.load %arg13[%c24_53, %c384_54] : memref<72x768xbf16, #tpu.memory_space<vmem>>, vector<8x384xbf16>
    tpu.vector_store %arg13[%c24_53, %c384_54], %53 {strides = array<i32>} : memref<72x768xbf16, #tpu.memory_space<vmem>>, vector<8x384xbf16>,
    %c1_55 = arith.constant 1 : index
    %c0_56 = arith.constant 0 : index
    %c25_57 = arith.constant 25 : index
    %55 = vector.load %arg1[%c1_55, %c0_56, %c25_57] : memref<2x8x512xf32, #tpu.memory_space<vmem>>, vector<1x8x384xf32>
    %56 = vector.shape_cast %55 : vector<1x8x384xf32> to vector<8x384xf32>
    %57 = arith.truncf %56 : vector<8x384xf32> to vector<8x384xbf16>
    %c32_58 = arith.constant 32 : index
    %c384_59 = arith.constant 384 : index
    %58 = vector.load %arg13[%c32_58, %c384_59] : memref<72x768xbf16, #tpu.memory_space<vmem>>, vector<8x384xbf16>
    tpu.vector_store %arg13[%c32_58, %c384_59], %57 {strides = array<i32>} : memref<72x768xbf16, #tpu.memory_space<vmem>>, vector<8x384xbf16>,
    %c1_60 = arith.constant 1 : index
    %c0_61 = arith.constant 0 : index
    %c26_62 = arith.constant 26 : index
    %59 = vector.load %arg1[%c1_60, %c0_61, %c26_62] : memref<2x8x512xf32, #tpu.memory_space<vmem>>, vector<1x8x384xf32>
    %60 = vector.shape_cast %59 : vector<1x8x384xf32> to vector<8x384xf32>
    %61 = arith.truncf %60 : vector<8x384xf32> to vector<8x384xbf16>
    %c40_63 = arith.constant 40 : index
    %c384_64 = arith.constant 384 : index
    %62 = vector.load %arg13[%c40_63, %c384_64] : memref<72x768xbf16, #tpu.memory_space<vmem>>, vector<8x384xbf16>
    tpu.vector_store %arg13[%c40_63, %c384_64], %61 {strides = array<i32>} : memref<72x768xbf16, #tpu.memory_space<vmem>>, vector<8x384xbf16>,
    %c1_65 = arith.constant 1 : index
    %c0_66 = arith.constant 0 : index
    %c48_67 = arith.constant 48 : index
    %63 = vector.load %arg1[%c1_65, %c0_66, %c48_67] : memref<2x8x512xf32, #tpu.memory_space<vmem>>, vector<1x8x384xf32>
    %64 = vector.shape_cast %63 : vector<1x8x384xf32> to vector<8x384xf32>
    %65 = arith.truncf %64 : vector<8x384xf32> to vector<8x384xbf16>
    %c48_68 = arith.constant 48 : index
    %c384_69 = arith.constant 384 : index
    %66 = vector.load %arg13[%c48_68, %c384_69] : memref<72x768xbf16, #tpu.memory_space<vmem>>, vector<8x384xbf16>
    tpu.vector_store %arg13[%c48_68, %c384_69], %65 {strides = array<i32>} : memref<72x768xbf16, #tpu.memory_space<vmem>>, vector<8x384xbf16>,
    %c1_70 = arith.constant 1 : index
    %c0_71 = arith.constant 0 : index
    %c49_72 = arith.constant 49 : index
    %67 = vector.load %arg1[%c1_70, %c0_71, %c49_72] : memref<2x8x512xf32, #tpu.memory_space<vmem>>, vector<1x8x384xf32>
    %68 = vector.shape_cast %67 : vector<1x8x384xf32> to vector<8x384xf32>
    %69 = arith.truncf %68 : vector<8x384xf32> to vector<8x384xbf16>
    %c56_73 = arith.constant 56 : index
    %c384_74 = arith.constant 384 : index
    %70 = vector.load %arg13[%c56_73, %c384_74] : memref<72x768xbf16, #tpu.memory_space<vmem>>, vector<8x384xbf16>
    tpu.vector_store %arg13[%c56_73, %c384_74], %69 {strides = array<i32>} : memref<72x768xbf16, #tpu.memory_space<vmem>>, vector<8x384xbf16>,
    %c1_75 = arith.constant 1 : index
    %c0_76 = arith.constant 0 : index
    %c50_77 = arith.constant 50 : index
    %71 = vector.load %arg1[%c1_75, %c0_76, %c50_77] : memref<2x8x512xf32, #tpu.memory_space<vmem>>, vector<1x8x384xf32>
    %72 = vector.shape_cast %71 : vector<1x8x384xf32> to vector<8x384xf32>
    %73 = arith.truncf %72 : vector<8x384xf32> to vector<8x384xbf16>
    %c64_78 = arith.constant 64 : index
    %c384_79 = arith.constant 384 : index
    %74 = vector.load %arg13[%c64_78, %c384_79] : memref<72x768xbf16, #tpu.memory_space<vmem>>, vector<8x384xbf16>
    tpu.vector_store %arg13[%c64_78, %c384_79], %73 {strides = array<i32>} : memref<72x768xbf16, #tpu.memory_space<vmem>>, vector<8x384xbf16>,
    %c0_80 = arith.constant 0 : index
    %c0_81 = arith.constant 0 : index
    %75 = vector.load %arg2[%c0_80, %c0_81] : memref<24x72xbf16, #tpu.memory_space<vmem>>, vector<24x72xbf16>
    %c0_82 = arith.constant 0 : index
    %c0_83 = arith.constant 0 : index
    %76 = vector.load %arg13[%c0_82, %c0_83] : memref<72x768xbf16, #tpu.memory_space<vmem>>, vector<72x768xbf16>
    %cst = arith.constant dense<0.000000e+00> : vector<24x768xf32>
    %77 = tpu.matmul %75, %76, %cst {dimension_numbers = #tpu.dot_dimension_numbers<[1], [0], [0], [1], [0, 0, 1, 1], [], []>} : vector<24x72xbf16>, vector<72x768xbf16>, vector<24x768xf32> -> vector<24x768xf32>
    %78 = vector.extract_strided_slice %77 {offsets = [0, 0], sizes = [16, 768], strides = [1, 1]} : vector<24x768xf32> to vector<16x768xf32>
    %79 = vector.extract_strided_slice %2 {offsets = [0, 0], sizes = [16, 1], strides = [1, 1]} : vector<16x8xf32> to vector<16x1xf32>
    %80 = vector.extract_strided_slice %2 {offsets = [0, 1], sizes = [16, 1], strides = [1, 1]} : vector<16x8xf32> to vector<16x1xf32>
    %81 = vector.broadcast %0 : vector<1x768xf32> to vector<16x768xf32>
    %82 = arith.mulf %78, %81 : vector<16x768xf32>
    %cst_84 = arith.constant dense<0.000000e+00> : vector<16xf32>
    %83 = vector.multi_reduction <add>, %82, %cst_84 [1] : vector<16x768xf32> to vector<16xf32>
    %84 = vector.shape_cast %83 : vector<16xf32> to vector<16x1xf32>
    %cst_85 = arith.constant 0.001953125 : f32
    %85 = vector.broadcast %cst_85 : f32 to vector<16x1xf32>
    %86 = arith.mulf %84, %85 : vector<16x1xf32>
    %87 = arith.mulf %82, %78 : vector<16x768xf32>
    %cst_86 = arith.constant dense<0.000000e+00> : vector<16xf32>
    %88 = vector.multi_reduction <add>, %87, %cst_86 [1] : vector<16x768xf32> to vector<16xf32>
    %89 = vector.shape_cast %88 : vector<16xf32> to vector<16x1xf32>
    %cst_87 = arith.constant 0.001953125 : f32
    %90 = vector.broadcast %cst_87 : f32 to vector<16x1xf32>
    %91 = arith.mulf %89, %90 : vector<16x1xf32>
    %92 = arith.mulf %86, %86 : vector<16x1xf32>
    %93 = arith.subf %91, %92 : vector<16x1xf32>
    %cst_88 = arith.constant 9.99999974E-6 : f32
    %94 = vector.broadcast %cst_88 : f32 to vector<16x1xf32>
    %95 = arith.addf %93, %94 : vector<16x1xf32>
    %96 = math.rsqrt %95 : vector<16x1xf32>
    %97 = arith.mulf %79, %96 : vector<16x1xf32>
    %98 = vector.broadcast %86 : vector<16x1xf32> to vector<16x768xf32>
    %99 = arith.subf %78, %98 : vector<16x768xf32>
    %100 = vector.broadcast %97 : vector<16x1xf32> to vector<16x768xf32>
    %101 = arith.mulf %99, %100 : vector<16x768xf32>
    %102 = vector.broadcast %80 : vector<16x1xf32> to vector<16x768xf32>
    %103 = arith.addf %101, %102 : vector<16x768xf32>
    %cst_89 = arith.constant 0.000000e+00 : f32
    %104 = vector.broadcast %cst_89 : f32 to vector<16x768xf32>
    %105 = arith.maximumf %103, %104 : vector<16x768xf32>
    %106 = vector.extract_strided_slice %77 {offsets = [16, 0], sizes = [4, 768], strides = [1, 1]} : vector<24x768xf32> to vector<4x768xf32>
    %c0_90 = arith.constant 0 : index
    %c0_91 = arith.constant 0 : index
    %107 = vector.load %arg7[%c0_90, %c0_91] : memref<384x256xf32, #tpu.memory_space<vmem>>, vector<384x256xf32>
    %108 = vector.extract_strided_slice %105 {offsets = [0, 0], sizes = [16, 384], strides = [1, 1]} : vector<16x768xf32> to vector<16x384xf32>
    %cst_92 = arith.constant dense<0.000000e+00> : vector<16x256xf32>
    %109 = tpu.matmul %108, %107, %cst_92 {dimension_numbers = #tpu.dot_dimension_numbers<[1], [0], [0], [1], [0, 0, 1, 1], [], []>} : vector<16x384xf32>, vector<384x256xf32>, vector<16x256xf32> -> vector<16x256xf32>
    %c0_93 = arith.constant 0 : index
    %c0_94 = arith.constant 0 : index
    %c0_95 = arith.constant 0 : index
    %110 = vector.load %arg14[%c0_93, %c0_94, %c0_95] : memref<2x16x256xf32, #tpu.memory_space<vmem>>, vector<1x16x256xf32>
    %111 = vector.shape_cast %110 : vector<1x16x256xf32> to vector<16x256xf32>
    %112 = vector.shape_cast %109 : vector<16x256xf32> to vector<1x16x256xf32>
    tpu.vector_store %arg14[%c0_93, %c0_94, %c0_95], %112 {strides = array<i32>} : memref<2x16x256xf32, #tpu.memory_space<vmem>>, vector<1x16x256xf32>,
    %113 = vector.extract_strided_slice %105 {offsets = [0, 384], sizes = [16, 384], strides = [1, 1]} : vector<16x768xf32> to vector<16x384xf32>
    %cst_96 = arith.constant dense<0.000000e+00> : vector<16x256xf32>
    %114 = tpu.matmul %113, %107, %cst_96 {dimension_numbers = #tpu.dot_dimension_numbers<[1], [0], [0], [1], [0, 0, 1, 1], [], []>} : vector<16x384xf32>, vector<384x256xf32>, vector<16x256xf32> -> vector<16x256xf32>
    %c1_97 = arith.constant 1 : index
    %c0_98 = arith.constant 0 : index
    %c0_99 = arith.constant 0 : index
    %115 = vector.load %arg14[%c1_97, %c0_98, %c0_99] : memref<2x16x256xf32, #tpu.memory_space<vmem>>, vector<1x16x256xf32>
    %116 = vector.shape_cast %115 : vector<1x16x256xf32> to vector<16x256xf32>
    %117 = vector.shape_cast %114 : vector<16x256xf32> to vector<1x16x256xf32>
    tpu.vector_store %arg14[%c1_97, %c0_98, %c0_99], %117 {strides = array<i32>} : memref<2x16x256xf32, #tpu.memory_space<vmem>>, vector<1x16x256xf32>,
    %c0_100 = arith.constant 0 : index
    %c0_101 = arith.constant 0 : index
    %c0_102 = arith.constant 0 : index
    %118 = vector.load %arg14[%c0_100, %c0_101, %c0_102] : memref<2x16x256xf32, #tpu.memory_space<vmem>>, vector<1x16x128xf32>
    %119 = vector.shape_cast %118 : vector<1x16x128xf32> to vector<16x128xf32>
    %120 = arith.truncf %119 : vector<16x128xf32> to vector<16x128xbf16>
    %c0_103 = arith.constant 0 : index
    %c0_104 = arith.constant 0 : index
    %121 = vector.load %arg15[%c0_103, %c0_104] : memref<144x256xbf16, #tpu.memory_space<vmem>>, vector<16x128xbf16>
    tpu.vector_store %arg15[%c0_103, %c0_104], %120 {strides = array<i32>} : memref<144x256xbf16, #tpu.memory_space<vmem>>, vector<16x128xbf16>,
    %c0_105 = arith.constant 0 : index
    %c0_106 = arith.constant 0 : index
    %c1_107 = arith.constant 1 : index
    %122 = vector.load %arg14[%c0_105, %c0_106, %c1_107] : memref<2x16x256xf32, #tpu.memory_space<vmem>>, vector<1x16x128xf32>
    %123 = vector.shape_cast %122 : vector<1x16x128xf32> to vector<16x128xf32>
    %124 = arith.truncf %123 : vector<16x128xf32> to vector<16x128xbf16>
    %c16_108 = arith.constant 16 : index
    %c0_109 = arith.constant 0 : index
    %125 = vector.load %arg15[%c16_108, %c0_109] : memref<144x256xbf16, #tpu.memory_space<vmem>>, vector<16x128xbf16>
    tpu.vector_store %arg15[%c16_108, %c0_109], %124 {strides = array<i32>} : memref<144x256xbf16, #tpu.memory_space<vmem>>, vector<16x128xbf16>,
    %c0_110 = arith.constant 0 : index
    %c0_111 = arith.constant 0 : index
    %c2_112 = arith.constant 2 : index
    %126 = vector.load %arg14[%c0_110, %c0_111, %c2_112] : memref<2x16x256xf32, #tpu.memory_space<vmem>>, vector<1x16x128xf32>
    %127 = vector.shape_cast %126 : vector<1x16x128xf32> to vector<16x128xf32>
    %128 = arith.truncf %127 : vector<16x128xf32> to vector<16x128xbf16>
    %c32_113 = arith.constant 32 : index
    %c0_114 = arith.constant 0 : index
    %129 = vector.load %arg15[%c32_113, %c0_114] : memref<144x256xbf16, #tpu.memory_space<vmem>>, vector<16x128xbf16>
    tpu.vector_store %arg15[%c32_113, %c0_114], %128 {strides = array<i32>} : memref<144x256xbf16, #tpu.memory_space<vmem>>, vector<16x128xbf16>,
    %c0_115 = arith.constant 0 : index
    %c0_116 = arith.constant 0 : index
    %c16_117 = arith.constant 16 : index
    %130 = vector.load %arg14[%c0_115, %c0_116, %c16_117] : memref<2x16x256xf32, #tpu.memory_space<vmem>>, vector<1x16x128xf32>
    %131 = vector.shape_cast %130 : vector<1x16x128xf32> to vector<16x128xf32>
    %132 = arith.truncf %131 : vector<16x128xf32> to vector<16x128xbf16>
    %c48_118 = arith.constant 48 : index
    %c0_119 = arith.constant 0 : index
    %133 = vector.load %arg15[%c48_118, %c0_119] : memref<144x256xbf16, #tpu.memory_space<vmem>>, vector<16x128xbf16>
    tpu.vector_store %arg15[%c48_118, %c0_119], %132 {strides = array<i32>} : memref<144x256xbf16, #tpu.memory_space<vmem>>, vector<16x128xbf16>,
    %c0_120 = arith.constant 0 : index
    %c0_121 = arith.constant 0 : index
    %c17 = arith.constant 17 : index
    %134 = vector.load %arg14[%c0_120, %c0_121, %c17] : memref<2x16x256xf32, #tpu.memory_space<vmem>>, vector<1x16x128xf32>
    %135 = vector.shape_cast %134 : vector<1x16x128xf32> to vector<16x128xf32>
    %136 = arith.truncf %135 : vector<16x128xf32> to vector<16x128xbf16>
    %c64_122 = arith.constant 64 : index
    %c0_123 = arith.constant 0 : index
    %137 = vector.load %arg15[%c64_122, %c0_123] : memref<144x256xbf16, #tpu.memory_space<vmem>>, vector<16x128xbf16>
    tpu.vector_store %arg15[%c64_122, %c0_123], %136 {strides = array<i32>} : memref<144x256xbf16, #tpu.memory_space<vmem>>, vector<16x128xbf16>,
    %c0_124 = arith.constant 0 : index
    %c0_125 = arith.constant 0 : index
    %c18 = arith.constant 18 : index
    %138 = vector.load %arg14[%c0_124, %c0_125, %c18] : memref<2x16x256xf32, #tpu.memory_space<vmem>>, vector<1x16x128xf32>
    %139 = vector.shape_cast %138 : vector<1x16x128xf32> to vector<16x128xf32>
    %140 = arith.truncf %139 : vector<16x128xf32> to vector<16x128xbf16>
    %c80 = arith.constant 80 : index
    %c0_126 = arith.constant 0 : index
    %141 = vector.load %arg15[%c80, %c0_126] : memref<144x256xbf16, #tpu.memory_space<vmem>>, vector<16x128xbf16>
    tpu.vector_store %arg15[%c80, %c0_126], %140 {strides = array<i32>} : memref<144x256xbf16, #tpu.memory_space<vmem>>, vector<16x128xbf16>,
    %c0_127 = arith.constant 0 : index
    %c0_128 = arith.constant 0 : index
    %c32_129 = arith.constant 32 : index
    %142 = vector.load %arg14[%c0_127, %c0_128, %c32_129] : memref<2x16x256xf32, #tpu.memory_space<vmem>>, vector<1x16x128xf32>
    %143 = vector.shape_cast %142 : vector<1x16x128xf32> to vector<16x128xf32>
    %144 = arith.truncf %143 : vector<16x128xf32> to vector<16x128xbf16>
    %c96 = arith.constant 96 : index
    %c0_130 = arith.constant 0 : index
    %145 = vector.load %arg15[%c96, %c0_130] : memref<144x256xbf16, #tpu.memory_space<vmem>>, vector<16x128xbf16>
    tpu.vector_store %arg15[%c96, %c0_130], %144 {strides = array<i32>} : memref<144x256xbf16, #tpu.memory_space<vmem>>, vector<16x128xbf16>,
    %c0_131 = arith.constant 0 : index
    %c0_132 = arith.constant 0 : index
    %c33 = arith.constant 33 : index
    %146 = vector.load %arg14[%c0_131, %c0_132, %c33] : memref<2x16x256xf32, #tpu.memory_space<vmem>>, vector<1x16x128xf32>
    %147 = vector.shape_cast %146 : vector<1x16x128xf32> to vector<16x128xf32>
    %148 = arith.truncf %147 : vector<16x128xf32> to vector<16x128xbf16>
    %c112 = arith.constant 112 : index
    %c0_133 = arith.constant 0 : index
    %149 = vector.load %arg15[%c112, %c0_133] : memref<144x256xbf16, #tpu.memory_space<vmem>>, vector<16x128xbf16>
    tpu.vector_store %arg15[%c112, %c0_133], %148 {strides = array<i32>} : memref<144x256xbf16, #tpu.memory_space<vmem>>, vector<16x128xbf16>,
    %c0_134 = arith.constant 0 : index
    %c0_135 = arith.constant 0 : index
    %c34 = arith.constant 34 : index
    %150 = vector.load %arg14[%c0_134, %c0_135, %c34] : memref<2x16x256xf32, #tpu.memory_space<vmem>>, vector<1x16x128xf32>
    %151 = vector.shape_cast %150 : vector<1x16x128xf32> to vector<16x128xf32>
    %152 = arith.truncf %151 : vector<16x128xf32> to vector<16x128xbf16>
    %c128 = arith.constant 128 : index
    %c0_136 = arith.constant 0 : index
    %153 = vector.load %arg15[%c128, %c0_136] : memref<144x256xbf16, #tpu.memory_space<vmem>>, vector<16x128xbf16>
    tpu.vector_store %arg15[%c128, %c0_136], %152 {strides = array<i32>} : memref<144x256xbf16, #tpu.memory_space<vmem>>, vector<16x128xbf16>,
    %c1_137 = arith.constant 1 : index
    %c0_138 = arith.constant 0 : index
    %c0_139 = arith.constant 0 : index
    %154 = vector.load %arg14[%c1_137, %c0_138, %c0_139] : memref<2x16x256xf32, #tpu.memory_space<vmem>>, vector<1x16x128xf32>
    %155 = vector.shape_cast %154 : vector<1x16x128xf32> to vector<16x128xf32>
    %156 = arith.truncf %155 : vector<16x128xf32> to vector<16x128xbf16>
    %c0_140 = arith.constant 0 : index
    %c128_141 = arith.constant 128 : index
    %157 = vector.load %arg15[%c0_140, %c128_141] : memref<144x256xbf16, #tpu.memory_space<vmem>>, vector<16x128xbf16>
    tpu.vector_store %arg15[%c0_140, %c128_141], %156 {strides = array<i32>} : memref<144x256xbf16, #tpu.memory_space<vmem>>, vector<16x128xbf16>,
    %c1_142 = arith.constant 1 : index
    %c0_143 = arith.constant 0 : index
    %c1_144 = arith.constant 1 : index
    %158 = vector.load %arg14[%c1_142, %c0_143, %c1_144] : memref<2x16x256xf32, #tpu.memory_space<vmem>>, vector<1x16x128xf32>
    %159 = vector.shape_cast %158 : vector<1x16x128xf32> to vector<16x128xf32>
    %160 = arith.truncf %159 : vector<16x128xf32> to vector<16x128xbf16>
    %c16_145 = arith.constant 16 : index
    %c128_146 = arith.constant 128 : index
    %161 = vector.load %arg15[%c16_145, %c128_146] : memref<144x256xbf16, #tpu.memory_space<vmem>>, vector<16x128xbf16>
    tpu.vector_store %arg15[%c16_145, %c128_146], %160 {strides = array<i32>} : memref<144x256xbf16, #tpu.memory_space<vmem>>, vector<16x128xbf16>,
    %c1_147 = arith.constant 1 : index
    %c0_148 = arith.constant 0 : index
    %c2_149 = arith.constant 2 : index
    %162 = vector.load %arg14[%c1_147, %c0_148, %c2_149] : memref<2x16x256xf32, #tpu.memory_space<vmem>>, vector<1x16x128xf32>
    %163 = vector.shape_cast %162 : vector<1x16x128xf32> to vector<16x128xf32>
    %164 = arith.truncf %163 : vector<16x128xf32> to vector<16x128xbf16>
    %c32_150 = arith.constant 32 : index
    %c128_151 = arith.constant 128 : index
    %165 = vector.load %arg15[%c32_150, %c128_151] : memref<144x256xbf16, #tpu.memory_space<vmem>>, vector<16x128xbf16>
    tpu.vector_store %arg15[%c32_150, %c128_151], %164 {strides = array<i32>} : memref<144x256xbf16, #tpu.memory_space<vmem>>, vector<16x128xbf16>,
    %c1_152 = arith.constant 1 : index
    %c0_153 = arith.constant 0 : index
    %c16_154 = arith.constant 16 : index
    %166 = vector.load %arg14[%c1_152, %c0_153, %c16_154] : memref<2x16x256xf32, #tpu.memory_space<vmem>>, vector<1x16x128xf32>
    %167 = vector.shape_cast %166 : vector<1x16x128xf32> to vector<16x128xf32>
    %168 = arith.truncf %167 : vector<16x128xf32> to vector<16x128xbf16>
    %c48_155 = arith.constant 48 : index
    %c128_156 = arith.constant 128 : index
    %169 = vector.load %arg15[%c48_155, %c128_156] : memref<144x256xbf16, #tpu.memory_space<vmem>>, vector<16x128xbf16>
    tpu.vector_store %arg15[%c48_155, %c128_156], %168 {strides = array<i32>} : memref<144x256xbf16, #tpu.memory_space<vmem>>, vector<16x128xbf16>,
    %c1_157 = arith.constant 1 : index
    %c0_158 = arith.constant 0 : index
    %c17_159 = arith.constant 17 : index
    %170 = vector.load %arg14[%c1_157, %c0_158, %c17_159] : memref<2x16x256xf32, #tpu.memory_space<vmem>>, vector<1x16x128xf32>
    %171 = vector.shape_cast %170 : vector<1x16x128xf32> to vector<16x128xf32>
    %172 = arith.truncf %171 : vector<16x128xf32> to vector<16x128xbf16>
    %c64_160 = arith.constant 64 : index
    %c128_161 = arith.constant 128 : index
    %173 = vector.load %arg15[%c64_160, %c128_161] : memref<144x256xbf16, #tpu.memory_space<vmem>>, vector<16x128xbf16>
    tpu.vector_store %arg15[%c64_160, %c128_161], %172 {strides = array<i32>} : memref<144x256xbf16, #tpu.memory_space<vmem>>, vector<16x128xbf16>,
    %c1_162 = arith.constant 1 : index
    %c0_163 = arith.constant 0 : index
    %c18_164 = arith.constant 18 : index
    %174 = vector.load %arg14[%c1_162, %c0_163, %c18_164] : memref<2x16x256xf32, #tpu.memory_space<vmem>>, vector<1x16x128xf32>
    %175 = vector.shape_cast %174 : vector<1x16x128xf32> to vector<16x128xf32>
    %176 = arith.truncf %175 : vector<16x128xf32> to vector<16x128xbf16>
    %c80_165 = arith.constant 80 : index
    %c128_166 = arith.constant 128 : index
    %177 = vector.load %arg15[%c80_165, %c128_166] : memref<144x256xbf16, #tpu.memory_space<vmem>>, vector<16x128xbf16>
    tpu.vector_store %arg15[%c80_165, %c128_166], %176 {strides = array<i32>} : memref<144x256xbf16, #tpu.memory_space<vmem>>, vector<16x128xbf16>,
    %c1_167 = arith.constant 1 : index
    %c0_168 = arith.constant 0 : index
    %c32_169 = arith.constant 32 : index
    %178 = vector.load %arg14[%c1_167, %c0_168, %c32_169] : memref<2x16x256xf32, #tpu.memory_space<vmem>>, vector<1x16x128xf32>
    %179 = vector.shape_cast %178 : vector<1x16x128xf32> to vector<16x128xf32>
    %180 = arith.truncf %179 : vector<16x128xf32> to vector<16x128xbf16>
    %c96_170 = arith.constant 96 : index
    %c128_171 = arith.constant 128 : index
    %181 = vector.load %arg15[%c96_170, %c128_171] : memref<144x256xbf16, #tpu.memory_space<vmem>>, vector<16x128xbf16>
    tpu.vector_store %arg15[%c96_170, %c128_171], %180 {strides = array<i32>} : memref<144x256xbf16, #tpu.memory_space<vmem>>, vector<16x128xbf16>,
    %c1_172 = arith.constant 1 : index
    %c0_173 = arith.constant 0 : index
    %c33_174 = arith.constant 33 : index
    %182 = vector.load %arg14[%c1_172, %c0_173, %c33_174] : memref<2x16x256xf32, #tpu.memory_space<vmem>>, vector<1x16x128xf32>
    %183 = vector.shape_cast %182 : vector<1x16x128xf32> to vector<16x128xf32>
    %184 = arith.truncf %183 : vector<16x128xf32> to vector<16x128xbf16>
    %c112_175 = arith.constant 112 : index
    %c128_176 = arith.constant 128 : index
    %185 = vector.load %arg15[%c112_175, %c128_176] : memref<144x256xbf16, #tpu.memory_space<vmem>>, vector<16x128xbf16>
    tpu.vector_store %arg15[%c112_175, %c128_176], %184 {strides = array<i32>} : memref<144x256xbf16, #tpu.memory_space<vmem>>, vector<16x128xbf16>,
    %c1_177 = arith.constant 1 : index
    %c0_178 = arith.constant 0 : index
    %c34_179 = arith.constant 34 : index
    %186 = vector.load %arg14[%c1_177, %c0_178, %c34_179] : memref<2x16x256xf32, #tpu.memory_space<vmem>>, vector<1x16x128xf32>
    %187 = vector.shape_cast %186 : vector<1x16x128xf32> to vector<16x128xf32>
    %188 = arith.truncf %187 : vector<16x128xf32> to vector<16x128xbf16>
    %c128_180 = arith.constant 128 : index
    %c128_181 = arith.constant 128 : index
    %189 = vector.load %arg15[%c128_180, %c128_181] : memref<144x256xbf16, #tpu.memory_space<vmem>>, vector<16x128xbf16>
    tpu.vector_store %arg15[%c128_180, %c128_181], %188 {strides = array<i32>} : memref<144x256xbf16, #tpu.memory_space<vmem>>, vector<16x128xbf16>,
    %c0_182 = arith.constant 0 : index
    %c0_183 = arith.constant 0 : index
    %190 = vector.load %arg3[%c0_182, %c0_183] : memref<16x144xbf16, #tpu.memory_space<vmem>>, vector<16x144xbf16>
    %c0_184 = arith.constant 0 : index
    %c0_185 = arith.constant 0 : index
    %191 = vector.load %arg15[%c0_184, %c0_185] : memref<144x256xbf16, #tpu.memory_space<vmem>>, vector<144x256xbf16>
    %cst_186 = arith.constant dense<0.000000e+00> : vector<16x256xf32>
    %192 = tpu.matmul %190, %191, %cst_186 {dimension_numbers = #tpu.dot_dimension_numbers<[1], [0], [0], [1], [0, 0, 1, 1], [], []>} : vector<16x144xbf16>, vector<144x256xbf16>, vector<16x256xf32> -> vector<16x256xf32>
    %193 = vector.extract_strided_slice %2 {offsets = [0, 2], sizes = [16, 1], strides = [1, 1]} : vector<16x8xf32> to vector<16x1xf32>
    %194 = vector.extract_strided_slice %2 {offsets = [0, 3], sizes = [16, 1], strides = [1, 1]} : vector<16x8xf32> to vector<16x1xf32>
    %195 = vector.broadcast %1 : vector<1x256xf32> to vector<16x256xf32>
    %196 = arith.mulf %192, %195 : vector<16x256xf32>
    %cst_187 = arith.constant dense<0.000000e+00> : vector<16xf32>
    %197 = vector.multi_reduction <add>, %196, %cst_187 [1] : vector<16x256xf32> to vector<16xf32>
    %198 = vector.shape_cast %197 : vector<16xf32> to vector<16x1xf32>
    %cst_188 = arith.constant 7.812500e-03 : f32
    %199 = vector.broadcast %cst_188 : f32 to vector<16x1xf32>
    %200 = arith.mulf %198, %199 : vector<16x1xf32>
    %201 = arith.mulf %196, %192 : vector<16x256xf32>
    %cst_189 = arith.constant dense<0.000000e+00> : vector<16xf32>
    %202 = vector.multi_reduction <add>, %201, %cst_189 [1] : vector<16x256xf32> to vector<16xf32>
    %203 = vector.shape_cast %202 : vector<16xf32> to vector<16x1xf32>
    %cst_190 = arith.constant 7.812500e-03 : f32
    %204 = vector.broadcast %cst_190 : f32 to vector<16x1xf32>
    %205 = arith.mulf %203, %204 : vector<16x1xf32>
    %206 = arith.mulf %200, %200 : vector<16x1xf32>
    %207 = arith.subf %205, %206 : vector<16x1xf32>
    %cst_191 = arith.constant 9.99999974E-6 : f32
    %208 = vector.broadcast %cst_191 : f32 to vector<16x1xf32>
    %209 = arith.addf %207, %208 : vector<16x1xf32>
    %210 = math.rsqrt %209 : vector<16x1xf32>
    %211 = arith.mulf %193, %210 : vector<16x1xf32>
    %212 = vector.broadcast %200 : vector<16x1xf32> to vector<16x256xf32>
    %213 = arith.subf %192, %212 : vector<16x256xf32>
    %214 = vector.broadcast %211 : vector<16x1xf32> to vector<16x256xf32>
    %215 = arith.mulf %213, %214 : vector<16x256xf32>
    %216 = vector.broadcast %194 : vector<16x1xf32> to vector<16x256xf32>
    %217 = arith.addf %215, %216 : vector<16x256xf32>
    %cst_192 = arith.constant 0.000000e+00 : f32
    %218 = vector.broadcast %cst_192 : f32 to vector<16x256xf32>
    %219 = arith.maximumf %217, %218 : vector<16x256xf32>
    %c0_193 = arith.constant 0 : index
    %c0_194 = arith.constant 0 : index
    %220 = vector.load %arg9[%c0_193, %c0_194] : memref<128x256xf32, #tpu.memory_space<vmem>>, vector<128x256xf32>
    %221 = vector.extract_strided_slice %219 {offsets = [0, 0], sizes = [16, 128], strides = [1, 1]} : vector<16x256xf32> to vector<16x128xf32>
    %cst_195 = arith.constant dense<0.000000e+00> : vector<16x256xf32>
    %222 = tpu.matmul %221, %220, %cst_195 {dimension_numbers = #tpu.dot_dimension_numbers<[1], [0], [0], [1], [0, 0, 1, 1], [], []>} : vector<16x128xf32>, vector<128x256xf32>, vector<16x256xf32> -> vector<16x256xf32>
    %c0_196 = arith.constant 0 : index
    %c0_197 = arith.constant 0 : index
    %c0_198 = arith.constant 0 : index
    %223 = vector.load %arg16[%c0_196, %c0_197, %c0_198] : memref<2x16x256xf32, #tpu.memory_space<vmem>>, vector<1x16x256xf32>
    %224 = vector.shape_cast %223 : vector<1x16x256xf32> to vector<16x256xf32>
    %225 = vector.shape_cast %222 : vector<16x256xf32> to vector<1x16x256xf32>
    tpu.vector_store %arg16[%c0_196, %c0_197, %c0_198], %225 {strides = array<i32>} : memref<2x16x256xf32, #tpu.memory_space<vmem>>, vector<1x16x256xf32>,
    %226 = vector.extract_strided_slice %219 {offsets = [0, 128], sizes = [16, 128], strides = [1, 1]} : vector<16x256xf32> to vector<16x128xf32>
    %cst_199 = arith.constant dense<0.000000e+00> : vector<16x256xf32>
    %227 = tpu.matmul %226, %220, %cst_199 {dimension_numbers = #tpu.dot_dimension_numbers<[1], [0], [0], [1], [0, 0, 1, 1], [], []>} : vector<16x128xf32>, vector<128x256xf32>, vector<16x256xf32> -> vector<16x256xf32>
    %c1_200 = arith.constant 1 : index
    %c0_201 = arith.constant 0 : index
    %c0_202 = arith.constant 0 : index
    %228 = vector.load %arg16[%c1_200, %c0_201, %c0_202] : memref<2x16x256xf32, #tpu.memory_space<vmem>>, vector<1x16x256xf32>
    %229 = vector.shape_cast %228 : vector<1x16x256xf32> to vector<16x256xf32>
    %230 = vector.shape_cast %227 : vector<16x256xf32> to vector<1x16x256xf32>
    tpu.vector_store %arg16[%c1_200, %c0_201, %c0_202], %230 {strides = array<i32>} : memref<2x16x256xf32, #tpu.memory_space<vmem>>, vector<1x16x256xf32>,
    %c0_203 = arith.constant 0 : index
    %c0_204 = arith.constant 0 : index
    %c0_205 = arith.constant 0 : index
    %231 = vector.load %arg16[%c0_203, %c0_204, %c0_205] : memref<2x16x256xf32, #tpu.memory_space<vmem>>, vector<1x16x128xf32>
    %232 = vector.shape_cast %231 : vector<1x16x128xf32> to vector<16x128xf32>
    %233 = arith.truncf %232 : vector<16x128xf32> to vector<16x128xbf16>
    %c0_206 = arith.constant 0 : index
    %c0_207 = arith.constant 0 : index
    %234 = vector.load %arg15[%c0_206, %c0_207] : memref<144x256xbf16, #tpu.memory_space<vmem>>, vector<16x128xbf16>
    tpu.vector_store %arg15[%c0_206, %c0_207], %233 {strides = array<i32>} : memref<144x256xbf16, #tpu.memory_space<vmem>>, vector<16x128xbf16>,
    %c0_208 = arith.constant 0 : index
    %c0_209 = arith.constant 0 : index
    %c1_210 = arith.constant 1 : index
    %235 = vector.load %arg16[%c0_208, %c0_209, %c1_210] : memref<2x16x256xf32, #tpu.memory_space<vmem>>, vector<1x16x128xf32>
    %236 = vector.shape_cast %235 : vector<1x16x128xf32> to vector<16x128xf32>
    %237 = arith.truncf %236 : vector<16x128xf32> to vector<16x128xbf16>
    %c16_211 = arith.constant 16 : index
    %c0_212 = arith.constant 0 : index
    %238 = vector.load %arg15[%c16_211, %c0_212] : memref<144x256xbf16, #tpu.memory_space<vmem>>, vector<16x128xbf16>
    tpu.vector_store %arg15[%c16_211, %c0_212], %237 {strides = array<i32>} : memref<144x256xbf16, #tpu.memory_space<vmem>>, vector<16x128xbf16>,
    %c0_213 = arith.constant 0 : index
    %c0_214 = arith.constant 0 : index
    %c2_215 = arith.constant 2 : index
    %239 = vector.load %arg16[%c0_213, %c0_214, %c2_215] : memref<2x16x256xf32, #tpu.memory_space<vmem>>, vector<1x16x128xf32>
    %240 = vector.shape_cast %239 : vector<1x16x128xf32> to vector<16x128xf32>
    %241 = arith.truncf %240 : vector<16x128xf32> to vector<16x128xbf16>
    %c32_216 = arith.constant 32 : index
    %c0_217 = arith.constant 0 : index
    %242 = vector.load %arg15[%c32_216, %c0_217] : memref<144x256xbf16, #tpu.memory_space<vmem>>, vector<16x128xbf16>
    tpu.vector_store %arg15[%c32_216, %c0_217], %241 {strides = array<i32>} : memref<144x256xbf16, #tpu.memory_space<vmem>>, vector<16x128xbf16>,
    %c0_218 = arith.constant 0 : index
    %c0_219 = arith.constant 0 : index
    %c16_220 = arith.constant 16 : index
    %243 = vector.load %arg16[%c0_218, %c0_219, %c16_220] : memref<2x16x256xf32, #tpu.memory_space<vmem>>, vector<1x16x128xf32>
    %244 = vector.shape_cast %243 : vector<1x16x128xf32> to vector<16x128xf32>
    %245 = arith.truncf %244 : vector<16x128xf32> to vector<16x128xbf16>
    %c48_221 = arith.constant 48 : index
    %c0_222 = arith.constant 0 : index
    %246 = vector.load %arg15[%c48_221, %c0_222] : memref<144x256xbf16, #tpu.memory_space<vmem>>, vector<16x128xbf16>
    tpu.vector_store %arg15[%c48_221, %c0_222], %245 {strides = array<i32>} : memref<144x256xbf16, #tpu.memory_space<vmem>>, vector<16x128xbf16>,
    %c0_223 = arith.constant 0 : index
    %c0_224 = arith.constant 0 : index
    %c17_225 = arith.constant 17 : index
    %247 = vector.load %arg16[%c0_223, %c0_224, %c17_225] : memref<2x16x256xf32, #tpu.memory_space<vmem>>, vector<1x16x128xf32>
    %248 = vector.shape_cast %247 : vector<1x16x128xf32> to vector<16x128xf32>
    %249 = arith.truncf %248 : vector<16x128xf32> to vector<16x128xbf16>
    %c64_226 = arith.constant 64 : index
    %c0_227 = arith.constant 0 : index
    %250 = vector.load %arg15[%c64_226, %c0_227] : memref<144x256xbf16, #tpu.memory_space<vmem>>, vector<16x128xbf16>
    tpu.vector_store %arg15[%c64_226, %c0_227], %249 {strides = array<i32>} : memref<144x256xbf16, #tpu.memory_space<vmem>>, vector<16x128xbf16>,
    %c0_228 = arith.constant 0 : index
    %c0_229 = arith.constant 0 : index
    %c18_230 = arith.constant 18 : index
    %251 = vector.load %arg16[%c0_228, %c0_229, %c18_230] : memref<2x16x256xf32, #tpu.memory_space<vmem>>, vector<1x16x128xf32>
    %252 = vector.shape_cast %251 : vector<1x16x128xf32> to vector<16x128xf32>
    %253 = arith.truncf %252 : vector<16x128xf32> to vector<16x128xbf16>
    %c80_231 = arith.constant 80 : index
    %c0_232 = arith.constant 0 : index
    %254 = vector.load %arg15[%c80_231, %c0_232] : memref<144x256xbf16, #tpu.memory_space<vmem>>, vector<16x128xbf16>
    tpu.vector_store %arg15[%c80_231, %c0_232], %253 {strides = array<i32>} : memref<144x256xbf16, #tpu.memory_space<vmem>>, vector<16x128xbf16>,
    %c0_233 = arith.constant 0 : index
    %c0_234 = arith.constant 0 : index
    %c32_235 = arith.constant 32 : index
    %255 = vector.load %arg16[%c0_233, %c0_234, %c32_235] : memref<2x16x256xf32, #tpu.memory_space<vmem>>, vector<1x16x128xf32>
    %256 = vector.shape_cast %255 : vector<1x16x128xf32> to vector<16x128xf32>
    %257 = arith.truncf %256 : vector<16x128xf32> to vector<16x128xbf16>
    %c96_236 = arith.constant 96 : index
    %c0_237 = arith.constant 0 : index
    %258 = vector.load %arg15[%c96_236, %c0_237] : memref<144x256xbf16, #tpu.memory_space<vmem>>, vector<16x128xbf16>
    tpu.vector_store %arg15[%c96_236, %c0_237], %257 {strides = array<i32>} : memref<144x256xbf16, #tpu.memory_space<vmem>>, vector<16x128xbf16>,
    %c0_238 = arith.constant 0 : index
    %c0_239 = arith.constant 0 : index
    %c33_240 = arith.constant 33 : index
    %259 = vector.load %arg16[%c0_238, %c0_239, %c33_240] : memref<2x16x256xf32, #tpu.memory_space<vmem>>, vector<1x16x128xf32>
    %260 = vector.shape_cast %259 : vector<1x16x128xf32> to vector<16x128xf32>
    %261 = arith.truncf %260 : vector<16x128xf32> to vector<16x128xbf16>
    %c112_241 = arith.constant 112 : index
    %c0_242 = arith.constant 0 : index
    %262 = vector.load %arg15[%c112_241, %c0_242] : memref<144x256xbf16, #tpu.memory_space<vmem>>, vector<16x128xbf16>
    tpu.vector_store %arg15[%c112_241, %c0_242], %261 {strides = array<i32>} : memref<144x256xbf16, #tpu.memory_space<vmem>>, vector<16x128xbf16>,
    %c0_243 = arith.constant 0 : index
    %c0_244 = arith.constant 0 : index
    %c34_245 = arith.constant 34 : index
    %263 = vector.load %arg16[%c0_243, %c0_244, %c34_245] : memref<2x16x256xf32, #tpu.memory_space<vmem>>, vector<1x16x128xf32>
    %264 = vector.shape_cast %263 : vector<1x16x128xf32> to vector<16x128xf32>
    %265 = arith.truncf %264 : vector<16x128xf32> to vector<16x128xbf16>
    %c128_246 = arith.constant 128 : index
    %c0_247 = arith.constant 0 : index
    %266 = vector.load %arg15[%c128_246, %c0_247] : memref<144x256xbf16, #tpu.memory_space<vmem>>, vector<16x128xbf16>
    tpu.vector_store %arg15[%c128_246, %c0_247], %265 {strides = array<i32>} : memref<144x256xbf16, #tpu.memory_space<vmem>>, vector<16x128xbf16>,
    %c1_248 = arith.constant 1 : index
    %c0_249 = arith.constant 0 : index
    %c0_250 = arith.constant 0 : index
    %267 = vector.load %arg16[%c1_248, %c0_249, %c0_250] : memref<2x16x256xf32, #tpu.memory_space<vmem>>, vector<1x16x128xf32>
    %268 = vector.shape_cast %267 : vector<1x16x128xf32> to vector<16x128xf32>
    %269 = arith.truncf %268 : vector<16x128xf32> to vector<16x128xbf16>
    %c0_251 = arith.constant 0 : index
    %c128_252 = arith.constant 128 : index
    %270 = vector.load %arg15[%c0_251, %c128_252] : memref<144x256xbf16, #tpu.memory_space<vmem>>, vector<16x128xbf16>
    tpu.vector_store %arg15[%c0_251, %c128_252], %269 {strides = array<i32>} : memref<144x256xbf16, #tpu.memory_space<vmem>>, vector<16x128xbf16>,
    %c1_253 = arith.constant 1 : index
    %c0_254 = arith.constant 0 : index
    %c1_255 = arith.constant 1 : index
    %271 = vector.load %arg16[%c1_253, %c0_254, %c1_255] : memref<2x16x256xf32, #tpu.memory_space<vmem>>, vector<1x16x128xf32>
    %272 = vector.shape_cast %271 : vector<1x16x128xf32> to vector<16x128xf32>
    %273 = arith.truncf %272 : vector<16x128xf32> to vector<16x128xbf16>
    %c16_256 = arith.constant 16 : index
    %c128_257 = arith.constant 128 : index
    %274 = vector.load %arg15[%c16_256, %c128_257] : memref<144x256xbf16, #tpu.memory_space<vmem>>, vector<16x128xbf16>
    tpu.vector_store %arg15[%c16_256, %c128_257], %273 {strides = array<i32>} : memref<144x256xbf16, #tpu.memory_space<vmem>>, vector<16x128xbf16>,
    %c1_258 = arith.constant 1 : index
    %c0_259 = arith.constant 0 : index
    %c2_260 = arith.constant 2 : index
    %275 = vector.load %arg16[%c1_258, %c0_259, %c2_260] : memref<2x16x256xf32, #tpu.memory_space<vmem>>, vector<1x16x128xf32>
    %276 = vector.shape_cast %275 : vector<1x16x128xf32> to vector<16x128xf32>
    %277 = arith.truncf %276 : vector<16x128xf32> to vector<16x128xbf16>
    %c32_261 = arith.constant 32 : index
    %c128_262 = arith.constant 128 : index
    %278 = vector.load %arg15[%c32_261, %c128_262] : memref<144x256xbf16, #tpu.memory_space<vmem>>, vector<16x128xbf16>
    tpu.vector_store %arg15[%c32_261, %c128_262], %277 {strides = array<i32>} : memref<144x256xbf16, #tpu.memory_space<vmem>>, vector<16x128xbf16>,
    %c1_263 = arith.constant 1 : index
    %c0_264 = arith.constant 0 : index
    %c16_265 = arith.constant 16 : index
    %279 = vector.load %arg16[%c1_263, %c0_264, %c16_265] : memref<2x16x256xf32, #tpu.memory_space<vmem>>, vector<1x16x128xf32>
    %280 = vector.shape_cast %279 : vector<1x16x128xf32> to vector<16x128xf32>
    %281 = arith.truncf %280 : vector<16x128xf32> to vector<16x128xbf16>
    %c48_266 = arith.constant 48 : index
    %c128_267 = arith.constant 128 : index
    %282 = vector.load %arg15[%c48_266, %c128_267] : memref<144x256xbf16, #tpu.memory_space<vmem>>, vector<16x128xbf16>
    tpu.vector_store %arg15[%c48_266, %c128_267], %281 {strides = array<i32>} : memref<144x256xbf16, #tpu.memory_space<vmem>>, vector<16x128xbf16>,
    %c1_268 = arith.constant 1 : index
    %c0_269 = arith.constant 0 : index
    %c17_270 = arith.constant 17 : index
    %283 = vector.load %arg16[%c1_268, %c0_269, %c17_270] : memref<2x16x256xf32, #tpu.memory_space<vmem>>, vector<1x16x128xf32>
    %284 = vector.shape_cast %283 : vector<1x16x128xf32> to vector<16x128xf32>
    %285 = arith.truncf %284 : vector<16x128xf32> to vector<16x128xbf16>
    %c64_271 = arith.constant 64 : index
    %c128_272 = arith.constant 128 : index
    %286 = vector.load %arg15[%c64_271, %c128_272] : memref<144x256xbf16, #tpu.memory_space<vmem>>, vector<16x128xbf16>
    tpu.vector_store %arg15[%c64_271, %c128_272], %285 {strides = array<i32>} : memref<144x256xbf16, #tpu.memory_space<vmem>>, vector<16x128xbf16>,
    %c1_273 = arith.constant 1 : index
    %c0_274 = arith.constant 0 : index
    %c18_275 = arith.constant 18 : index
    %287 = vector.load %arg16[%c1_273, %c0_274, %c18_275] : memref<2x16x256xf32, #tpu.memory_space<vmem>>, vector<1x16x128xf32>
    %288 = vector.shape_cast %287 : vector<1x16x128xf32> to vector<16x128xf32>
    %289 = arith.truncf %288 : vector<16x128xf32> to vector<16x128xbf16>
    %c80_276 = arith.constant 80 : index
    %c128_277 = arith.constant 128 : index
    %290 = vector.load %arg15[%c80_276, %c128_277] : memref<144x256xbf16, #tpu.memory_space<vmem>>, vector<16x128xbf16>
    tpu.vector_store %arg15[%c80_276, %c128_277], %289 {strides = array<i32>} : memref<144x256xbf16, #tpu.memory_space<vmem>>, vector<16x128xbf16>,
    %c1_278 = arith.constant 1 : index
    %c0_279 = arith.constant 0 : index
    %c32_280 = arith.constant 32 : index
    %291 = vector.load %arg16[%c1_278, %c0_279, %c32_280] : memref<2x16x256xf32, #tpu.memory_space<vmem>>, vector<1x16x128xf32>
    %292 = vector.shape_cast %291 : vector<1x16x128xf32> to vector<16x128xf32>
    %293 = arith.truncf %292 : vector<16x128xf32> to vector<16x128xbf16>
    %c96_281 = arith.constant 96 : index
    %c128_282 = arith.constant 128 : index
    %294 = vector.load %arg15[%c96_281, %c128_282] : memref<144x256xbf16, #tpu.memory_space<vmem>>, vector<16x128xbf16>
    tpu.vector_store %arg15[%c96_281, %c128_282], %293 {strides = array<i32>} : memref<144x256xbf16, #tpu.memory_space<vmem>>, vector<16x128xbf16>,
    %c1_283 = arith.constant 1 : index
    %c0_284 = arith.constant 0 : index
    %c33_285 = arith.constant 33 : index
    %295 = vector.load %arg16[%c1_283, %c0_284, %c33_285] : memref<2x16x256xf32, #tpu.memory_space<vmem>>, vector<1x16x128xf32>
    %296 = vector.shape_cast %295 : vector<1x16x128xf32> to vector<16x128xf32>
    %297 = arith.truncf %296 : vector<16x128xf32> to vector<16x128xbf16>
    %c112_286 = arith.constant 112 : index
    %c128_287 = arith.constant 128 : index
    %298 = vector.load %arg15[%c112_286, %c128_287] : memref<144x256xbf16, #tpu.memory_space<vmem>>, vector<16x128xbf16>
    tpu.vector_store %arg15[%c112_286, %c128_287], %297 {strides = array<i32>} : memref<144x256xbf16, #tpu.memory_space<vmem>>, vector<16x128xbf16>,
    %c1_288 = arith.constant 1 : index
    %c0_289 = arith.constant 0 : index
    %c34_290 = arith.constant 34 : index
    %299 = vector.load %arg16[%c1_288, %c0_289, %c34_290] : memref<2x16x256xf32, #tpu.memory_space<vmem>>, vector<1x16x128xf32>
    %300 = vector.shape_cast %299 : vector<1x16x128xf32> to vector<16x128xf32>
    %301 = arith.truncf %300 : vector<16x128xf32> to vector<16x128xbf16>
    %c128_291 = arith.constant 128 : index
    %c128_292 = arith.constant 128 : index
    %302 = vector.load %arg15[%c128_291, %c128_292] : memref<144x256xbf16, #tpu.memory_space<vmem>>, vector<16x128xbf16>
    tpu.vector_store %arg15[%c128_291, %c128_292], %301 {strides = array<i32>} : memref<144x256xbf16, #tpu.memory_space<vmem>>, vector<16x128xbf16>,
    %c0_293 = arith.constant 0 : index
    %c0_294 = arith.constant 0 : index
    %303 = vector.load %arg4[%c0_293, %c0_294] : memref<16x144xbf16, #tpu.memory_space<vmem>>, vector<16x144xbf16>
    %c0_295 = arith.constant 0 : index
    %c0_296 = arith.constant 0 : index
    %304 = vector.load %arg15[%c0_295, %c0_296] : memref<144x256xbf16, #tpu.memory_space<vmem>>, vector<144x256xbf16>
    %cst_297 = arith.constant dense<0.000000e+00> : vector<16x256xf32>
    %305 = tpu.matmul %303, %304, %cst_297 {dimension_numbers = #tpu.dot_dimension_numbers<[1], [0], [0], [1], [0, 0, 1, 1], [], []>} : vector<16x144xbf16>, vector<144x256xbf16>, vector<16x256xf32> -> vector<16x256xf32>
    %306 = vector.extract_strided_slice %2 {offsets = [0, 4], sizes = [16, 1], strides = [1, 1]} : vector<16x8xf32> to vector<16x1xf32>
    %307 = vector.extract_strided_slice %2 {offsets = [0, 5], sizes = [16, 1], strides = [1, 1]} : vector<16x8xf32> to vector<16x1xf32>
    %308 = vector.broadcast %1 : vector<1x256xf32> to vector<16x256xf32>
    %309 = arith.mulf %305, %308 : vector<16x256xf32>
    %cst_298 = arith.constant dense<0.000000e+00> : vector<16xf32>
    %310 = vector.multi_reduction <add>, %309, %cst_298 [1] : vector<16x256xf32> to vector<16xf32>
    %311 = vector.shape_cast %310 : vector<16xf32> to vector<16x1xf32>
    %cst_299 = arith.constant 7.812500e-03 : f32
    %312 = vector.broadcast %cst_299 : f32 to vector<16x1xf32>
    %313 = arith.mulf %311, %312 : vector<16x1xf32>
    %314 = arith.mulf %309, %305 : vector<16x256xf32>
    %cst_300 = arith.constant dense<0.000000e+00> : vector<16xf32>
    %315 = vector.multi_reduction <add>, %314, %cst_300 [1] : vector<16x256xf32> to vector<16xf32>
    %316 = vector.shape_cast %315 : vector<16xf32> to vector<16x1xf32>
    %cst_301 = arith.constant 7.812500e-03 : f32
    %317 = vector.broadcast %cst_301 : f32 to vector<16x1xf32>
    %318 = arith.mulf %316, %317 : vector<16x1xf32>
    %319 = arith.mulf %313, %313 : vector<16x1xf32>
    %320 = arith.subf %318, %319 : vector<16x1xf32>
    %cst_302 = arith.constant 9.99999974E-6 : f32
    %321 = vector.broadcast %cst_302 : f32 to vector<16x1xf32>
    %322 = arith.addf %320, %321 : vector<16x1xf32>
    %323 = math.rsqrt %322 : vector<16x1xf32>
    %324 = arith.mulf %306, %323 : vector<16x1xf32>
    %325 = vector.broadcast %313 : vector<16x1xf32> to vector<16x256xf32>
    %326 = arith.subf %305, %325 : vector<16x256xf32>
    %327 = vector.broadcast %324 : vector<16x1xf32> to vector<16x256xf32>
    %328 = arith.mulf %326, %327 : vector<16x256xf32>
    %329 = vector.broadcast %307 : vector<16x1xf32> to vector<16x256xf32>
    %330 = arith.addf %328, %329 : vector<16x256xf32>
    %cst_303 = arith.constant 0.000000e+00 : f32
    %331 = vector.broadcast %cst_303 : f32 to vector<16x256xf32>
    %332 = arith.maximumf %330, %331 : vector<16x256xf32>
    %c0_304 = arith.constant 0 : index
    %c0_305 = arith.constant 0 : index
    %333 = vector.load %arg8[%c0_304, %c0_305] : memref<128x512xf32, #tpu.memory_space<vmem>>, vector<128x512xf32>
    %334 = vector.extract_strided_slice %332 {offsets = [0, 0], sizes = [16, 128], strides = [1, 1]} : vector<16x256xf32> to vector<16x128xf32>
    %cst_306 = arith.constant dense<0.000000e+00> : vector<16x512xf32>
    %335 = tpu.matmul %334, %333, %cst_306 {dimension_numbers = #tpu.dot_dimension_numbers<[1], [0], [0], [1], [0, 0, 1, 1], [], []>} : vector<16x128xf32>, vector<128x512xf32>, vector<16x512xf32> -> vector<16x512xf32>
    %c0_307 = arith.constant 0 : index
    %c0_308 = arith.constant 0 : index
    %c0_309 = arith.constant 0 : index
    %336 = vector.load %arg17[%c0_307, %c0_308, %c0_309] : memref<2x16x512xf32, #tpu.memory_space<vmem>>, vector<1x16x512xf32>
    %337 = vector.shape_cast %336 : vector<1x16x512xf32> to vector<16x512xf32>
    %338 = vector.shape_cast %335 : vector<16x512xf32> to vector<1x16x512xf32>
    tpu.vector_store %arg17[%c0_307, %c0_308, %c0_309], %338 {strides = array<i32>} : memref<2x16x512xf32, #tpu.memory_space<vmem>>, vector<1x16x512xf32>,
    %339 = vector.extract_strided_slice %332 {offsets = [0, 128], sizes = [16, 128], strides = [1, 1]} : vector<16x256xf32> to vector<16x128xf32>
    %cst_310 = arith.constant dense<0.000000e+00> : vector<16x512xf32>
    %340 = tpu.matmul %339, %333, %cst_310 {dimension_numbers = #tpu.dot_dimension_numbers<[1], [0], [0], [1], [0, 0, 1, 1], [], []>} : vector<16x128xf32>, vector<128x512xf32>, vector<16x512xf32> -> vector<16x512xf32>
    %c1_311 = arith.constant 1 : index
    %c0_312 = arith.constant 0 : index
    %c0_313 = arith.constant 0 : index
    %341 = vector.load %arg17[%c1_311, %c0_312, %c0_313] : memref<2x16x512xf32, #tpu.memory_space<vmem>>, vector<1x16x512xf32>
    %342 = vector.shape_cast %341 : vector<1x16x512xf32> to vector<16x512xf32>
    %343 = vector.shape_cast %340 : vector<16x512xf32> to vector<1x16x512xf32>
    tpu.vector_store %arg17[%c1_311, %c0_312, %c0_313], %343 {strides = array<i32>} : memref<2x16x512xf32, #tpu.memory_space<vmem>>, vector<1x16x512xf32>,
    %c0_314 = arith.constant 0 : index
    %c0_315 = arith.constant 0 : index
    %344 = vector.load %arg5[%c0_314, %c0_315] : memref<16x9xf32, #tpu.memory_space<vmem>>, vector<16x9xf32>
    %345 = vector.extract_strided_slice %344 {offsets = [0, 0], sizes = [16, 1], strides = [1, 1]} : vector<16x9xf32> to vector<16x1xf32>
    %c0_316 = arith.constant 0 : index
    %c0_317 = arith.constant 0 : index
    %c0_318 = arith.constant 0 : index
    %346 = vector.load %arg17[%c0_316, %c0_317, %c0_318] : memref<2x16x512xf32, #tpu.memory_space<vmem>>, vector<1x16x384xf32>
    %347 = vector.shape_cast %346 : vector<1x16x384xf32> to vector<16x384xf32>
    %348 = vector.broadcast %345 : vector<16x1xf32> to vector<16x384xf32>
    %349 = arith.mulf %348, %347 : vector<16x384xf32>
    %350 = vector.extract_strided_slice %344 {offsets = [0, 1], sizes = [16, 1], strides = [1, 1]} : vector<16x9xf32> to vector<16x1xf32>
    %c0_319 = arith.constant 0 : index
    %c0_320 = arith.constant 0 : index
    %c1_321 = arith.constant 1 : index
    %351 = vector.load %arg17[%c0_319, %c0_320, %c1_321] : memref<2x16x512xf32, #tpu.memory_space<vmem>>, vector<1x16x384xf32>
    %352 = vector.shape_cast %351 : vector<1x16x384xf32> to vector<16x384xf32>
    %353 = vector.broadcast %350 : vector<16x1xf32> to vector<16x384xf32>
    %354 = arith.mulf %353, %352 : vector<16x384xf32>
    %355 = arith.addf %349, %354 : vector<16x384xf32>
    %356 = vector.extract_strided_slice %344 {offsets = [0, 2], sizes = [16, 1], strides = [1, 1]} : vector<16x9xf32> to vector<16x1xf32>
    %c0_322 = arith.constant 0 : index
    %c0_323 = arith.constant 0 : index
    %c2_324 = arith.constant 2 : index
    %357 = vector.load %arg17[%c0_322, %c0_323, %c2_324] : memref<2x16x512xf32, #tpu.memory_space<vmem>>, vector<1x16x384xf32>
    %358 = vector.shape_cast %357 : vector<1x16x384xf32> to vector<16x384xf32>
    %359 = vector.broadcast %356 : vector<16x1xf32> to vector<16x384xf32>
    %360 = arith.mulf %359, %358 : vector<16x384xf32>
    %361 = arith.addf %355, %360 : vector<16x384xf32>
    %362 = vector.extract_strided_slice %344 {offsets = [0, 3], sizes = [16, 1], strides = [1, 1]} : vector<16x9xf32> to vector<16x1xf32>
    %c0_325 = arith.constant 0 : index
    %c0_326 = arith.constant 0 : index
    %c24_327 = arith.constant 24 : index
    %363 = vector.load %arg17[%c0_325, %c0_326, %c24_327] : memref<2x16x512xf32, #tpu.memory_space<vmem>>, vector<1x16x384xf32>
    %364 = vector.shape_cast %363 : vector<1x16x384xf32> to vector<16x384xf32>
    %365 = vector.broadcast %362 : vector<16x1xf32> to vector<16x384xf32>
    %366 = arith.mulf %365, %364 : vector<16x384xf32>
    %367 = arith.addf %361, %366 : vector<16x384xf32>
    %368 = vector.extract_strided_slice %344 {offsets = [0, 4], sizes = [16, 1], strides = [1, 1]} : vector<16x9xf32> to vector<16x1xf32>
    %c0_328 = arith.constant 0 : index
    %c0_329 = arith.constant 0 : index
    %c25_330 = arith.constant 25 : index
    %369 = vector.load %arg17[%c0_328, %c0_329, %c25_330] : memref<2x16x512xf32, #tpu.memory_space<vmem>>, vector<1x16x384xf32>
    %370 = vector.shape_cast %369 : vector<1x16x384xf32> to vector<16x384xf32>
    %371 = vector.broadcast %368 : vector<16x1xf32> to vector<16x384xf32>
    %372 = arith.mulf %371, %370 : vector<16x384xf32>
    %373 = arith.addf %367, %372 : vector<16x384xf32>
    %374 = vector.extract_strided_slice %344 {offsets = [0, 5], sizes = [16, 1], strides = [1, 1]} : vector<16x9xf32> to vector<16x1xf32>
    %c0_331 = arith.constant 0 : index
    %c0_332 = arith.constant 0 : index
    %c26_333 = arith.constant 26 : index
    %375 = vector.load %arg17[%c0_331, %c0_332, %c26_333] : memref<2x16x512xf32, #tpu.memory_space<vmem>>, vector<1x16x384xf32>
    %376 = vector.shape_cast %375 : vector<1x16x384xf32> to vector<16x384xf32>
    %377 = vector.broadcast %374 : vector<16x1xf32> to vector<16x384xf32>
    %378 = arith.mulf %377, %376 : vector<16x384xf32>
    %379 = arith.addf %373, %378 : vector<16x384xf32>
    %380 = vector.extract_strided_slice %344 {offsets = [0, 6], sizes = [16, 1], strides = [1, 1]} : vector<16x9xf32> to vector<16x1xf32>
    %c0_334 = arith.constant 0 : index
    %c0_335 = arith.constant 0 : index
    %c48_336 = arith.constant 48 : index
    %381 = vector.load %arg17[%c0_334, %c0_335, %c48_336] : memref<2x16x512xf32, #tpu.memory_space<vmem>>, vector<1x16x384xf32>
    %382 = vector.shape_cast %381 : vector<1x16x384xf32> to vector<16x384xf32>
    %383 = vector.broadcast %380 : vector<16x1xf32> to vector<16x384xf32>
    %384 = arith.mulf %383, %382 : vector<16x384xf32>
    %385 = arith.addf %379, %384 : vector<16x384xf32>
    %386 = vector.extract_strided_slice %344 {offsets = [0, 7], sizes = [16, 1], strides = [1, 1]} : vector<16x9xf32> to vector<16x1xf32>
    %c0_337 = arith.constant 0 : index
    %c0_338 = arith.constant 0 : index
    %c49_339 = arith.constant 49 : index
    %387 = vector.load %arg17[%c0_337, %c0_338, %c49_339] : memref<2x16x512xf32, #tpu.memory_space<vmem>>, vector<1x16x384xf32>
    %388 = vector.shape_cast %387 : vector<1x16x384xf32> to vector<16x384xf32>
    %389 = vector.broadcast %386 : vector<16x1xf32> to vector<16x384xf32>
    %390 = arith.mulf %389, %388 : vector<16x384xf32>
    %391 = arith.addf %385, %390 : vector<16x384xf32>
    %392 = vector.extract_strided_slice %344 {offsets = [0, 8], sizes = [16, 1], strides = [1, 1]} : vector<16x9xf32> to vector<16x1xf32>
    %c0_340 = arith.constant 0 : index
    %c0_341 = arith.constant 0 : index
    %c50_342 = arith.constant 50 : index
    %393 = vector.load %arg17[%c0_340, %c0_341, %c50_342] : memref<2x16x512xf32, #tpu.memory_space<vmem>>, vector<1x16x384xf32>
    %394 = vector.shape_cast %393 : vector<1x16x384xf32> to vector<16x384xf32>
    %395 = vector.broadcast %392 : vector<16x1xf32> to vector<16x384xf32>
    %396 = arith.mulf %395, %394 : vector<16x384xf32>
    %397 = arith.addf %391, %396 : vector<16x384xf32>
    %cst_343 = arith.constant dense<0.000000e+00> : vector<384xf32>
    %398 = vector.multi_reduction <add>, %397, %cst_343 [0] : vector<16x384xf32> to vector<384xf32>
    %399 = vector.shape_cast %398 : vector<384xf32> to vector<1x384xf32>
    %400 = vector.extract_strided_slice %344 {offsets = [0, 0], sizes = [16, 1], strides = [1, 1]} : vector<16x9xf32> to vector<16x1xf32>
    %c1_344 = arith.constant 1 : index
    %c0_345 = arith.constant 0 : index
    %c0_346 = arith.constant 0 : index
    %401 = vector.load %arg17[%c1_344, %c0_345, %c0_346] : memref<2x16x512xf32, #tpu.memory_space<vmem>>, vector<1x16x384xf32>
    %402 = vector.shape_cast %401 : vector<1x16x384xf32> to vector<16x384xf32>
    %403 = vector.broadcast %400 : vector<16x1xf32> to vector<16x384xf32>
    %404 = arith.mulf %403, %402 : vector<16x384xf32>
    %405 = vector.extract_strided_slice %344 {offsets = [0, 1], sizes = [16, 1], strides = [1, 1]} : vector<16x9xf32> to vector<16x1xf32>
    %c1_347 = arith.constant 1 : index
    %c0_348 = arith.constant 0 : index
    %c1_349 = arith.constant 1 : index
    %406 = vector.load %arg17[%c1_347, %c0_348, %c1_349] : memref<2x16x512xf32, #tpu.memory_space<vmem>>, vector<1x16x384xf32>
    %407 = vector.shape_cast %406 : vector<1x16x384xf32> to vector<16x384xf32>
    %408 = vector.broadcast %405 : vector<16x1xf32> to vector<16x384xf32>
    %409 = arith.mulf %408, %407 : vector<16x384xf32>
    %410 = arith.addf %404, %409 : vector<16x384xf32>
    %411 = vector.extract_strided_slice %344 {offsets = [0, 2], sizes = [16, 1], strides = [1, 1]} : vector<16x9xf32> to vector<16x1xf32>
    %c1_350 = arith.constant 1 : index
    %c0_351 = arith.constant 0 : index
    %c2_352 = arith.constant 2 : index
    %412 = vector.load %arg17[%c1_350, %c0_351, %c2_352] : memref<2x16x512xf32, #tpu.memory_space<vmem>>, vector<1x16x384xf32>
    %413 = vector.shape_cast %412 : vector<1x16x384xf32> to vector<16x384xf32>
    %414 = vector.broadcast %411 : vector<16x1xf32> to vector<16x384xf32>
    %415 = arith.mulf %414, %413 : vector<16x384xf32>
    %416 = arith.addf %410, %415 : vector<16x384xf32>
    %417 = vector.extract_strided_slice %344 {offsets = [0, 3], sizes = [16, 1], strides = [1, 1]} : vector<16x9xf32> to vector<16x1xf32>
    %c1_353 = arith.constant 1 : index
    %c0_354 = arith.constant 0 : index
    %c24_355 = arith.constant 24 : index
    %418 = vector.load %arg17[%c1_353, %c0_354, %c24_355] : memref<2x16x512xf32, #tpu.memory_space<vmem>>, vector<1x16x384xf32>
    %419 = vector.shape_cast %418 : vector<1x16x384xf32> to vector<16x384xf32>
    %420 = vector.broadcast %417 : vector<16x1xf32> to vector<16x384xf32>
    %421 = arith.mulf %420, %419 : vector<16x384xf32>
    %422 = arith.addf %416, %421 : vector<16x384xf32>
    %423 = vector.extract_strided_slice %344 {offsets = [0, 4], sizes = [16, 1], strides = [1, 1]} : vector<16x9xf32> to vector<16x1xf32>
    %c1_356 = arith.constant 1 : index
    %c0_357 = arith.constant 0 : index
    %c25_358 = arith.constant 25 : index
    %424 = vector.load %arg17[%c1_356, %c0_357, %c25_358] : memref<2x16x512xf32, #tpu.memory_space<vmem>>, vector<1x16x384xf32>
    %425 = vector.shape_cast %424 : vector<1x16x384xf32> to vector<16x384xf32>
    %426 = vector.broadcast %423 : vector<16x1xf32> to vector<16x384xf32>
    %427 = arith.mulf %426, %425 : vector<16x384xf32>
    %428 = arith.addf %422, %427 : vector<16x384xf32>
    %429 = vector.extract_strided_slice %344 {offsets = [0, 5], sizes = [16, 1], strides = [1, 1]} : vector<16x9xf32> to vector<16x1xf32>
    %c1_359 = arith.constant 1 : index
    %c0_360 = arith.constant 0 : index
    %c26_361 = arith.constant 26 : index
    %430 = vector.load %arg17[%c1_359, %c0_360, %c26_361] : memref<2x16x512xf32, #tpu.memory_space<vmem>>, vector<1x16x384xf32>
    %431 = vector.shape_cast %430 : vector<1x16x384xf32> to vector<16x384xf32>
    %432 = vector.broadcast %429 : vector<16x1xf32> to vector<16x384xf32>
    %433 = arith.mulf %432, %431 : vector<16x384xf32>
    %434 = arith.addf %428, %433 : vector<16x384xf32>
    %435 = vector.extract_strided_slice %344 {offsets = [0, 6], sizes = [16, 1], strides = [1, 1]} : vector<16x9xf32> to vector<16x1xf32>
    %c1_362 = arith.constant 1 : index
    %c0_363 = arith.constant 0 : index
    %c48_364 = arith.constant 48 : index
    %436 = vector.load %arg17[%c1_362, %c0_363, %c48_364] : memref<2x16x512xf32, #tpu.memory_space<vmem>>, vector<1x16x384xf32>
    %437 = vector.shape_cast %436 : vector<1x16x384xf32> to vector<16x384xf32>
    %438 = vector.broadcast %435 : vector<16x1xf32> to vector<16x384xf32>
    %439 = arith.mulf %438, %437 : vector<16x384xf32>
    %440 = arith.addf %434, %439 : vector<16x384xf32>
    %441 = vector.extract_strided_slice %344 {offsets = [0, 7], sizes = [16, 1], strides = [1, 1]} : vector<16x9xf32> to vector<16x1xf32>
    %c1_365 = arith.constant 1 : index
    %c0_366 = arith.constant 0 : index
    %c49_367 = arith.constant 49 : index
    %442 = vector.load %arg17[%c1_365, %c0_366, %c49_367] : memref<2x16x512xf32, #tpu.memory_space<vmem>>, vector<1x16x384xf32>
    %443 = vector.shape_cast %442 : vector<1x16x384xf32> to vector<16x384xf32>
    %444 = vector.broadcast %441 : vector<16x1xf32> to vector<16x384xf32>
    %445 = arith.mulf %444, %443 : vector<16x384xf32>
    %446 = arith.addf %440, %445 : vector<16x384xf32>
    %447 = vector.extract_strided_slice %344 {offsets = [0, 8], sizes = [16, 1], strides = [1, 1]} : vector<16x9xf32> to vector<16x1xf32>
    %c1_368 = arith.constant 1 : index
    %c0_369 = arith.constant 0 : index
    %c50_370 = arith.constant 50 : index
    %448 = vector.load %arg17[%c1_368, %c0_369, %c50_370] : memref<2x16x512xf32, #tpu.memory_space<vmem>>, vector<1x16x384xf32>
    %449 = vector.shape_cast %448 : vector<1x16x384xf32> to vector<16x384xf32>
    %450 = vector.broadcast %447 : vector<16x1xf32> to vector<16x384xf32>
    %451 = arith.mulf %450, %449 : vector<16x384xf32>
    %452 = arith.addf %446, %451 : vector<16x384xf32>
    %cst_371 = arith.constant dense<0.000000e+00> : vector<384xf32>
    %453 = vector.multi_reduction <add>, %452, %cst_371 [0] : vector<16x384xf32> to vector<384xf32>
    %454 = vector.shape_cast %453 : vector<384xf32> to vector<1x384xf32>
    %455 = vector.extract_strided_slice %0 {offsets = [0, 0], sizes = [1, 384], strides = [1, 1]} : vector<1x768xf32> to vector<1x384xf32>
    %cst_372 = arith.constant 0.000000e+00 : f32
    %456 = vector.broadcast %cst_372 : f32 to vector<1x1xf32>
    %cst_373 = arith.constant 0.000000e+00 : f32
    %457 = vector.broadcast %cst_373 : f32 to vector<1x1xf32>
    %458 = arith.mulf %399, %455 : vector<1x384xf32>
    %cst_374 = arith.constant dense<0.000000e+00> : vector<1xf32>
    %459 = vector.multi_reduction <add>, %458, %cst_374 [1] : vector<1x384xf32> to vector<1xf32>
    %460 = vector.shape_cast %459 : vector<1xf32> to vector<1x1xf32>
    %461 = arith.addf %456, %460 : vector<1x1xf32>
    %462 = arith.mulf %458, %399 : vector<1x384xf32>
    %cst_375 = arith.constant dense<0.000000e+00> : vector<1xf32>
    %463 = vector.multi_reduction <add>, %462, %cst_375 [1] : vector<1x384xf32> to vector<1xf32>
    %464 = vector.shape_cast %463 : vector<1xf32> to vector<1x1xf32>
    %465 = arith.addf %457, %464 : vector<1x1xf32>
    %466 = arith.mulf %454, %455 : vector<1x384xf32>
    %cst_376 = arith.constant dense<0.000000e+00> : vector<1xf32>
    %467 = vector.multi_reduction <add>, %466, %cst_376 [1] : vector<1x384xf32> to vector<1xf32>
    %468 = vector.shape_cast %467 : vector<1xf32> to vector<1x1xf32>
    %469 = arith.addf %461, %468 : vector<1x1xf32>
    %470 = arith.mulf %466, %454 : vector<1x384xf32>
    %cst_377 = arith.constant dense<0.000000e+00> : vector<1xf32>
    %471 = vector.multi_reduction <add>, %470, %cst_377 [1] : vector<1x384xf32> to vector<1xf32>
    %472 = vector.shape_cast %471 : vector<1xf32> to vector<1x1xf32>
    %473 = arith.addf %465, %472 : vector<1x1xf32>
    %cst_378 = arith.constant 0.001953125 : f32
    %474 = vector.broadcast %cst_378 : f32 to vector<1x1xf32>
    %475 = arith.mulf %469, %474 : vector<1x1xf32>
    %cst_379 = arith.constant 0.001953125 : f32
    %476 = vector.broadcast %cst_379 : f32 to vector<1x1xf32>
    %477 = arith.mulf %473, %476 : vector<1x1xf32>
    %478 = arith.mulf %475, %475 : vector<1x1xf32>
    %479 = arith.subf %477, %478 : vector<1x1xf32>
    %480 = vector.extract_strided_slice %2 {offsets = [0, 6], sizes = [1, 1], strides = [1, 1]} : vector<16x8xf32> to vector<1x1xf32>
    %cst_380 = arith.constant 9.99999974E-6 : f32
    %481 = vector.broadcast %cst_380 : f32 to vector<1x1xf32>
    %482 = arith.addf %479, %481 : vector<1x1xf32>
    %483 = math.rsqrt %482 : vector<1x1xf32>
    %484 = arith.mulf %480, %483 : vector<1x1xf32>
    %485 = vector.extract_strided_slice %2 {offsets = [0, 7], sizes = [1, 1], strides = [1, 1]} : vector<16x8xf32> to vector<1x1xf32>
    %486 = vector.broadcast %475 : vector<1x1xf32> to vector<1x384xf32>
    %487 = arith.subf %399, %486 : vector<1x384xf32>
    %488 = vector.broadcast %484 : vector<1x1xf32> to vector<1x384xf32>
    %489 = arith.mulf %487, %488 : vector<1x384xf32>
    %490 = vector.broadcast %485 : vector<1x1xf32> to vector<1x384xf32>
    %491 = arith.addf %489, %490 : vector<1x384xf32>
    %cst_381 = arith.constant 0.000000e+00 : f32
    %492 = vector.broadcast %cst_381 : f32 to vector<1x384xf32>
    %493 = arith.subf %492, %491 : vector<1x384xf32>
    %494 = math.exp %493 : vector<1x384xf32>
    %cst_382 = arith.constant 1.000000e+00 : f32
    %495 = vector.broadcast %cst_382 : f32 to vector<1x384xf32>
    %496 = arith.addf %495, %494 : vector<1x384xf32>
    %497 = tpu.reciprocal %496 {approx = true} : vector<1x384xf32> -> vector<1x384xf32>
    %498 = vector.extract_strided_slice %106 {offsets = [0, 0], sizes = [4, 384], strides = [1, 1]} : vector<4x768xf32> to vector<4x384xf32>
    %c0_383 = arith.constant 0 : index
    %c0_384 = arith.constant 0 : index
    %c25_385 = arith.constant 25 : index
    %499 = vector.load %arg1[%c0_383, %c0_384, %c25_385] : memref<2x8x512xf32, #tpu.memory_space<vmem>>, vector<1x4x384xf32>
    %500 = vector.shape_cast %499 : vector<1x4x384xf32> to vector<4x384xf32>
    %501 = vector.broadcast %497 : vector<1x384xf32> to vector<4x384xf32>
    %502 = arith.mulf %498, %501 : vector<4x384xf32>
    %503 = arith.addf %502, %500 : vector<4x384xf32>
    %c0_386 = arith.constant 0 : index
    %c0_387 = arith.constant 0 : index
    %c0_388 = arith.constant 0 : index
    %504 = vector.load %arg12[%c0_386, %c0_387, %c0_388] : memref<2x4x384xf32, #tpu.memory_space<vmem>>, vector<1x4x384xf32>
    %505 = vector.shape_cast %504 : vector<1x4x384xf32> to vector<4x384xf32>
    %506 = vector.shape_cast %503 : vector<4x384xf32> to vector<1x4x384xf32>
    tpu.vector_store %arg12[%c0_386, %c0_387, %c0_388], %506 {strides = array<i32>} : memref<2x4x384xf32, #tpu.memory_space<vmem>>, vector<1x4x384xf32>,
    %507 = vector.broadcast %475 : vector<1x1xf32> to vector<1x384xf32>
    %508 = arith.subf %454, %507 : vector<1x384xf32>
    %509 = vector.broadcast %484 : vector<1x1xf32> to vector<1x384xf32>
    %510 = arith.mulf %508, %509 : vector<1x384xf32>
    %511 = vector.broadcast %485 : vector<1x1xf32> to vector<1x384xf32>
    %512 = arith.addf %510, %511 : vector<1x384xf32>
    %cst_389 = arith.constant 0.000000e+00 : f32
    %513 = vector.broadcast %cst_389 : f32 to vector<1x384xf32>
    %514 = arith.subf %513, %512 : vector<1x384xf32>
    %515 = math.exp %514 : vector<1x384xf32>
    %cst_390 = arith.constant 1.000000e+00 : f32
    %516 = vector.broadcast %cst_390 : f32 to vector<1x384xf32>
    %517 = arith.addf %516, %515 : vector<1x384xf32>
    %518 = tpu.reciprocal %517 {approx = true} : vector<1x384xf32> -> vector<1x384xf32>
    %519 = vector.extract_strided_slice %106 {offsets = [0, 384], sizes = [4, 384], strides = [1, 1]} : vector<4x768xf32> to vector<4x384xf32>
    %c1_391 = arith.constant 1 : index
    %c0_392 = arith.constant 0 : index
    %c25_393 = arith.constant 25 : index
    %520 = vector.load %arg1[%c1_391, %c0_392, %c25_393] : memref<2x8x512xf32, #tpu.memory_space<vmem>>, vector<1x4x384xf32>
    %521 = vector.shape_cast %520 : vector<1x4x384xf32> to vector<4x384xf32>
    %522 = vector.broadcast %518 : vector<1x384xf32> to vector<4x384xf32>
    %523 = arith.mulf %519, %522 : vector<4x384xf32>
    %524 = arith.addf %523, %521 : vector<4x384xf32>
    %c1_394 = arith.constant 1 : index
    %c0_395 = arith.constant 0 : index
    %c0_396 = arith.constant 0 : index
    %525 = vector.load %arg12[%c1_394, %c0_395, %c0_396] : memref<2x4x384xf32, #tpu.memory_space<vmem>>, vector<1x4x384xf32>
    %526 = vector.shape_cast %525 : vector<1x4x384xf32> to vector<4x384xf32>
    %527 = vector.shape_cast %524 : vector<4x384xf32> to vector<1x4x384xf32>
    tpu.vector_store %arg12[%c1_394, %c0_395, %c0_396], %527 {strides = array<i32>} : memref<2x4x384xf32, #tpu.memory_space<vmem>>, vector<1x4x384xf32>,
    return
  }
  func.func @transform_0(%arg0: i32) -> (i32, i32, i32) {
    %c0_i32 = arith.constant 0 : i32
    %c0_i32_0 = arith.constant 0 : i32
    %c0_i32_1 = arith.constant 0 : i32
    %c0_i32_2 = arith.constant 0 : i32
    return %c0_i32, %c0_i32_0, %c0_i32_1 : i32, i32, i32
  }
  func.func @transform_1(%arg0: i32) -> (i32, i32) {
    %c0_i32 = arith.constant 0 : i32
    %c0_i32_0 = arith.constant 0 : i32
    %c0_i32_1 = arith.constant 0 : i32
    return %c0_i32, %c0_i32_0 : i32, i32
  }
  func.func @transform_2(%arg0: i32) -> (i32, i32) {
    %c0_i32 = arith.constant 0 : i32
    %c0_i32_0 = arith.constant 0 : i32
    %c0_i32_1 = arith.constant 0 : i32
    return %c0_i32, %c0_i32_0 : i32, i32
  }
  func.func @transform_3(%arg0: i32) -> (i32, i32) {
    %c0_i32 = arith.constant 0 : i32
    %c0_i32_0 = arith.constant 0 : i32
    %c0_i32_1 = arith.constant 0 : i32
    return %c0_i32, %c0_i32_0 : i32, i32
  }
  func.func @transform_4(%arg0: i32) -> (i32, i32) {
    %c0_i32 = arith.constant 0 : i32
    %c0_i32_0 = arith.constant 0 : i32
    %c0_i32_1 = arith.constant 0 : i32
    return %c0_i32, %c0_i32_0 : i32, i32
  }
  func.func @transform_5(%arg0: i32) -> (i32, i32) {
    %c0_i32 = arith.constant 0 : i32
    %c0_i32_0 = arith.constant 0 : i32
    %c0_i32_1 = arith.constant 0 : i32
    return %c0_i32, %c0_i32_0 : i32, i32
  }
  func.func @transform_6(%arg0: i32) -> (i32, i32) {
    %c0_i32 = arith.constant 0 : i32
    %c0_i32_0 = arith.constant 0 : i32
    %c0_i32_1 = arith.constant 0 : i32
    return %c0_i32, %c0_i32_0 : i32, i32
  }
  func.func @transform_7(%arg0: i32) -> (i32, i32) {
    %c0_i32 = arith.constant 0 : i32
    %c0_i32_0 = arith.constant 0 : i32
    %c0_i32_1 = arith.constant 0 : i32
    return %c0_i32, %c0_i32_0 : i32, i32
  }
  func.func @transform_8(%arg0: i32) -> (i32, i32) {
    %c0_i32 = arith.constant 0 : i32
    %c0_i32_0 = arith.constant 0 : i32
    %c0_i32_1 = arith.constant 0 : i32
    return %c0_i32, %c0_i32_0 : i32, i32
  }
  func.func @transform_9(%arg0: i32) -> (i32, i32) {
    %c0_i32 = arith.constant 0 : i32
    %c0_i32_0 = arith.constant 0 : i32
    %c0_i32_1 = arith.constant 0 : i32
    return %c0_i32, %c0_i32_0 : i32, i32
  }
  func.func @transform_10(%arg0: i32) -> (i32, i32) {
    %c0_i32 = arith.constant 0 : i32
    %c0_i32_0 = arith.constant 0 : i32
    %c0_i32_1 = arith.constant 0 : i32
    return %c0_i32, %c0_i32_0 : i32, i32
  }
  func.func @transform_11(%arg0: i32) -> (i32, i32, i32) {
    %c0_i32 = arith.constant 0 : i32
    %c0_i32_0 = arith.constant 0 : i32
    %c0_i32_1 = arith.constant 0 : i32
    %c0_i32_2 = arith.constant 0 : i32
    return %c0_i32, %c0_i32_0, %c0_i32_1 : i32, i32, i32
  }
}

</mosaic_0001>

<bundles_post_ra>
// kernel: scale_aware_feature_adaption.2
= control target key start
LH: loop header
LB: loop body
LE: loop exit
PB: predicated region body
PF: predicated region fallthrough
CT: control target
= control target key end

     0   :  { %v403_v0 = vmov 0   ;;  %v404_v2 = vmov 0.0|0.0   ;;  %v405_v9 = vmov 1   ;;  %vm406_vm0 = vmmov 0   ;;  %s496_s0 = inlined_call_operand.vmem [shape: f32[1,2], index: 0, kind: input, shape index: {}]   ;;  %s497_s3 = inlined_call_operand.vmem [shape: f32[64,4], index: 3, kind: input, shape index: {}]   ;;  %s498_s1 = inlined_call_operand.vmem [shape: f32[2,64], index: 1, kind: input, shape index: {}]   ;;  %s499_s2 = inlined_call_operand.vmem [shape: f32[1,64], index: 2, kind: input, shape index: {}]   ;;  %s500_s4 = inlined_call_operand.vmem [shape: f32[1,4], index: 4, kind: input, shape index: {}]   ;;  %s501_s5 = inlined_call_operand.vmem [shape: f32[4,288], index: 5, kind: input, shape index: {}]   ;;  %s502_s6 = inlined_call_operand.vmem [shape: f32[1,288], index: 6, kind: output, shape index: {}]  }
   0x1   :  { %396 = vset.pattern.permute.xlu0 %v403_v0  ;;  %v23_v1 = vld [vmem:[%s496_s0] sm:$0x1]  ;;  %378 = vmatprep.subr.bf16.mxu0 %v404_v2  ;;  %v50_v4 = vld [vmem:[%s497_s3 + $0x8] sm:$0xff]  ;;  %v51_v6 = vld [vmem:[%s497_s3 + $0x10] sm:$0xff]  ;;  %v407_v16 = vmov 0.0   ;;  %v30_v17 = vlaneseq  ;;  %vm58_vm1 = vcmask 523264  }
   0x2   :  { %27 = vperm.xlu0 %396, %v23_v1   ;;  %v49_v3 = vld [vmem:[%s497_s3] sm:$0xff]  ;;  %v52_v7 = vld [vmem:[%s497_s3 + $0x18] sm:$0xff]  ;;  %v54_v11 = vld [vmem:[%s497_s3 + $0x28] sm:$0xff]  ;;  %370 = vmatprep.mubr.msk.f32.mxu0 %vm406_vm0, %v407_v16  ;;  %vm132_vm2 = vcmask 24576   ;;  %vm153_vm3 = vcmask 1043456   ;;  %vm149_vm4 = vcmask 31744  }
   0x3   :  { %v379_v5 = vpack.c.bf16 %v50_v4, %v49_v3  ;;  %v382_v8 = vpack.c.bf16 %v52_v7, %v51_v6  ;;  %v53_v10 = vld [vmem:[%s497_s3 + $0x20] sm:$0xff]  ;;  %v55_v13 = vld [vmem:[%s497_s3 + $0x30] sm:$0xff]  ;;  %v56_v14 = vld [vmem:[%s497_s3 + $0x38] sm:$0xff]  ;;  %224 = vmatprep.mubr.f32.mxu1 %v407_v16  ;;  %v31_v18 = vshrl.u32 %v30_v17, 7  ;;  %v408_v48 = vmov 1966171168  }
   0x4   :  { %v385_v12 = vpack.c.bf16 %v54_v11, %v53_v10  ;;  %v388_v15 = vpack.c.bf16 %v56_v14, %v55_v13  ;;  %v24_v22 = vld [vmem:[%s498_s1] sm:$0x1]  ;;  %v35_v23 = vld [vmem:[%s498_s1 + $0x1] sm:$0x1]  ;;  %v145_v46 = vld [vmem:[%s501_s5 + $0x8] sm:$0xf]  ;;  %v306_v49 = vunpack.c.l.s4 %v408_v48 }
   0x5   :  { %380 = vmatpush3.bf16.msra.mxu0 %v379_v5  ;;  %v32_v19 = vsub.s32 0, %v31_v18  ;;  %v46_v28 = vld [vmem:[%s499_s2] sm:$0x1]  ;;  %vm330_vm5 = vcmp.lt.s32.totalorder %v30_v17, 288 }
   0x6   :  { %397 = vset.pattern.permute.xlu0 %v405_v9  ;;  %381 = vmatprep.subr.bf16.mxu0 %v404_v2  ;;  %v57_v32 = vld [vmem:[%s500_s4] sm:$0x1]  ;;  %v307_v50 = vunpack.c.0.s8 %v306_v49 }
   0x7   :  { %37 = vperm.xlu0 %397, %v23_v1   ;;  %v144_v42 = vld [vmem:[%s501_s5] sm:$0xff] }
   0x8   :  { %v148_v43 = vcombine.high %v144_v42, %v144_v42  ;;  %v310_v51 = vsub.s32 %v307_v50, %v31_v18 }
   0x9   :  { %383 = vmatpush3.bf16.msra.mxu0 %v382_v8 }
   0xa   :  { %384 = vmatprep.subr.bf16.mxu0 %v404_v2  ;;  %338 = vmatprep.subr.msk.mxu1 %vm153_vm3, %v148_v43 }
   0xb   :  { %339 = vmatpush1.msk.msra.mxu1 %vm153_vm3, %v144_v42 }
   0xc   :  { %373 = vmatprep.subr.mxu1 %v407_v16 }
   0xd   :  { %386 = vmatpush3.bf16.msra.mxu0 %v385_v12 }
   0xe   :  { %387 = vmatprep.subr.bf16.mxu0 %v404_v2 }
  0x11   :  { %389 = vmatpush3.bf16.msra.mxu0 %v388_v15 }
  0x81   :  { %v28_v20 = vpop.permute.xlu0 %27 }
  0x82   :  { %v33_v21 = vrot.slane %v28_v20, %v32_v19 }
  0x84   :  { %v34_v26 = vmul.f32 %v33_v21, %v24_v22 }
  0x86   :  { %v38_v24 = vpop.permute.xlu0 %37 }
  0x87   :  { %v43_v25 = vrot.slane %v38_v24, %v32_v19 }
  0x89   :  { %v44_v27 = vmul.f32 %v43_v25, %v35_v23 }
  0x8b   :  { %v45_v29 = vadd.f32 %v44_v27, %v34_v26 }
  0x8d   :  { %v47_v30 = vadd.f32 %v46_v28, %v45_v29 }
  0x8f   :  { %v48_v31 = vmax.f32 %v47_v30, 0.0 }
  0x91   :  { %371 = vmatmul.mubr.msk.f32.vlgmr.msra.gmra.mrb[0].mxu0 %vm58_vm1, %v48_v31 }
 0x164   :  { %v128_v33 = vpop.f32.mrb[0].mxu0 }
 0x165   :  { %v129_v34 = vadd.f32 %v128_v33, %v57_v32  ;;  %v372_v35 = vpop.f32.mrb[1].mxu0 }
 0x167   :  { %v133_v36 = vsel %vm132_vm2, %v129_v34, -inf }
 0x168   :  { %134 = vmax.xlane.f32.xlu1 %v133_v36 }
 0x1f5   :  { %v135_v37 = vpop.xlane.xlu1 %134 }
 0x1f6   :  { %v136_v38 = vsub.f32 %v129_v34, %v135_v37 }
 0x1f8   :  { %v137_v39 = vmul.f32 1.442695, %v136_v38 }
 0x1fa   :  { %399 = vpow2.f32 %v137_v39 }
 0x204   :  { %v400_v40 = vpop.eup %399 }
 0x205   :  { %v139_v41 = vsel %vm132_vm2, %v400_v40, 0.0 }
 0x206   :  { %140 = vadd.xlane.f32.xlu1 %v139_v41 }
 0x293   :  { %v141_v44 = vpop.xlane.xlu1 %140 }
 0x294   :  { %401 = vrcp.f32 %v141_v44 }
 0x29e   :  { %v402_v45 = vpop.eup %401 }
 0x29f   :  { %v143_v47 = vmul.f32 %v402_v45, %v400_v40 }
 0x2a1   :  { %340 = vmatmul.mubr.msk.f32.vlgmr.msra.gmra.mrb[0].mxu1 %vm149_vm4, %v143_v47 }
 0x2a2   :  { %374 = vmatpush3.msk.msra.mxu1 %vm153_vm3, %v145_v46  ;;  %375 = vmatprep.mubr.msk.f32.mxu1 %vm406_vm0, %v407_v16 }
 0x2a5   :  { %376 = vmatmul.mubr.msk.f32.vlgmr.msra.gmra.mrb[2].mxu1 %vm149_vm4, %v143_v47 }
 0x374   :  { %v226_v52 = vpop.f32.mrb[0].mxu1 }
 0x375   :  { %v228_v53 = vpop.f32.mrb[1].mxu1 }
 0x376   :  { %v304_v54 = vcombine.low %v226_v52, %v228_v53 }
 0x378   :  { %v311_v55 = vrot.slane %v304_v54, %v310_v51  ;;  %v297_v56 = vpop.f32.mrb[2].mxu1 }
 0x379   :  { %v318_v57 = vrot.slane %v297_v56, %v310_v51  ;;  %v377_v58 = vpop.f32.mrb[3].mxu1 }
 0x37b   :  { %v319_v59 = vcombine.low %v311_v55, %v318_v57 }
 0x37d   :  { %v326_v60 = vrot.slane %v319_v59, %v310_v51 }
 0x37f   :  { %332 = vst.msk [vmem:[%s502_s6] sm:$0x7] %vm330_vm5, %v326_v60 }

// kernel: scale_aware_feature_adaption.3
= control target key start
LH: loop header
LB: loop body
LE: loop exit
PB: predicated region body
PF: predicated region fallthrough
CT: control target
= control target key end

     0   :  { %s4742_s29 = smov 126   ;;  %s4743_s30 = smov 127   ;;  %v4750_v14 = vmov 0   ;;  %vm85_vm0 = vcmask 1043456   ;;  %vm119_vm1 = vcmask 1031168   ;;  %vm87_vm2 = vcmask 1039360   ;;  %s7045_s0 = inlined_call_operand.vmem [shape: f32[2,8,512], index: 0, kind: input, shape index: {}]   ;;  %s7046_s1 = inlined_call_operand.vmem [shape: bf16[24,72], index: 1, kind: input, shape index: {}]   ;;  %s7047_s9 = inlined_call_operand.vmem [shape: f32[1,768], index: 9, kind: input, shape index: {}]   ;;  %s7048_s5 = inlined_call_operand.vmem [shape: f32[16,8], index: 5, kind: input, shape index: {}]   ;;  %s7049_s6 = inlined_call_operand.vmem [shape: f32[384,256], index: 6, kind: input, shape index: {}]   ;;  %s7050_s2 = inlined_call_operand.vmem [shape: bf16[16,144], index: 2, kind: input, shape index: {}]   ;;  %s7051_s10 = inlined_call_operand.vmem [shape: f32[1,256], index: 10, kind: input, shape index: {}]   ;;  %s7052_s8 = inlined_call_operand.vmem [shape: f32[128,256], index: 8, kind: input, shape index: {}]   ;;  %s7053_s3 = inlined_call_operand.vmem [shape: bf16[16,144], index: 3, kind: input, shape index: {}]   ;;  %s7054_s7 = inlined_call_operand.vmem [shape: f32[128,512], index: 7, kind: input, shape index: {}]   ;;  %s7055_s4 = inlined_call_operand.vmem [shape: f32[16,9], index: 4, kind: input, shape index: {}]   ;;  %s7056_s11 = inlined_call_operand.vmem [shape: f32[2,4,384], index: 11, kind: output, shape index: {}]  }
   0x1   :  { %v94_v0 = vld [vmem:[%s7045_s0] sm:$0xff]  ;;  %v95_v1 = vld [vmem:[%s7045_s0 + $0x8] sm:$0xff]  ;;  %v96_v2 = vld [vmem:[%s7045_s0 + $0x10] sm:$0xff]  ;;  %s4744_s12 = smov 104   ;;  %s4745_s13 = smov 103   ;;  %816 = vmatprep.mubr.bf16.mxu0 %v4750_v14  ;;  %867 = vmatprep.mubr.bf16.mxu1 %v4750_v14  ;;  %vm151_vm3 = vcmask 850944  }
   0x2   :  { %v4835_v3 = vpack.c.bf16 %v95_v1, %v94_v0  ;;  %v97_v4 = vld [vmem:[%s7045_s0 + $0x18] sm:$0xff]  ;;  %v4088_v5 = vld [vmem:[%s7045_s0 + $0x20] sm:$0xff]  ;;  %v4089_v6 = vld [vmem:[%s7045_s0 + $0x28] sm:$0xff]  ;;  %s4746_s14 = smov 102   ;;  %s4747_s15 = smov 80   ;;  %v4190_v10 = vpack.c.bf16 %v96_v2, %v96_v2  ;;  %4641 = vset.pattern.permute.xlu1 %v4750_v14  ;;  %vm183_vm4 = vcmask 842752  }
   0x3   :  { %v4194_v7 = vpack.c.bf16 %v97_v4, %v96_v2  ;;  %v4209_v8 = vpack.c.bf16 %v4089_v6, %v4088_v5  ;;  %v4090_v9 = vld [vmem:[%s7045_s0 + $0x30] sm:$0xff]  ;;  %s4748_s18 = smov 79   ;;  %v4091_v12 = vld [vmem:[%s7045_s0 + $0x38] sm:$0xff]  ;;  %s7057_s21 = smov 78   ;;  %vm215_vm5 = vcmask 834560   ;;  %vm247_vm6 = vcmask 654336  }
   0x4   :  { %112 = vrot.lane.b32.xlu1 %v4835_v3, %s4742_s29  ;;  %79 = vrot.lane.b32.xlu0 %v4835_v3, %s4743_s30  ;;  %v4208_v11 = vpack.c.bf16 %v4090_v9, %v4090_v9  ;;  %60 = vst [vmem:[#allocation2 + $0x8] sm:$0xf] %v4190_v10  ;;  %v4210_v13 = vpack.c.bf16 %v4091_v12, %v4090_v9  ;;  %vm279_vm7 = vcmask 646144   ;;  %vm311_vm8 = vcmask 637952   ;;  %s4754_s27 = smov 111   ;;  %s4755_s28 = smov 110  }
   0x5   :  { %335 = vst [vmem:[#allocation2 + $0xc] sm:$0xff] %v4209_v8  ;;  %vm758_vm9 = vcmask 588800   ;;  %s4756_s16 = smov 96   ;;  %s4757_s17 = smov 95   ;;  %vm1798_vm10 = vcmask 130048   ;;  %vm1561_vm11 = vcmask 916480  }
   0x6   :  { %336 = vst [vmem:[#allocation2 + $0x14] sm:$0xf] %v4208_v11  ;;  %s4758_s19 = smov 94   ;;  %vm1577_vm12 = vcmask 908288   ;;  %vm1593_vm13 = vcmask 900096   ;;  %vm1609_vm14 = vcmask 785408  }
   0x7   :  { %vm1625_vm15 = vcmask 777216  }
   0x8   :  { %114 = vrot.lane.b32.xlu1 %v4194_v7, %s4742_s29  ;;  %81 = vrot.lane.b32.xlu0 %v4194_v7, %s4743_s30 }
   0xc   :  { %146 = vrot.lane.b32.xlu1 %v4194_v7, %s4744_s12  ;;  %144 = vrot.lane.b32.xlu0 %v4835_v3, %s4744_s12 }
  0x10   :  { %178 = vrot.lane.b32.xlu1 %v4194_v7, %s4745_s13  ;;  %176 = vrot.lane.b32.xlu0 %v4835_v3, %s4745_s13 }
  0x14   :  { %210 = vrot.lane.b32.xlu1 %v4194_v7, %s4746_s14  ;;  %208 = vrot.lane.b32.xlu0 %v4835_v3, %s4746_s14 }
  0x18   :  { %242 = vrot.lane.b32.xlu1 %v4194_v7, %s4747_s15  ;;  %240 = vrot.lane.b32.xlu0 %v4835_v3, %s4747_s15 }
  0x1c   :  { %274 = vrot.lane.b32.xlu1 %v4194_v7, %s4748_s18  ;;  %272 = vrot.lane.b32.xlu0 %v4835_v3, %s4748_s18 }
  0x20   :  { %306 = vrot.lane.b32.xlu1 %v4194_v7, %s7057_s21  ;;  %304 = vrot.lane.b32.xlu0 %v4835_v3, %s7057_s21 }
  0x24   :  { %357 = vrot.lane.b32.xlu1 %v4210_v13, %s4743_s30  ;;  %355 = vrot.lane.b32.xlu0 %v4209_v8, %s4743_s30 }
  0x28   :  { %388 = vrot.lane.b32.xlu1 %v4210_v13, %s4742_s29  ;;  %386 = vrot.lane.b32.xlu0 %v4209_v8, %s4742_s29 }
  0x2c   :  { %419 = vrot.lane.b32.xlu1 %v4210_v13, %s4744_s12  ;;  %417 = vrot.lane.b32.xlu0 %v4209_v8, %s4744_s12 }
  0x30   :  { %450 = vrot.lane.b32.xlu1 %v4210_v13, %s4745_s13  ;;  %448 = vrot.lane.b32.xlu0 %v4209_v8, %s4745_s13 }
  0x34   :  { %481 = vrot.lane.b32.xlu1 %v4210_v13, %s4746_s14  ;;  %479 = vrot.lane.b32.xlu0 %v4209_v8, %s4746_s14 }
  0x38   :  { %512 = vrot.lane.b32.xlu1 %v4210_v13, %s4747_s15  ;;  %510 = vrot.lane.b32.xlu0 %v4209_v8, %s4747_s15 }
  0x3c   :  { %543 = vrot.lane.b32.xlu1 %v4210_v13, %s4748_s18  ;;  %541 = vrot.lane.b32.xlu0 %v4209_v8, %s4748_s18 }
  0x40   :  { %574 = vrot.lane.b32.xlu1 %v4210_v13, %s7057_s21  ;;  %572 = vrot.lane.b32.xlu0 %v4209_v8, %s7057_s21 }
  0x76   :  { %v113_v15 = vpop.permute.xlu1 %112  ;;  %v80_v16 = vpop.permute.xlu0 %79 }
  0x77   :  { %v116_v19 = vrot.slane %v113_v15, 4  ;;  %v83_v20 = vrot.slane %v80_v16, 4 }
  0x7a   :  { %v115_v17 = vpop.permute.xlu1 %114  ;;  %v82_v18 = vpop.permute.xlu0 %81 }
  0x7b   :  { %v117_v21 = vrot.slane %v115_v17, 4  ;;  %v84_v22 = vrot.slane %v82_v18, 4 }
  0x7d   :  { %v118_v23 = vsel %vm85_vm0, %v116_v19, %v117_v21  ;;  %v121_v24 = vsel %vm119_vm1, %v115_v17, %v117_v21  ;;  %v86_v25 = vsel %vm85_vm0, %v83_v20, %v84_v22  ;;  %v89_v26 = vsel %vm87_vm2, %v82_v18, %v84_v22 }
  0x7e   :  { %v120_v27 = vsel %vm119_vm1, %v113_v15, %v118_v23  ;;  %125 = vst [vmem:[#allocation2 + $0x38] sm:$0xf] %v121_v24  ;;  %v88_v28 = vsel %vm87_vm2, %v80_v16, %v86_v25  ;;  %93 = vst [vmem:[#allocation2 + $0x20] sm:$0xf] %v89_v26  ;;  %v147_v29 = vpop.permute.xlu1 %146  ;;  %v145_v30 = vpop.permute.xlu0 %144  ;;  %v4928_v25 = vld [vmem:[%s7046_s1] sm:$0xff]  }
  0x7f   :  { %v149_v31 = vrot.slane %v147_v29, 4  ;;  %v148_v32 = vrot.slane %v145_v30, 4  ;;  %v4139_v33 = vcombine.high %v4835_v3, %v88_v28  ;;  %v4138_v34 = vcombine.low %v4835_v3, %v88_v28 }
  0x81   :  { %v153_v35 = vsel %vm151_vm3, %v147_v29, %v149_v31  ;;  %v150_v36 = vsel %vm85_vm0, %v148_v32, %v149_v31  ;;  %784 = vmatprep.subr.bf16.mxu0 %v4139_v33 }
  0x82   :  { %157 = vst [vmem:[#allocation2 + $0x50] sm:$0xf] %v153_v35  ;;  %v152_v37 = vsel %vm151_vm3, %v145_v30, %v150_v36  ;;  %v179_v38 = vpop.permute.xlu1 %178  ;;  %v177_v39 = vpop.permute.xlu0 %176  ;;  %785 = vmatpush1.bf16.msra.mxu0 %v4138_v34 }
  0x83   :  { %v181_v40 = vrot.slane %v179_v38, 4  ;;  %v180_v41 = vrot.slane %v177_v39, 4  ;;  %v4145_v42 = vcombine.high %v120_v27, %v152_v37  ;;  %v4144_v43 = vcombine.low %v120_v27, %v152_v37 }
  0x85   :  { %v185_v44 = vsel %vm183_vm4, %v179_v38, %v181_v40  ;;  %v182_v45 = vsel %vm85_vm0, %v180_v41, %v181_v40  ;;  %786 = vmatprep.subr.bf16.mxu0 %v4145_v42  ;;  %v4942_v40 = vld [vmem:[%s7046_s1 + $0x8] ss:$0 sps:$4 sm:$0xff]  }
  0x86   :  { %189 = vst [vmem:[#allocation2 + $0x68] sm:$0xf] %v185_v44  ;;  %v184_v46 = vsel %vm183_vm4, %v177_v39, %v182_v45  ;;  %v211_v47 = vpop.permute.xlu1 %210  ;;  %v209_v48 = vpop.permute.xlu0 %208  ;;  %787 = vmatpush1.bf16.msra.mxu0 %v4144_v43 }
  0x87   :  { %v213_v49 = vrot.slane %v211_v47, 4  ;;  %v212_v50 = vrot.slane %v209_v48, 4 }
  0x89   :  { %v217_v51 = vsel %vm215_vm5, %v211_v47, %v213_v49  ;;  %v214_v52 = vsel %vm85_vm0, %v212_v50, %v213_v49  ;;  %v4671_v49 = vld [vmem:[#allocation2 + $0x8] ss:$24 sps:$4 sm:$0xff]  }
  0x8a   :  { %221 = vst [vmem:[#allocation2 + $0x80] sm:$0xf] %v217_v51  ;;  %v216_v53 = vsel %vm215_vm5, %v209_v48, %v214_v52  ;;  %v243_v54 = vpop.permute.xlu1 %242  ;;  %v241_v55 = vpop.permute.xlu0 %240 }
  0x8b   :  { %v245_v56 = vrot.slane %v243_v54, 4  ;;  %v244_v57 = vrot.slane %v241_v55, 4  ;;  %v4151_v58 = vcombine.high %v184_v46, %v216_v53  ;;  %v4150_v59 = vcombine.low %v184_v46, %v216_v53 }
  0x8d   :  { %v249_v60 = vsel %vm247_vm6, %v243_v54, %v245_v56  ;;  %v246_v61 = vsel %vm85_vm0, %v244_v57, %v245_v56  ;;  %788 = vmatprep.subr.bf16.mxu0 %v4151_v58 }
  0x8e   :  { %253 = vst [vmem:[#allocation2 + $0x98] sm:$0xf] %v249_v60  ;;  %v248_v62 = vsel %vm247_vm6, %v241_v55, %v246_v61  ;;  %v275_v63 = vpop.permute.xlu1 %274  ;;  %v273_v0 = vpop.permute.xlu0 %272  ;;  %789 = vmatpush1.bf16.msra.mxu0 %v4150_v59 }
  0x8f   :  { %v277_v1 = vrot.slane %v275_v63, 4  ;;  %v276_v2 = vrot.slane %v273_v0, 4 }
  0x91   :  { %v281_v3 = vsel %vm279_vm7, %v275_v63, %v277_v1  ;;  %v278_v4 = vsel %vm85_vm0, %v276_v2, %v277_v1 }
  0x92   :  { %285 = vst [vmem:[#allocation2 + $0xb0] sm:$0xf] %v281_v3  ;;  %v280_v5 = vsel %vm279_vm7, %v273_v0, %v278_v4  ;;  %v307_v6 = vpop.permute.xlu1 %306  ;;  %v305_v7 = vpop.permute.xlu0 %304  ;;  %v4677_v3 = vld [vmem:[#allocation2 + $0x38] ss:$24 sps:$4 sm:$0xff]  }
  0x93   :  { %v309_v8 = vrot.slane %v307_v6, 4  ;;  %v308_v9 = vrot.slane %v305_v7, 4  ;;  %v4157_v10 = vcombine.high %v248_v62, %v280_v5  ;;  %v4156_v11 = vcombine.low %v248_v62, %v280_v5 }
  0x95   :  { %v313_v12 = vsel %vm311_vm8, %v307_v6, %v309_v8  ;;  %v310_v13 = vsel %vm85_vm0, %v308_v9, %v309_v8  ;;  %790 = vmatprep.subr.bf16.mxu0 %v4157_v10 }
  0x96   :  { %317 = vst [vmem:[#allocation2 + $0xc8] sm:$0xf] %v313_v12  ;;  %v312_v15 = vsel %vm311_vm8, %v305_v7, %v310_v13  ;;  %v358_v16 = vpop.permute.xlu1 %357  ;;  %v356_v17 = vpop.permute.xlu0 %355  ;;  %791 = vmatpush1.bf16.msra.mxu0 %v4156_v11 }
  0x97   :  { %v360_v18 = vrot.slane %v358_v16, 4  ;;  %v359_v19 = vrot.slane %v356_v17, 4  ;;  %v4163_v20 = vcombine.high %v312_v15, %v312_v15  ;;  %v4162_v21 = vcombine.low %v312_v15, %v312_v15 }
  0x99   :  { %v363_v22 = vsel %vm87_vm2, %v358_v16, %v360_v18  ;;  %v361_v23 = vsel %vm85_vm0, %v359_v19, %v360_v18  ;;  %4168 = vmatprep.subr.msk.bf16.mxu0 %vm85_vm0, %v4163_v20  ;;  %v767_v24 = vsel %vm85_vm0, %v4162_v21, 0 }
  0x9a   :  { %367 = vst [vmem:[#allocation2 + $0x2c] sm:$0xf] %v363_v22  ;;  %v362_v26 = vsel %vm87_vm2, %v356_v17, %v361_v23  ;;  %v389_v27 = vpop.permute.xlu1 %388  ;;  %v387_v28 = vpop.permute.xlu0 %386  ;;  %793 = vmatpush1.bf16.msra.mxu0 %v767_v24  ;;  %v4683_v22 = vld [vmem:[#allocation2 + $0x68] ss:$24 sps:$4 sm:$0xff]  }
  0x9b   :  { %366 = vst [vmem:[#allocation2 + $0x24] sm:$0xff] %v362_v26  ;;  %v391_v29 = vrot.slane %v389_v27, 4  ;;  %v390_v30 = vrot.slane %v387_v28, 4 }
  0x9d   :  { %v394_v31 = vsel %vm119_vm1, %v389_v27, %v391_v29  ;;  %v392_v32 = vsel %vm85_vm0, %v390_v30, %v391_v29  ;;  %4169 = vmatmul.mubr.msk.bf16.vlgmr.msra.gmra.mrb[0].mxu0 %vm758_vm9, %v4928_v25  ;;  %v4690_v30 = vld [vmem:[#allocation2 + $0x98] ss:$24 sps:$4 sm:$0xff]  }
  0x9e   :  { %398 = vst [vmem:[#allocation2 + $0x44] sm:$0xf] %v394_v31  ;;  %v393_v33 = vsel %vm119_vm1, %v387_v28, %v392_v32  ;;  %v420_v34 = vpop.permute.xlu1 %419  ;;  %v418_v35 = vpop.permute.xlu0 %417  ;;  %826 = vmatprep.mubr.bf16.mxu0 %v4750_v14 }
  0x9f   :  { %397 = vst [vmem:[#allocation2 + $0x3c] sm:$0xff] %v393_v33  ;;  %v422_v36 = vrot.slane %v420_v34, 4  ;;  %v421_v37 = vrot.slane %v418_v35, 4 }
  0xa1   :  { %v425_v38 = vsel %vm151_vm3, %v420_v34, %v422_v36  ;;  %v423_v39 = vsel %vm85_vm0, %v421_v37, %v422_v36  ;;  %v4669_v48 = vld [vmem:[#allocation2 + $0x14] ss:$24 sps:$4 sm:$0xff]  }
  0xa2   :  { %429 = vst [vmem:[#allocation2 + $0x5c] sm:$0xf] %v425_v38  ;;  %v424_v41 = vsel %vm151_vm3, %v418_v35, %v423_v39  ;;  %v451_v42 = vpop.permute.xlu1 %450  ;;  %v449_v43 = vpop.permute.xlu0 %448  ;;  %v4665_v44 = vld [vmem:[#allocation2 + $0xc] ss:$24 sps:$4 sm:$0xff]   ;;  %v4667_v47 = vld [vmem:[#allocation2 + $0x10] ss:$24 sps:$4 sm:$0xff]   ;;  %886 = vmatprep.subr.bf16.mxu0 %v4669_v48  ;;  %v938_v39 = vlaneseq }
  0xa3   :  { %428 = vst [vmem:[#allocation2 + $0x54] sm:$0xff] %v424_v41  ;;  %v453_v45 = vrot.slane %v451_v42, 4  ;;  %v452_v46 = vrot.slane %v449_v43, 4  ;;  %835 = vmatprep.subr.bf16.mxu1 %v4665_v44  ;;  %887 = vmatpush1.bf16.msra.mxu0 %v4667_v47 }
  0xa4   :  { %836 = vmatpush1.bf16.msra.mxu1 %v4671_v49  ;;  %v4977_v41 = vshrl.u32 %v938_v39, 7 }
  0xa5   :  { %v456_v50 = vsel %vm183_vm4, %v451_v42, %v453_v45  ;;  %v454_v51 = vsel %vm85_vm0, %v452_v46, %v453_v45  ;;  %4170 = vmatmul.mubr.msk.bf16.gmra.mrb[4].mxu0 %vm758_vm9, %v4942_v40 }
  0xa6   :  { %460 = vst [vmem:[#allocation2 + $0x74] sm:$0xf] %v456_v50  ;;  %v455_v52 = vsel %vm183_vm4, %v449_v43, %v454_v51  ;;  %v482_v53 = vpop.permute.xlu1 %481  ;;  %v480_v54 = vpop.permute.xlu0 %479  ;;  %918 = vmatprep.mubr.bf16.mxu0 %v4750_v14  ;;  %v4980_v42 = vsub.s32 0, %v4977_v41  ;;  %v944_v43 = vsub.s32 1, %v4977_v41 }
  0xa7   :  { %459 = vst [vmem:[#allocation2 + $0x6c] sm:$0xff] %v455_v52  ;;  %v484_v55 = vrot.slane %v482_v53, 4  ;;  %v483_v56 = vrot.slane %v480_v54, 4 }
  0xa8   :  { %7082 = vst [vmem:[#allocation7_spill] sm:$0xff] %v4980_v42 }
  0xa9   :  { %v487_v57 = vsel %vm215_vm5, %v482_v53, %v484_v55  ;;  %v485_v58 = vsel %vm85_vm0, %v483_v56, %v484_v55  ;;  %v4676_v2 = vld [vmem:[#allocation2 + $0x44] ss:$24 sps:$4 sm:$0xff]  }
  0xaa   :  { %491 = vst [vmem:[#allocation2 + $0x8c] sm:$0xf] %v487_v57  ;;  %v486_v59 = vsel %vm215_vm5, %v480_v54, %v485_v58  ;;  %v513_v60 = vpop.permute.xlu1 %512  ;;  %v511_v61 = vpop.permute.xlu0 %510  ;;  %v4672_v62 = vld [vmem:[#allocation2 + $0x3c] ss:$24 sps:$4 sm:$0xff]   ;;  %v4674_v1 = vld [vmem:[#allocation2 + $0x40] ss:$24 sps:$4 sm:$0xff]   ;;  %888 = vmatprep.subr.bf16.mxu0 %v4676_v2 }
  0xab   :  { %490 = vst [vmem:[#allocation2 + $0x84] sm:$0xff] %v486_v59  ;;  %v515_v63 = vrot.slane %v513_v60, 4  ;;  %v514_v0 = vrot.slane %v511_v61, 4  ;;  %837 = vmatprep.subr.bf16.mxu1 %v4672_v62  ;;  %889 = vmatpush1.bf16.msra.mxu0 %v4674_v1  ;;  %v948_v1 = vsub.s32 2, %v4977_v41  ;;  %v956_v2 = vsub.s32 4, %v4977_v41 }
  0xac   :  { %838 = vmatpush1.bf16.msra.mxu1 %v4677_v3  ;;  %v952_v3 = vsub.s32 3, %v4977_v41 }
  0xad   :  { %v518_v4 = vsel %vm247_vm6, %v513_v60, %v515_v63  ;;  %v516_v5 = vsel %vm85_vm0, %v514_v0, %v515_v63 }
  0xae   :  { %522 = vst [vmem:[#allocation2 + $0xa4] sm:$0xf] %v518_v4  ;;  %v517_v6 = vsel %vm247_vm6, %v511_v61, %v516_v5  ;;  %v544_v7 = vpop.permute.xlu1 %543  ;;  %v542_v8 = vpop.permute.xlu0 %541  ;;  %v960_v4 = vsub.s32 5, %v4977_v41 }
  0xaf   :  { %521 = vst [vmem:[#allocation2 + $0x9c] sm:$0xff] %v517_v6  ;;  %v546_v9 = vrot.slane %v544_v7, 4  ;;  %v545_v10 = vrot.slane %v542_v8, 4 }
  0xb1   :  { %v549_v11 = vsel %vm279_vm7, %v544_v7, %v546_v9  ;;  %v547_v12 = vsel %vm85_vm0, %v545_v10, %v546_v9  ;;  %v4682_v21 = vld [vmem:[#allocation2 + $0x74] ss:$24 sps:$4 sm:$0xff]  }
  0xb2   :  { %553 = vst [vmem:[#allocation2 + $0xbc] sm:$0xf] %v549_v11  ;;  %v548_v13 = vsel %vm279_vm7, %v542_v8, %v547_v12  ;;  %v575_v15 = vpop.permute.xlu1 %574  ;;  %v573_v16 = vpop.permute.xlu0 %572  ;;  %v4678_v17 = vld [vmem:[#allocation2 + $0x6c] ss:$24 sps:$4 sm:$0xff]   ;;  %v4680_v20 = vld [vmem:[#allocation2 + $0x70] ss:$24 sps:$4 sm:$0xff]   ;;  %890 = vmatprep.subr.bf16.mxu0 %v4682_v21 }
  0xb3   :  { %552 = vst [vmem:[#allocation2 + $0xb4] sm:$0xff] %v548_v13  ;;  %v577_v18 = vrot.slane %v575_v15, 4  ;;  %v576_v19 = vrot.slane %v573_v16, 4  ;;  %839 = vmatprep.subr.bf16.mxu1 %v4678_v17  ;;  %891 = vmatpush1.bf16.msra.mxu0 %v4680_v20 }
  0xb4   :  { %840 = vmatpush1.bf16.msra.mxu1 %v4683_v22 }
  0xb5   :  { %v580_v23 = vsel %vm311_vm8, %v575_v15, %v577_v18  ;;  %v578_v24 = vsel %vm85_vm0, %v576_v19, %v577_v18 }
  0xb6   :  { %584 = vst [vmem:[#allocation2 + $0xd4] sm:$0xf] %v580_v23  ;;  %v579_v26 = vsel %vm311_vm8, %v573_v16, %v578_v24 }
  0xb7   :  { %583 = vst [vmem:[#allocation2 + $0xcc] sm:$0xff] %v579_v26 }
  0xb9   :  { %v4689_v29 = vld [vmem:[#allocation2 + $0xa4] ss:$24 sps:$4 sm:$0xff]  }
  0xba   :  { %v4685_v27 = vld [vmem:[#allocation2 + $0x9c] ss:$24 sps:$4 sm:$0xff]   ;;  %v4687_v28 = vld [vmem:[#allocation2 + $0xa0] ss:$24 sps:$4 sm:$0xff]   ;;  %892 = vmatprep.subr.bf16.mxu0 %v4689_v29 }
  0xbb   :  { %841 = vmatprep.subr.bf16.mxu1 %v4685_v27  ;;  %893 = vmatpush1.bf16.msra.mxu0 %v4687_v28 }
  0xbc   :  { %842 = vmatpush1.bf16.msra.mxu1 %v4690_v30 }
  0xbe   :  { %v613_v31 = vld [vmem:[#allocation2 + $0xc8] sm:$0xff]  ;;  %v614_v32 = vld [vmem:[#allocation2 + $0xd0] sm:$0xff] }
  0xbf   :  { %v4165_v33 = vcombine.high %v613_v31, %v613_v31  ;;  %v4167_v34 = vcombine.high %v614_v32, %v614_v32  ;;  %v4164_v35 = vcombine.low %v613_v31, %v613_v31  ;;  %v4166_v36 = vcombine.low %v614_v32, %v614_v32 }
  0xc1   :  { %4171 = vmatprep.subr.msk.bf16.mxu1 %vm85_vm0, %v4165_v33  ;;  %4174 = vmatprep.subr.msk.bf16.mxu0 %vm85_vm0, %v4167_v34  ;;  %v773_v37 = vsel %vm85_vm0, %v4164_v35, 0  ;;  %v779_v38 = vsel %vm85_vm0, %v4166_v36, 0  ;;  %vm1641_vm0 = vcmask 769024  }
  0xc2   :  { %844 = vmatpush1.bf16.msra.mxu1 %v773_v37  ;;  %895 = vmatpush1.bf16.msra.mxu0 %v779_v38 }
  0xc5   :  { %4172 = vmatmul.mubr.msk.bf16.vlgmr.msra.gmra.mrb[0].mxu1 %vm758_vm9, %v4928_v25  ;;  %4175 = vmatmul.mubr.msk.bf16.vlgmr.msra.gmra.mrb[8].mxu0 %vm758_vm9, %v4928_v25  ;;  %v39_v25 = vld [vmem:[%s7047_s9] sm:$0x3f] }
  0xc6   :  { %928 = vmatprep.mubr.bf16.mxu0 %v4750_v14  ;;  %877 = vmatprep.mubr.bf16.mxu1 %v4750_v14  ;;  %v4987_v44 = vrot.slane %v39_v25, %v4980_v42  ;;  %v4991_v45 = vrot.slane %v39_v25, %v944_v43  ;;  %v5021_v5 = vrot.slane %v39_v25, %v948_v1  ;;  %v1102_v1 = vld [vmem:[%s7049_s6] sm:$0xff] }
  0xc7   :  { %v957_v6 = vrot.slane %v39_v25, %v956_v2  ;;  %v953_v7 = vrot.slane %v39_v25, %v952_v3  ;;  %v961_v10 = vrot.slane %v39_v25, %v960_v4  ;;  %v1104_v3 = vld [vmem:[%s7049_s6 + $0x10] sm:$0xff]  ;;  %v1107_v4 = vld [vmem:[%s7049_s6 + $0x28] sm:$0xff] }
  0xc8   :  { %7083 = vst [vmem:[#allocation8_spill] sm:$0xff] %v4987_v44  ;;  %7084 = vst [vmem:[#allocation9_spill] sm:$0xff] %v4991_v45 }
  0xc9   :  { %7087 = vst [vmem:[#allocation12_spill] sm:$0xff] %v5021_v5 }
  0xcd   :  { %4176 = vmatmul.mubr.msk.bf16.gmra.mrb[12].mxu0 %vm758_vm9, %v4942_v40  ;;  %4173 = vmatmul.mubr.msk.bf16.gmra.mrb[4].mxu1 %vm758_vm9, %v4942_v40  ;;  %vm3862_vm9 = vcmask 1040384  }
 0x170   :  { %v4993_v40 = vpop.f32.mrb[0].mxu0 }
 0x171   :  { %v968_v46 = vmul.f32 %v4987_v44, %v4993_v40  ;;  %v4997_v47 = vpop.f32.mrb[1].mxu0 }
 0x172   :  { %v969_v48 = vmul.f32 %v4991_v45, %v4997_v47  ;;  %v5001_v49 = vpop.f32.mrb[2].mxu0 }
 0x173   :  { %v996_v50 = vmul.f32 %v968_v46, %v4993_v40  ;;  %v974_v51 = vmul.f32 %v4987_v44, %v5001_v49  ;;  %v5006_v52 = vpop.f32.mrb[3].mxu0 }
 0x174   :  { %v980_v53 = vadd.f32 %v969_v48, %v968_v46  ;;  %v997_v54 = vmul.f32 %v969_v48, %v4997_v47  ;;  %v975_v55 = vmul.f32 %v4991_v45, %v5006_v52 }
 0x175   :  { %v1002_v56 = vmul.f32 %v974_v51, %v5001_v49 }
 0x176   :  { %v1008_v57 = vadd.f32 %v997_v54, %v996_v50  ;;  %v987_v58 = vadd.f32 %v975_v55, %v974_v51  ;;  %v1003_v59 = vmul.f32 %v975_v55, %v5006_v52 }
 0x178   :  { %v1015_v60 = vadd.f32 %v1003_v59, %v1002_v56  ;;  %v5013_v61 = vpop.f32.mrb[4].mxu0  ;;  %v5060_v59 = vld [vmem:[%s7048_s5] sm:$0xff] }
 0x179   :  { %7085 = vst [vmem:[#allocation10_spill] sm:$0xff] %v5013_v61  ;;  %v5015_v62 = vpop.f32.mrb[5].mxu0 }
 0x17a   :  { %7086 = vst [vmem:[#allocation11_spill] sm:$0xff] %v5015_v62  ;;  %v832_v63 = vpop.f32.mrb[6].mxu0 }
 0x17b   :  { %v833_v0 = vpop.f32.mrb[7].mxu0  ;;  %v1103_v63 = vld [vmem:[%s7049_s6 + $0x8] sm:$0xff] }
 0x17c   :  { %v1105_v0 = vld [vmem:[%s7049_s6 + $0x18] sm:$0xff] }
 0x17d   :  { %v4225_v2 = vpack.c.bf16 %v1105_v0, %v1103_v63  ;;  %v1131_v63 = vld [vmem:[%s7049_s6 + $0xe8] sm:$0xff]  ;;  %v1133_v0 = vld [vmem:[%s7049_s6 + $0xf8] sm:$0xff] }
 0x17f   :  { %4226 = vmatprep.subr.bf16.mxu1 %v4225_v2  ;;  %4322 = vmatprep.subr.bf16.mxu0 %v4225_v2  ;;  %v4253_v2 = vpack.c.bf16 %v1133_v0, %v1131_v63  ;;  %v1156_v63 = vld [vmem:[%s7049_s6 + $0x1b0] sm:$0xff]  ;;  %v1159_v0 = vld [vmem:[%s7049_s6 + $0x1c8] sm:$0xff] }
 0x198   :  { %v5023_v8 = vpop.f32.mrb[0].mxu1  ;;  %v5025_v9 = vpop.f32.mrb[8].mxu0 }
 0x199   :  { %v970_v11 = vmul.f32 %v5021_v5, %v5023_v8  ;;  %v5029_v12 = vpop.f32.mrb[1].mxu1  ;;  %v5031_v13 = vpop.f32.mrb[9].mxu0  ;;  %v972_v15 = vmul.f32 %v957_v6, %v5025_v9 }
 0x19a   :  { %v971_v16 = vmul.f32 %v953_v7, %v5029_v12  ;;  %v5035_v17 = vpop.f32.mrb[2].mxu1  ;;  %v5037_v18 = vpop.f32.mrb[10].mxu0  ;;  %v973_v28 = vmul.f32 %v961_v10, %v5031_v13 }
 0x19b   :  { %v981_v19 = vadd.f32 %v980_v53, %v970_v11  ;;  %v998_v20 = vmul.f32 %v970_v11, %v5023_v8  ;;  %v976_v21 = vmul.f32 %v5021_v5, %v5035_v17  ;;  %v5042_v22 = vpop.f32.mrb[3].mxu1  ;;  %v5044_v23 = vpop.f32.mrb[11].mxu0  ;;  %v978_v26 = vmul.f32 %v957_v6, %v5037_v18  ;;  %v1109_v6 = vld [vmem:[%s7049_s6 + $0x38] sm:$0xff]  ;;  %v1106_v11 = vld [vmem:[%s7049_s6 + $0x20] sm:$0xff] }
 0x19c   :  { %v999_v24 = vmul.f32 %v971_v16, %v5029_v12  ;;  %v977_v27 = vmul.f32 %v953_v7, %v5042_v22  ;;  %v1000_v33 = vmul.f32 %v972_v15, %v5025_v9  ;;  %v979_v35 = vmul.f32 %v961_v10, %v5044_v23 }
 0x19d   :  { %v1009_v29 = vadd.f32 %v1008_v57, %v998_v20  ;;  %v988_v30 = vadd.f32 %v987_v58, %v976_v21  ;;  %v1004_v31 = vmul.f32 %v976_v21, %v5035_v17  ;;  %v982_v32 = vadd.f32 %v981_v19, %v971_v16  ;;  %v1111_v16 = vld [vmem:[%s7049_s6 + $0x48] sm:$0xff]  ;;  %v1113_v19 = vld [vmem:[%s7049_s6 + $0x58] sm:$0xff] }
 0x19e   :  { %v1005_v34 = vmul.f32 %v977_v27, %v5042_v22  ;;  %v1006_v25 = vmul.f32 %v978_v26, %v5037_v18  ;;  %v1001_v46 = vmul.f32 %v973_v28, %v5031_v13  ;;  %v1007_v56 = vmul.f32 %v979_v35, %v5044_v23 }
 0x19f   :  { %v1016_v36 = vadd.f32 %v1015_v60, %v1004_v31  ;;  %v983_v37 = vadd.f32 %v982_v32, %v972_v15  ;;  %v1010_v38 = vadd.f32 %v1009_v29, %v999_v24  ;;  %v989_v39 = vadd.f32 %v988_v30, %v977_v27  ;;  %v1108_v15 = vld [vmem:[%s7049_s6 + $0x30] sm:$0xff]  ;;  %v1110_v24 = vld [vmem:[%s7049_s6 + $0x40] sm:$0xff]  ;;  %v1115_v27 = vld [vmem:[%s7049_s6 + $0x68] sm:$0xff] }
 0x1a0   :  { %v4751_v60 = vmov 1   ;;  %v4227_v7 = vpack.c.bf16 %v1104_v3, %v1102_v1  ;;  %v4229_v10 = vpack.c.bf16 %v1109_v6, %v1107_v4  ;;  %v4231_v20 = vpack.c.bf16 %v1108_v15, %v1106_v11  ;;  %v1114_v31 = vld [vmem:[%s7049_s6 + $0x60] sm:$0xff]  ;;  %v1116_v32 = vld [vmem:[%s7049_s6 + $0x70] sm:$0xff]  ;;  %v1135_v6 = vld [vmem:[%s7049_s6 + $0x108] sm:$0xff] }
 0x1a1   :  { %v984_v48 = vadd.f32 %v983_v37, %v973_v28  ;;  %v1011_v50 = vadd.f32 %v1010_v38, %v1000_v33  ;;  %v990_v51 = vadd.f32 %v989_v39, %v978_v26  ;;  %v1017_v53 = vadd.f32 %v1016_v36, %v1005_v34  ;;  %4642 = vset.pattern.permute.xlu0 %v4751_v60  ;;  %v1112_v26 = vld [vmem:[%s7049_s6 + $0x50] sm:$0xff]  ;;  %v1117_v28 = vld [vmem:[%s7049_s6 + $0x78] sm:$0xff]  ;;  %v1119_v33 = vld [vmem:[%s7049_s6 + $0x88] sm:$0xff] }
 0x1a2   :  { %4228 = vmatpush1.bf16.msra.mxu1 %v4227_v7  ;;  %4324 = vmatpush1.bf16.msra.mxu0 %v4227_v7  ;;  %v4233_v21 = vpack.c.bf16 %v1113_v19, %v1111_v16  ;;  %v4235_v29 = vpack.c.bf16 %v1112_v26, %v1110_v24  ;;  %v4237_v30 = vpack.c.bf16 %v1117_v28, %v1115_v27  ;;  %v1121_v34 = vld [vmem:[%s7049_s6 + $0x98] sm:$0xff]  ;;  %v1118_v37 = vld [vmem:[%s7049_s6 + $0x80] sm:$0xff]  ;;  %v1120_v38 = vld [vmem:[%s7049_s6 + $0x90] sm:$0xff] }
 0x1a3   :  { %985 = vadd.xlane.f32.xlu0 %v984_v48  ;;  %v1012_v54 = vadd.f32 %v1011_v50, %v1001_v46  ;;  %v991_v55 = vadd.f32 %v990_v51, %v979_v35  ;;  %v1018_v57 = vadd.f32 %v1017_v53, %v1006_v25  ;;  %4230 = vmatprep.subr.bf16.mxu1 %v4229_v10  ;;  %v1123_v39 = vld [vmem:[%s7049_s6 + $0xa8] sm:$0xff]  ;;  %v1125_v25 = vld [vmem:[%s7049_s6 + $0xb8] sm:$0xff]  ;;  %v1122_v50 = vld [vmem:[%s7049_s6 + $0xa0] sm:$0xff] }
 0x1a4   :  { %4326 = vmatprep.subr.bf16.mxu0 %v4229_v10  ;;  %v4239_v35 = vpack.c.bf16 %v1116_v32, %v1114_v31  ;;  %v4241_v36 = vpack.c.bf16 %v1121_v34, %v1119_v33  ;;  %v4243_v46 = vpack.c.bf16 %v1120_v38, %v1118_v37  ;;  %v4245_v48 = vpack.c.bf16 %v1125_v25, %v1123_v39  ;;  %v1124_v51 = vld [vmem:[%s7049_s6 + $0xb0] sm:$0xff]  ;;  %v1127_v53 = vld [vmem:[%s7049_s6 + $0xc8] sm:$0xff]  ;;  %v1130_v3 = vld [vmem:[%s7049_s6 + $0xe0] sm:$0xff] }
 0x1a5   :  { %1013 = vadd.xlane.f32.xlu1 %v1012_v54  ;;  %v1019_v58 = vadd.f32 %v1018_v57, %v1007_v56  ;;  %v1129_v54 = vld [vmem:[%s7049_s6 + $0xd8] sm:$0xff]  ;;  %v1126_v57 = vld [vmem:[%s7049_s6 + $0xc0] sm:$0xff]  ;;  %v1132_v4 = vld [vmem:[%s7049_s6 + $0xf0] sm:$0xff] }
 0x1a6   :  { %4232 = vmatpush1.bf16.msra.mxu1 %v4231_v20  ;;  %4328 = vmatpush1.bf16.msra.mxu0 %v4231_v20  ;;  %v4249_v56 = vpack.c.bf16 %v1129_v54, %v1127_v53  ;;  %v1137_v7 = vld [vmem:[%s7049_s6 + $0x118] sm:$0xff]  ;;  %v4255_v10 = vpack.c.bf16 %v1132_v4, %v1130_v3  ;;  %v1134_v15 = vld [vmem:[%s7049_s6 + $0x100] sm:$0xff]  ;;  %v1136_v16 = vld [vmem:[%s7049_s6 + $0x110] sm:$0xff] }
 0x1a7   :  { %992 = vadd.xlane.f32.xlu0 %v991_v55  ;;  %4234 = vmatprep.subr.bf16.mxu1 %v4233_v21  ;;  %v4247_v55 = vpack.c.bf16 %v1124_v51, %v1122_v50  ;;  %v4257_v11 = vpack.c.bf16 %v1137_v7, %v1135_v6  ;;  %v1139_v19 = vld [vmem:[%s7049_s6 + $0x128] sm:$0xff]  ;;  %v1141_v20 = vld [vmem:[%s7049_s6 + $0x138] sm:$0xff]  ;;  %v1138_v26 = vld [vmem:[%s7049_s6 + $0x120] sm:$0xff] }
 0x1a8   :  { %4330 = vmatprep.subr.bf16.mxu0 %v4233_v21  ;;  %v4259_v21 = vpack.c.bf16 %v1136_v16, %v1134_v15  ;;  %v4261_v24 = vpack.c.bf16 %v1141_v20, %v1139_v19  ;;  %v1140_v27 = vld [vmem:[%s7049_s6 + $0x130] sm:$0xff]  ;;  %v1143_v28 = vld [vmem:[%s7049_s6 + $0x148] sm:$0xff]  ;;  %v1142_v32 = vld [vmem:[%s7049_s6 + $0x140] sm:$0xff] }
 0x1a9   :  { %v1144_v33 = vld [vmem:[%s7049_s6 + $0x150] sm:$0xff]  ;;  %v1147_v34 = vld [vmem:[%s7049_s6 + $0x168] sm:$0xff]  ;;  %v1146_v38 = vld [vmem:[%s7049_s6 + $0x160] sm:$0xff] }
 0x1aa   :  { %4236 = vmatpush1.bf16.msra.mxu1 %v4235_v29  ;;  %4332 = vmatpush1.bf16.msra.mxu0 %v4235_v29  ;;  %v1145_v29 = vld [vmem:[%s7049_s6 + $0x158] sm:$0xff]  ;;  %v1148_v39 = vld [vmem:[%s7049_s6 + $0x170] sm:$0xff]  ;;  %v1151_v25 = vld [vmem:[%s7049_s6 + $0x188] sm:$0xff] }
 0x1ab   :  { %1020 = vadd.xlane.f32.xlu0 %v1019_v58  ;;  %4238 = vmatprep.subr.bf16.mxu1 %v4237_v30  ;;  %v1128_v58 = vld [vmem:[%s7049_s6 + $0xd0] sm:$0xff]  ;;  %v4265_v31 = vpack.c.bf16 %v1145_v29, %v1143_v28  ;;  %v1150_v51 = vld [vmem:[%s7049_s6 + $0x180] sm:$0xff]  ;;  %v1155_v54 = vld [vmem:[%s7049_s6 + $0x1a8] sm:$0xff] }
 0x1ac   :  { %4334 = vmatprep.subr.bf16.mxu0 %v4237_v30  ;;  %v4251_v1 = vpack.c.bf16 %v1128_v58, %v1126_v57  ;;  %v4263_v30 = vpack.c.bf16 %v1140_v27, %v1138_v26  ;;  %v1152_v53 = vld [vmem:[%s7049_s6 + $0x190] sm:$0xff]  ;;  %v1154_v58 = vld [vmem:[%s7049_s6 + $0x1a0] sm:$0xff] }
 0x1ad   :  { %v1158_v4 = vld [vmem:[%s7049_s6 + $0x1c0] sm:$0xff]  ;;  %v1160_v6 = vld [vmem:[%s7049_s6 + $0x1d0] sm:$0xff] }
 0x1ae   :  { %4240 = vmatpush1.bf16.msra.mxu1 %v4239_v35  ;;  %4336 = vmatpush1.bf16.msra.mxu0 %v4239_v35  ;;  %v1149_v35 = vld [vmem:[%s7049_s6 + $0x178] sm:$0xff]  ;;  %v4283_v7 = vpack.c.bf16 %v1160_v6, %v1158_v4 }
 0x1af   :  { %4242 = vmatprep.subr.bf16.mxu1 %v4241_v36  ;;  %4338 = vmatprep.subr.bf16.mxu0 %v4241_v36  ;;  %v4267_v36 = vpack.c.bf16 %v1144_v33, %v1142_v32  ;;  %v4269_v37 = vpack.c.bf16 %v1149_v35, %v1147_v34 }
 0x1b2   :  { %4244 = vmatpush1.bf16.msra.mxu1 %v4243_v46  ;;  %4340 = vmatpush1.bf16.msra.mxu0 %v4243_v46  ;;  %v1153_v46 = vld [vmem:[%s7049_s6 + $0x198] sm:$0xff] }
 0x1b3   :  { %4246 = vmatprep.subr.bf16.mxu1 %v4245_v48  ;;  %4342 = vmatprep.subr.bf16.mxu0 %v4245_v48  ;;  %v4271_v48 = vpack.c.bf16 %v1148_v39, %v1146_v38  ;;  %v4273_v50 = vpack.c.bf16 %v1153_v46, %v1151_v25 }
 0x1b6   :  { %4248 = vmatpush1.bf16.msra.mxu1 %v4247_v55  ;;  %4344 = vmatpush1.bf16.msra.mxu0 %v4247_v55  ;;  %v1157_v55 = vld [vmem:[%s7049_s6 + $0x1b8] sm:$0xff] }
 0x1b7   :  { %4250 = vmatprep.subr.bf16.mxu1 %v4249_v56  ;;  %4346 = vmatprep.subr.bf16.mxu0 %v4249_v56  ;;  %v4275_v56 = vpack.c.bf16 %v1152_v53, %v1150_v51  ;;  %v4277_v57 = vpack.c.bf16 %v1157_v55, %v1155_v54  ;;  %v1162_v51 = vld [vmem:[%s7049_s6 + $0x1e0] sm:$0xff]  ;;  %v1164_v54 = vld [vmem:[%s7049_s6 + $0x1f0] sm:$0xff]  ;;  %v5292_v55 = vld [vmem:[%s7048_s5 + $0x8] sm:$0xff] }
 0x1ba   :  { %4252 = vmatpush1.bf16.msra.mxu1 %v4251_v1  ;;  %4348 = vmatpush1.bf16.msra.mxu0 %v4251_v1  ;;  %v1161_v1 = vld [vmem:[%s7049_s6 + $0x1d8] sm:$0xff] }
 0x1bb   :  { %4254 = vmatprep.subr.bf16.mxu1 %v4253_v2  ;;  %4350 = vmatprep.subr.bf16.mxu0 %v4253_v2  ;;  %v4279_v2 = vpack.c.bf16 %v1156_v63, %v1154_v58  ;;  %v4281_v3 = vpack.c.bf16 %v1161_v1, %v1159_v0  ;;  %v1167_v63 = vld [vmem:[%s7049_s6 + $0x208] sm:$0xff]  ;;  %v1169_v0 = vld [vmem:[%s7049_s6 + $0x218] sm:$0xff] }
 0x1bc   :  { %v4289_v1 = vpack.c.bf16 %v1169_v0, %v1167_v63  ;;  %v1175_v63 = vld [vmem:[%s7049_s6 + $0x248] sm:$0xff]  ;;  %v1177_v0 = vld [vmem:[%s7049_s6 + $0x258] sm:$0xff] }
 0x1be   :  { %4256 = vmatpush1.bf16.msra.mxu1 %v4255_v10  ;;  %4352 = vmatpush1.bf16.msra.mxu0 %v4255_v10 }
 0x1bf   :  { %4258 = vmatprep.subr.bf16.mxu1 %v4257_v11  ;;  %4354 = vmatprep.subr.bf16.mxu0 %v4257_v11 }
 0x1c1   :  { %1070 = vperm.xlu0 %4642, %v5060_v59  }
 0x1c2   :  { %4260 = vmatpush1.bf16.msra.mxu1 %v4259_v21  ;;  %4356 = vmatpush1.bf16.msra.mxu0 %v4259_v21 }
 0x1c3   :  { %4262 = vmatprep.subr.bf16.mxu1 %v4261_v24  ;;  %4358 = vmatprep.subr.bf16.mxu0 %v4261_v24 }
 0x1c6   :  { %4264 = vmatpush1.bf16.msra.mxu1 %v4263_v30  ;;  %4360 = vmatpush1.bf16.msra.mxu0 %v4263_v30 }
 0x1c7   :  { %4266 = vmatprep.subr.bf16.mxu1 %v4265_v31  ;;  %4362 = vmatprep.subr.bf16.mxu0 %v4265_v31 }
 0x1ca   :  { %4268 = vmatpush1.bf16.msra.mxu1 %v4267_v36  ;;  %4364 = vmatpush1.bf16.msra.mxu0 %v4267_v36 }
 0x1cb   :  { %4270 = vmatprep.subr.bf16.mxu1 %v4269_v37  ;;  %4366 = vmatprep.subr.bf16.mxu0 %v4269_v37 }
 0x1ce   :  { %4272 = vmatpush1.bf16.msra.mxu1 %v4271_v48  ;;  %4368 = vmatpush1.bf16.msra.mxu0 %v4271_v48  ;;  %v1163_v48 = vld [vmem:[%s7049_s6 + $0x1e8] sm:$0xff] }
 0x1cf   :  { %4274 = vmatprep.subr.bf16.mxu1 %v4273_v50  ;;  %4370 = vmatprep.subr.bf16.mxu0 %v4273_v50  ;;  %v1165_v50 = vld [vmem:[%s7049_s6 + $0x1f8] sm:$0xff] }
 0x1d0   :  { %v4285_v53 = vpack.c.bf16 %v1165_v50, %v1163_v48 }
 0x1d2   :  { %4276 = vmatpush1.bf16.msra.mxu1 %v4275_v56  ;;  %4372 = vmatpush1.bf16.msra.mxu0 %v4275_v56  ;;  %v4287_v56 = vpack.c.bf16 %v1164_v54, %v1162_v51  ;;  %v1170_v54 = vld [vmem:[%s7049_s6 + $0x220] sm:$0xff] }
 0x1d3   :  { %4278 = vmatprep.subr.bf16.mxu1 %v4277_v57  ;;  %4374 = vmatprep.subr.bf16.mxu0 %v4277_v57 }
 0x1d6   :  { %4280 = vmatpush1.bf16.msra.mxu1 %v4279_v2  ;;  %4376 = vmatpush1.bf16.msra.mxu0 %v4279_v2  ;;  %v5303_v2 = vpop.f32.mrb[12].mxu0 }
 0x1d7   :  { %4282 = vmatprep.subr.bf16.mxu1 %v4281_v3  ;;  %4378 = vmatprep.subr.bf16.mxu0 %v4281_v3  ;;  %7088 = vst [vmem:[#allocation13_spill] sm:$0xff] %v5303_v2  ;;  %v5305_v3 = vpop.f32.mrb[4].mxu1  ;;  %v5307_v4 = vpop.f32.mrb[13].mxu0 }
 0x1d8   :  { %7089 = vst [vmem:[#allocation14_spill] sm:$0xff] %v5305_v3  ;;  %7090 = vst [vmem:[#allocation15_spill] sm:$0xff] %v5307_v4  ;;  %v5309_v6 = vpop.f32.mrb[5].mxu1 }
 0x1d9   :  { %7091 = vst [vmem:[#allocation16_spill] sm:$0xff] %v5309_v6 }
 0x1da   :  { %4284 = vmatpush1.bf16.msra.mxu1 %v4283_v7  ;;  %4380 = vmatpush1.bf16.msra.mxu0 %v4283_v7  ;;  %v934_v7 = vpop.f32.mrb[14].mxu0 }
 0x1db   :  { %4286 = vmatprep.subr.bf16.mxu1 %v4285_v53  ;;  %4382 = vmatprep.subr.bf16.mxu0 %v4285_v53  ;;  %v4297_v7 = vpack.c.bf16 %v1177_v0, %v1175_v63  ;;  %v1186_v0 = vld [vmem:[%s7049_s6 + $0x2a0] sm:$0xff] }
 0x1de   :  { %4288 = vmatpush1.bf16.msra.mxu1 %v4287_v56  ;;  %4384 = vmatpush1.bf16.msra.mxu0 %v4287_v56 }
 0x1df   :  { %4290 = vmatprep.subr.bf16.mxu1 %v4289_v1  ;;  %4386 = vmatprep.subr.bf16.mxu0 %v4289_v1 }
 0x230   :  { %v986_v10 = vpop.xlane.xlu0 %985 }
 0x231   :  { %v5244_v11 = vmul.f32 0.001953125, %v986_v10  ;;  %v883_v10 = vpop.f32.mrb[6].mxu1 }
 0x232   :  { %v1014_v15 = vpop.xlane.xlu1 %1013 }
 0x233   :  { %v1022_v16 = vmul.f32 0.001953125, %v1014_v15  ;;  %v1024_v19 = vmul.f32 %v5244_v11, %v5244_v11  ;;  %v1035_v20 = vsub.f32 %v4997_v47, %v5244_v11  ;;  %v1038_v21 = vsub.f32 %v5025_v9, %v5244_v11  ;;  %v935_v15 = vpop.f32.mrb[15].mxu0 }
 0x234   :  { %v993_v24 = vpop.xlane.xlu0 %992  ;;  %v1034_v26 = vsub.f32 %v4993_v40, %v5244_v11  ;;  %v1037_v27 = vsub.f32 %v5029_v12, %v5244_v11  ;;  %v1036_v28 = vsub.f32 %v5023_v8, %v5244_v11  ;;  %v1039_v29 = vsub.f32 %v5031_v13, %v5244_v11  ;;  %v1174_v15 = vld [vmem:[%s7049_s6 + $0x240] sm:$0xff] }
 0x235   :  { %v1026_v30 = vsub.f32 %v1022_v16, %v1024_v19  ;;  %v5260_v31 = vmul.f32 0.001953125, %v993_v24  ;;  %v884_v16 = vpop.f32.mrb[7].mxu1 }
 0x236   :  { %v1176_v16 = vld [vmem:[%s7049_s6 + $0x250] sm:$0xff] }
 0x237   :  { %v1028_v47 = vadd.f32 1e-05, %v1026_v30  ;;  %v1041_v9 = vsub.f32 %v5006_v52, %v5260_v31  ;;  %v1044_v32 = vsub.f32 %v5037_v18, %v5260_v31  ;;  %v1040_v12 = vsub.f32 %v5001_v49, %v5260_v31  ;;  %v1179_v49 = vld [vmem:[%s7049_s6 + $0x268] sm:$0xff] }
 0x238   :  { %v1021_v40 = vpop.xlane.xlu0 %1020  ;;  %v1043_v33 = vsub.f32 %v5042_v22, %v5260_v31  ;;  %v1042_v34 = vsub.f32 %v5035_v17, %v5260_v31  ;;  %v1045_v35 = vsub.f32 %v5044_v23, %v5260_v31  ;;  %v1025_v36 = vmul.f32 %v5260_v31, %v5260_v31  ;;  %v1181_v22 = vld [vmem:[%s7049_s6 + $0x278] sm:$0xff] }
 0x239   :  { %4701 = vrsqrt.f32 %v1028_v47  ;;  %v1023_v37 = vmul.f32 0.001953125, %v1021_v40 }
 0x23b   :  { %v1027_v38 = vsub.f32 %v1023_v37, %v1025_v36  ;;  %v1166_v36 = vld [vmem:[%s7049_s6 + $0x200] sm:$0xff]  ;;  %v1168_v37 = vld [vmem:[%s7049_s6 + $0x210] sm:$0xff] }
 0x23c   :  { %v4291_v48 = vpack.c.bf16 %v1168_v37, %v1166_v36 }
 0x23d   :  { %v1029_v39 = vadd.f32 1e-05, %v1027_v38 }
 0x23f   :  { %4703 = vrsqrt.f32 %v1029_v39 }
 0x240   :  { %v5313_v24 = vpop.permute.xlu0 %1070 }
 0x243   :  { %v4702_v25 = vpop.eup %4701 }
 0x244   :  { %v1032_v46 = vmul.f32 %v4702_v25, %v5060_v59 }
 0x246   :  { %1048 = vperm.xlu1 %4641, %v1032_v46   ;;  %v1173_v46 = vld [vmem:[%s7049_s6 + $0x238] sm:$0xff] }
 0x249   :  { %v4704_v57 = vpop.eup %4703 }
 0x24a   :  { %v1033_v58 = vmul.f32 %v4704_v57, %v5292_v55 }
 0x24c   :  { %1053 = vperm.xlu1 %4641, %v1033_v58   ;;  %v1172_v58 = vld [vmem:[%s7049_s6 + $0x230] sm:$0xff] }
 0x24d   :  { %v4295_v1 = vpack.c.bf16 %v1172_v58, %v1170_v54  ;;  %v1189_v54 = vld [vmem:[%s7049_s6 + $0x2b8] sm:$0xff] }
 0x250   :  { %4643 = vset.pattern.permute.xlu1 %v4751_v60 }
 0x251   :  { %1075 = vperm.xlu1 %4643, %v5292_v55  }
 0x2c5   :  { %v5311_v19 = vpop.permute.xlu1 %1048 }
 0x2c6   :  { %v1057_v30 = vmul.f32 %v5311_v19, %v1035_v20  ;;  %v1060_v47 = vmul.f32 %v5311_v19, %v1038_v21  ;;  %v1056_v40 = vmul.f32 %v5311_v19, %v1034_v26  ;;  %v1059_v38 = vmul.f32 %v5311_v19, %v1037_v27  ;;  %v1171_v26 = vld [vmem:[%s7049_s6 + $0x228] sm:$0xff] }
 0x2c7   :  { %v4293_v57 = vpack.c.bf16 %v1173_v46, %v1171_v26  ;;  %v1183_v26 = vld [vmem:[%s7049_s6 + $0x288] sm:$0xff]  ;;  %v1185_v46 = vld [vmem:[%s7049_s6 + $0x298] sm:$0xff] }
 0x2c8   :  { %v1079_v39 = vadd.f32 %v5313_v24, %v1057_v30  ;;  %v1082_v25 = vadd.f32 %v5313_v24, %v1060_v47  ;;  %v1078_v20 = vadd.f32 %v5313_v24, %v1056_v40  ;;  %v1081_v21 = vadd.f32 %v5313_v24, %v1059_v38 }
 0x2ca   :  { %v1091_v50 = vmax.f32 %v1079_v39, 0.0  ;;  %v1094_v51 = vmax.f32 %v1082_v25, 0.0  ;;  %v1090_v27 = vmax.f32 %v1078_v20, 0.0  ;;  %v1093_v53 = vmax.f32 %v1081_v21, 0.0  ;;  %v1178_v25 = vld [vmem:[%s7049_s6 + $0x260] sm:$0xff]  ;;  %v1180_v20 = vld [vmem:[%s7049_s6 + $0x270] sm:$0xff] }
 0x2cb   :  { %v5338_v56 = vpop.permute.xlu1 %1053  ;;  %v4301_v21 = vpack.c.bf16 %v1181_v22, %v1179_v49  ;;  %v1196_v49 = vld [vmem:[%s7049_s6 + $0x2f0] sm:$0xff]  ;;  %v1058_v22 = vmul.f32 %v5311_v19, %v1036_v28 }
 0x2cc   :  { %1262 = vmatprep.mubr.f32.mxu1 %v1091_v50  ;;  %1420 = vmatprep.mubr.f32.mxu0 %v1094_v51  ;;  %v1063_v10 = vmul.f32 %v5338_v56, %v1041_v9  ;;  %v1066_v30 = vmul.f32 %v5338_v56, %v1044_v32  ;;  %v1062_v52 = vmul.f32 %v5338_v56, %v1040_v12  ;;  %v1182_v51 = vld [vmem:[%s7049_s6 + $0x280] sm:$0xff] }
 0x2cd   :  { %1263 = vmatmul.mubr.f32.vlgmr.msra.gmra.mrb[8].mxu1 %v1090_v27  ;;  %1421 = vmatmul.mubr.f32.vlgmr.msra.gmra.mrb[16].mxu0 %v1093_v53  ;;  %v1065_v9 = vmul.f32 %v5338_v56, %v1043_v33  ;;  %v4299_v12 = vpack.c.bf16 %v1176_v16, %v1174_v15  ;;  %v4305_v50 = vpack.c.bf16 %v1185_v46, %v1183_v26  ;;  %v1184_v27 = vld [vmem:[%s7049_s6 + $0x290] sm:$0xff]  ;;  %v1187_v53 = vld [vmem:[%s7049_s6 + $0x2a8] sm:$0xff] }
 0x2ce   :  { %4292 = vmatpush1.bf16.msra.mxu1 %v4291_v48  ;;  %4388 = vmatpush1.bf16.msra.mxu0 %v4291_v48  ;;  %v4303_v48 = vpack.c.bf16 %v1180_v20, %v1178_v25  ;;  %v4307_v58 = vpack.c.bf16 %v1184_v27, %v1182_v51  ;;  %v4309_v63 = vpack.c.bf16 %v1189_v54, %v1187_v53 }
 0x2cf   :  { %4294 = vmatprep.subr.bf16.mxu1 %v4293_v57  ;;  %4390 = vmatprep.subr.bf16.mxu0 %v4293_v57  ;;  %v7059_v57 = vmov 0.0   ;;  %v1064_v8 = vmul.f32 %v5338_v56, %v1042_v34  ;;  %v1067_v13 = vmul.f32 %v5338_v56, %v1045_v35 }
 0x2d0   :  { %v5371_v47 = vpop.permute.xlu1 %1075 }
 0x2d1   :  { %v1085_v40 = vadd.f32 %v5371_v47, %v1063_v10  ;;  %v1088_v36 = vadd.f32 %v5371_v47, %v1066_v30  ;;  %v1084_v18 = vadd.f32 %v5371_v47, %v1062_v52  ;;  %v1087_v32 = vadd.f32 %v5371_v47, %v1065_v9  ;;  %v1193_v10 = vld [vmem:[%s7049_s6 + $0x2d8] sm:$0xff]  ;;  %v1190_v30 = vld [vmem:[%s7049_s6 + $0x2c0] sm:$0xff]  ;;  %v1192_v52 = vld [vmem:[%s7049_s6 + $0x2d0] sm:$0xff] }
 0x2d2   :  { %4296 = vmatpush1.bf16.msra.mxu1 %v4295_v1  ;;  %4392 = vmatpush1.bf16.msra.mxu0 %v4295_v1  ;;  %v1188_v1 = vld [vmem:[%s7049_s6 + $0x2b0] sm:$0xff]  ;;  %v1195_v9 = vld [vmem:[%s7049_s6 + $0x2e8] sm:$0xff] }
 0x2d3   :  { %4298 = vmatprep.subr.bf16.mxu1 %v4297_v7  ;;  %4394 = vmatprep.subr.bf16.mxu0 %v4297_v7  ;;  %v1097_v33 = vmax.f32 %v1085_v40, 0.0  ;;  %v1100_v37 = vmax.f32 %v1088_v36, 0.0  ;;  %v1096_v38 = vmax.f32 %v1084_v18, 0.0  ;;  %v1099_v39 = vmax.f32 %v1087_v32, 0.0  ;;  %v1191_v7 = vld [vmem:[%s7049_s6 + $0x2c8] sm:$0xff]  ;;  %v1197_v40 = vld [vmem:[%s7049_s6 + $0x2f8] sm:$0xff] }
 0x2d4   :  { %v4311_v15 = vpack.c.bf16 %v1188_v1, %v1186_v0  ;;  %v4313_v16 = vpack.c.bf16 %v1193_v10, %v1191_v7  ;;  %v4315_v36 = vpack.c.bf16 %v1192_v52, %v1190_v30  ;;  %v4317_v18 = vpack.c.bf16 %v1197_v40, %v1195_v9  ;;  %v1194_v32 = vld [vmem:[%s7049_s6 + $0x2e0] sm:$0xff]  ;;  %s4753_s6 = smov 112  }
 0x2d5   :  { %1268 = vmatprep.mubr.f32.mxu1 %v1097_v33  ;;  %1426 = vmatprep.mubr.f32.mxu0 %v1100_v37  ;;  %v4319_v33 = vpack.c.bf16 %v1196_v49, %v1194_v32  ;;  %v1080_v37 = vadd.f32 %v5313_v24, %v1058_v22 }
 0x2d6   :  { %4300 = vmatpush1.bf16.msra.mxu1 %v4299_v12  ;;  %4396 = vmatpush1.bf16.msra.mxu0 %v4299_v12  ;;  %v1061_v12 = vmul.f32 %v5311_v19, %v1039_v29  ;;  %v1086_v29 = vadd.f32 %v5371_v47, %v1064_v8  ;;  %v1089_v19 = vadd.f32 %v5371_v47, %v1067_v13 }
 0x2d7   :  { %1269 = vmatmul.mubr.f32.gmra.mrb[10].mxu1 %v1096_v38  ;;  %1427 = vmatmul.mubr.f32.gmra.mrb[18].mxu0 %v1099_v39  ;;  %v1092_v11 = vmax.f32 %v1080_v37, 0.0 }
 0x2d8   :  { %4302 = vmatprep.subr.bf16.mxu1 %v4301_v21  ;;  %4398 = vmatprep.subr.bf16.mxu0 %v4301_v21  ;;  %v1083_v38 = vadd.f32 %v5313_v24, %v1061_v12  ;;  %v1098_v17 = vmax.f32 %v1086_v29, 0.0  ;;  %v1101_v34 = vmax.f32 %v1089_v19, 0.0 }
 0x2d9   :  { %1339 = vmatprep.mubr.f32.mxu1 %v7059_v57  ;;  %1497 = vmatprep.mubr.f32.mxu0 %v7059_v57 }
 0x2da   :  { %4304 = vmatpush1.bf16.msra.mxu1 %v4303_v48  ;;  %4400 = vmatpush1.bf16.msra.mxu0 %v4303_v48  ;;  %v1095_v28 = vmax.f32 %v1083_v38, 0.0  ;;  %v4697_v48 = vld [vmem:[%s7050_s2 + $0x4] ss:$8 sps:$4 sm:$0xff]  }
 0x2db   :  { %4306 = vmatprep.subr.bf16.mxu1 %v4305_v50  ;;  %4402 = vmatprep.subr.bf16.mxu0 %v4305_v50 }
 0x2de   :  { %4308 = vmatpush1.bf16.msra.mxu1 %v4307_v58  ;;  %4404 = vmatpush1.bf16.msra.mxu0 %v4307_v58 }
 0x2df   :  { %4310 = vmatprep.subr.bf16.mxu1 %v4309_v63  ;;  %4406 = vmatprep.subr.bf16.mxu0 %v4309_v63 }
 0x2e2   :  { %4312 = vmatpush1.bf16.msra.mxu1 %v4311_v15  ;;  %4408 = vmatpush1.bf16.msra.mxu0 %v4311_v15 }
 0x2e3   :  { %4314 = vmatprep.subr.bf16.mxu1 %v4313_v16  ;;  %4410 = vmatprep.subr.bf16.mxu0 %v4313_v16 }
 0x2e6   :  { %4316 = vmatpush1.bf16.msra.mxu1 %v4315_v36  ;;  %4412 = vmatpush1.bf16.msra.mxu0 %v4315_v36 }
 0x2e7   :  { %4318 = vmatprep.subr.bf16.mxu1 %v4317_v18  ;;  %4414 = vmatprep.subr.bf16.mxu0 %v4317_v18 }
 0x2ea   :  { %4320 = vmatpush1.bf16.msra.mxu1 %v4319_v33  ;;  %4416 = vmatpush1.bf16.msra.mxu0 %v4319_v33 }
 0x2ed   :  { %1340 = vmatmul.mubr.f32.vlgmr.msra.gmra.mrb[8].mxu1 %v1092_v11  ;;  %1498 = vmatmul.mubr.f32.vlgmr.msra.gmra.mrb[16].mxu0 %v1095_v28 }
 0x2ee   :  { %1345 = vmatprep.mubr.f32.mxu1 %v7059_v57  ;;  %1503 = vmatprep.mubr.f32.mxu0 %v7059_v57 }
 0x2f1   :  { %1346 = vmatmul.mubr.f32.gmra.mrb[10].mxu1 %v1098_v17  ;;  %1504 = vmatmul.mubr.f32.gmra.mrb[18].mxu0 %v1101_v34 }
 0x2f2   :  { %2020 = vmatprep.mubr.f32.mxu0 %v7059_v57  ;;  %4179 = vmatprep.mubr.msk.bf16.mxu1 %vm1798_vm10, %v4697_v48 }
 0x3c0   :  { %v1341_v23 = vpop.f32.mrb[8].mxu1  ;;  %v1499_v31 = vpop.f32.mrb[16].mxu0 }
 0x3c1   :  { %v1343_v35 = vpop.f32.mrb[9].mxu1  ;;  %v1501_v24 = vpop.f32.mrb[17].mxu0 }
 0x3c4   :  { %v1347_v56 = vpop.f32.mrb[10].mxu1  ;;  %v1505_v39 = vpop.f32.mrb[18].mxu0 }
 0x3c5   :  { %v1517_v25 = vpack.c.bf16 %v1347_v56, %v1341_v23  ;;  %v1647_v47 = vpack.c.bf16 %v1505_v39, %v1499_v31  ;;  %v1349_v20 = vpop.f32.mrb[11].mxu1  ;;  %v1507_v21 = vpop.f32.mrb[19].mxu0 }
 0x3c6   :  { %v1524_v26 = vpack.c.bf16 %v1349_v20, %v1343_v35  ;;  %v1654_v46 = vpack.c.bf16 %v1507_v21, %v1501_v24 }
 0x3c7   :  { %1542 = vrot.lane.b32.xlu0 %v1517_v25, %s4742_s29  ;;  %1657 = vrot.lane.b32.xlu1 %v1647_v47, %s4743_s30 }
 0x3c8   :  { %1802 = vmatprep.subr.bf16.mxu1 %v1647_v47 }
 0x3c9   :  { %1803 = vmatpush1.bf16.msra.mxu1 %v1517_v25 }
 0x3cb   :  { %1687 = vrot.lane.b32.xlu0 %v1647_v47, %s4753_s6  ;;  %1527 = vrot.lane.b32.xlu1 %v1517_v25, %s4743_s30 }
 0x3cf   :  { %1557 = vrot.lane.b32.xlu0 %v1517_v25, %s4753_s6  ;;  %1672 = vrot.lane.b32.xlu1 %v1647_v47, %s4742_s29 }
 0x3d3   :  { %1702 = vrot.lane.b32.xlu0 %v1647_v47, %s4754_s27  ;;  %1659 = vrot.lane.b32.xlu1 %v1654_v46, %s4743_s30 }
 0x3d7   :  { %1573 = vrot.lane.b32.xlu0 %v1517_v25, %s4754_s27  ;;  %1529 = vrot.lane.b32.xlu1 %v1524_v26, %s4743_s30 }
 0x3db   :  { %1717 = vrot.lane.b32.xlu0 %v1647_v47, %s4755_s28  ;;  %1674 = vrot.lane.b32.xlu1 %v1654_v46, %s4742_s29 }
 0x3df   :  { %1589 = vrot.lane.b32.xlu0 %v1517_v25, %s4755_s28  ;;  %1544 = vrot.lane.b32.xlu1 %v1524_v26, %s4742_s29 }
 0x3e3   :  { %1732 = vrot.lane.b32.xlu0 %v1647_v47, %s4756_s16  ;;  %1689 = vrot.lane.b32.xlu1 %v1654_v46, %s4753_s6 }
 0x3e7   :  { %1605 = vrot.lane.b32.xlu0 %v1517_v25, %s4756_s16  ;;  %1559 = vrot.lane.b32.xlu1 %v1524_v26, %s4753_s6 }
 0x3eb   :  { %1747 = vrot.lane.b32.xlu0 %v1647_v47, %s4757_s17  ;;  %1704 = vrot.lane.b32.xlu1 %v1654_v46, %s4754_s27 }
 0x3ef   :  { %1621 = vrot.lane.b32.xlu0 %v1517_v25, %s4757_s17  ;;  %1575 = vrot.lane.b32.xlu1 %v1524_v26, %s4754_s27 }
 0x3f3   :  { %1762 = vrot.lane.b32.xlu0 %v1647_v47, %s4758_s19  ;;  %1719 = vrot.lane.b32.xlu1 %v1654_v46, %s4755_s28 }
 0x3f7   :  { %1637 = vrot.lane.b32.xlu0 %v1517_v25, %s4758_s19  ;;  %1591 = vrot.lane.b32.xlu1 %v1524_v26, %s4755_s28 }
 0x3fb   :  { %1734 = vrot.lane.b32.xlu1 %v1654_v46, %s4756_s16 }
 0x3ff   :  { %1607 = vrot.lane.b32.xlu1 %v1524_v26, %s4756_s16 }
 0x403   :  { %1749 = vrot.lane.b32.xlu1 %v1654_v46, %s4757_s17 }
 0x407   :  { %1623 = vrot.lane.b32.xlu1 %v1524_v26, %s4757_s17 }
 0x40b   :  { %1764 = vrot.lane.b32.xlu1 %v1654_v46, %s4758_s19 }
 0x40f   :  { %1639 = vrot.lane.b32.xlu1 %v1524_v26, %s4758_s19 }
 0x439   :  { %v1543_v50 = vpop.permute.xlu0 %1542  ;;  %v1658_v51 = vpop.permute.xlu1 %1657 }
 0x43d   :  { %v1528_v27 = vpop.permute.xlu1 %1527  ;;  %v1688_v53 = vpop.permute.xlu0 %1687 }
 0x441   :  { %v1673_v54 = vpop.permute.xlu1 %1672  ;;  %v1558_v58 = vpop.permute.xlu0 %1557 }
 0x445   :  { %v1660_v63 = vpop.permute.xlu1 %1659  ;;  %v1703_v10 = vpop.permute.xlu0 %1702 }
 0x446   :  { %v1661_v0 = vsel %vm87_vm2, %v1658_v51, %v1660_v63  ;;  %v4695_v51 = vld [vmem:[%s7050_s2] ss:$8 sps:$4 sm:$0xff]  }
 0x447   :  { %1804 = vmatprep.subr.bf16.mxu1 %v1661_v0 }
 0x449   :  { %v1530_v1 = vpop.permute.xlu1 %1529  ;;  %v1574_v30 = vpop.permute.xlu0 %1573 }
 0x44a   :  { %v1531_v7 = vsel %vm87_vm2, %v1528_v27, %v1530_v1  ;;  %v40_v27 = vld [vmem:[%s7051_s10] sm:$0x3] }
 0x44b   :  { %1805 = vmatpush1.bf16.msra.mxu1 %v1531_v7 }
 0x44d   :  { %v1675_v15 = vpop.permute.xlu1 %1674  ;;  %v1718_v18 = vpop.permute.xlu0 %1717 }
 0x44e   :  { %v1676_v16 = vsel %vm119_vm1, %v1673_v54, %v1675_v15  ;;  %v5526_v54 = vrot.slane %v40_v27, %v944_v43 }
 0x44f   :  { %1806 = vmatprep.subr.bf16.mxu1 %v1676_v16 }
 0x451   :  { %v1545_v52 = vpop.permute.xlu1 %1544  ;;  %v1590_v22 = vpop.permute.xlu0 %1589 }
 0x452   :  { %v1546_v9 = vsel %vm119_vm1, %v1543_v50, %v1545_v52 }
 0x453   :  { %1807 = vmatpush1.bf16.msra.mxu1 %v1546_v9 }
 0x455   :  { %v1690_v40 = vpop.permute.xlu1 %1689  ;;  %v1733_v8 = vpop.permute.xlu0 %1732 }
 0x456   :  { %v1691_v36 = vsel %vm1561_vm11, %v1688_v53, %v1690_v40  ;;  %v5522_v53 = vrot.slane %v40_v27, %v4980_v42  ;;  %v1945_v27 = vld [vmem:[%s7052_s8 + $0xa8] sm:$0xff] }
 0x457   :  { %1808 = vmatprep.subr.bf16.mxu1 %v1691_v36 }
 0x459   :  { %v1560_v32 = vpop.permute.xlu1 %1559  ;;  %v1606_v28 = vpop.permute.xlu0 %1605 }
 0x45a   :  { %v1562_v49 = vsel %vm1561_vm11, %v1558_v58, %v1560_v32  ;;  %v4759_v32 = vmov 2  }
 0x45b   :  { %1809 = vmatpush1.bf16.msra.mxu1 %v1562_v49  ;;  %4645 = vset.pattern.permute.xlu1 %v4759_v32  ;;  %v7061_v49 = vmov 3  }
 0x45c   :  { %4644 = vset.pattern.permute.xlu0 %v7061_v49 }
 0x45d   :  { %v1705_v12 = vpop.permute.xlu1 %1704  ;;  %v1748_v23 = vpop.permute.xlu0 %1747 }
 0x45e   :  { %v1706_v33 = vsel %vm1577_vm12, %v1703_v10, %v1705_v12  ;;  %v1927_v12 = vld [vmem:[%s7052_s8 + $0x18] sm:$0xff] }
 0x45f   :  { %1810 = vmatprep.subr.bf16.mxu1 %v1706_v33  ;;  %v1924_v33 = vld [vmem:[%s7052_s8] sm:$0xff] }
 0x461   :  { %v1576_v37 = vpop.permute.xlu1 %1575  ;;  %v1622_v24 = vpop.permute.xlu0 %1621 }
 0x462   :  { %v1578_v38 = vsel %vm1577_vm12, %v1574_v30, %v1576_v37 }
 0x463   :  { %1811 = vmatpush1.bf16.msra.mxu1 %v1578_v38  ;;  %v1926_v38 = vld [vmem:[%s7052_s8 + $0x10] sm:$0xff] }
 0x465   :  { %v1720_v13 = vpop.permute.xlu1 %1719  ;;  %v1763_v20 = vpop.permute.xlu0 %1762 }
 0x466   :  { %v1721_v11 = vsel %vm1593_vm13, %v1718_v18, %v1720_v13  ;;  %v4419_v13 = vpack.c.bf16 %v1926_v38, %v1924_v33 }
 0x467   :  { %1812 = vmatprep.subr.bf16.mxu1 %v1721_v11 }
 0x469   :  { %v1592_v29 = vpop.permute.xlu1 %1591  ;;  %v1638_v46 = vpop.permute.xlu0 %1637 }
 0x46a   :  { %v1594_v19 = vsel %vm1593_vm13, %v1590_v22, %v1592_v29  ;;  %v1925_v22 = vld [vmem:[%s7052_s8 + $0x8] sm:$0xff]  ;;  %v1930_v29 = vld [vmem:[%s7052_s8 + $0x30] sm:$0xff] }
 0x46b   :  { %1813 = vmatpush1.bf16.msra.mxu1 %v1594_v19  ;;  %v4417_v37 = vpack.c.bf16 %v1927_v12, %v1925_v22  ;;  %v1933_v19 = vld [vmem:[%s7052_s8 + $0x48] sm:$0xff] }
 0x46d   :  { %v1735_v17 = vpop.permute.xlu1 %1734  ;;  %4418 = vmatprep.subr.bf16.mxu0 %v4417_v37 }
 0x46e   :  { %v1736_v34 = vsel %vm1609_vm14, %v1733_v8, %v1735_v17  ;;  %v1931_v8 = vld [vmem:[%s7052_s8 + $0x38] sm:$0xff]  ;;  %4420 = vmatpush1.bf16.msra.mxu0 %v4419_v13 }
 0x46f   :  { %1814 = vmatprep.subr.bf16.mxu1 %v1736_v34  ;;  %v1935_v17 = vld [vmem:[%s7052_s8 + $0x58] sm:$0xff] }
 0x471   :  { %v1608_v31 = vpop.permute.xlu1 %1607 }
 0x472   :  { %v1610_v35 = vsel %vm1609_vm14, %v1606_v28, %v1608_v31  ;;  %v1928_v28 = vld [vmem:[%s7052_s8 + $0x20] sm:$0xff] }
 0x473   :  { %1815 = vmatpush1.bf16.msra.mxu1 %v1610_v35  ;;  %v4423_v34 = vpack.c.bf16 %v1930_v29, %v1928_v28  ;;  %v1932_v31 = vld [vmem:[%s7052_s8 + $0x40] sm:$0xff]  ;;  %v1934_v35 = vld [vmem:[%s7052_s8 + $0x50] sm:$0xff] }
 0x475   :  { %v1750_v56 = vpop.permute.xlu1 %1749 }
 0x476   :  { %v1751_v39 = vsel %vm1625_vm15, %v1748_v23, %v1750_v56  ;;  %v4425_v23 = vpack.c.bf16 %v1935_v17, %v1933_v19  ;;  %v1939_v56 = vld [vmem:[%s7052_s8 + $0x78] sm:$0xff] }
 0x477   :  { %1816 = vmatprep.subr.bf16.mxu1 %v1751_v39  ;;  %v4427_v39 = vpack.c.bf16 %v1934_v35, %v1932_v31 }
 0x479   :  { %v1624_v25 = vpop.permute.xlu1 %1623 }
 0x47a   :  { %v1626_v47 = vsel %vm1625_vm15, %v1622_v24, %v1624_v25  ;;  %v1937_v24 = vld [vmem:[%s7052_s8 + $0x68] sm:$0xff] }
 0x47b   :  { %1817 = vmatpush1.bf16.msra.mxu1 %v1626_v47  ;;  %v4429_v25 = vpack.c.bf16 %v1939_v56, %v1937_v24  ;;  %v1936_v47 = vld [vmem:[%s7052_s8 + $0x60] sm:$0xff] }
 0x47d   :  { %v1765_v21 = vpop.permute.xlu1 %1764 }
 0x47e   :  { %v1766_v26 = vsel %vm1641_vm0, %v1763_v20, %v1765_v21  ;;  %v1938_v20 = vld [vmem:[%s7052_s8 + $0x70] sm:$0xff]  ;;  %v1941_v21 = vld [vmem:[%s7052_s8 + $0x88] sm:$0xff] }
 0x47f   :  { %1818 = vmatprep.subr.bf16.mxu1 %v1766_v26  ;;  %v1943_v26 = vld [vmem:[%s7052_s8 + $0x98] sm:$0xff] }
 0x481   :  { %v1640_v48 = vpop.permute.xlu1 %1639 }
 0x482   :  { %v1642_v50 = vsel %vm1641_vm0, %v1638_v46, %v1640_v48  ;;  %v4431_v46 = vpack.c.bf16 %v1938_v20, %v1936_v47  ;;  %v4433_v48 = vpack.c.bf16 %v1943_v26, %v1941_v21  ;;  %v1954_v47 = vld [vmem:[%s7052_s8 + $0xf0] sm:$0xff] }
 0x483   :  { %1819 = vmatpush1.bf16.msra.mxu1 %v1642_v50  ;;  %v1940_v50 = vld [vmem:[%s7052_s8 + $0x80] sm:$0xff] }
 0x484   :  { %4450 = vmatprep.subr.bf16.mxu1 %v4417_v37 }
 0x486   :  { %1835 = vmatmul.mubr.bf16.vlgmr.msra.gmra.mrb[12].mxu1 %v4695_v51  ;;  %v1942_v51 = vld [vmem:[%s7052_s8 + $0x90] sm:$0xff] }
 0x487   :  { %2101 = vmatprep.mubr.f32.mxu1 %v7059_v57  ;;  %4452 = vmatpush1.bf16.msra.mxu1 %v4419_v13 }
 0x559   :  { %v5528_v58 = vpop.f32.mrb[12].mxu1 }
 0x55a   :  { %v5530_v63 = vpop.f32.mrb[13].mxu1  ;;  %v1856_v0 = vmul.f32 %v5522_v53, %v5528_v58 }
 0x55b   :  { %v5534_v1 = vpop.f32.mrb[14].mxu1  ;;  %v1857_v7 = vmul.f32 %v5526_v54, %v5530_v63 }
 0x55c   :  { %v5538_v10 = vpop.f32.mrb[15].mxu1  ;;  %v1868_v15 = vmul.f32 %v1856_v0, %v5528_v58  ;;  %v1858_v41 = vmul.f32 %v5522_v53, %v5534_v1 }
 0x55d   :  { %v1860_v43 = vadd.f32 %v1857_v7, %v1856_v0  ;;  %v1869_v16 = vmul.f32 %v1857_v7, %v5530_v63  ;;  %v1859_v30 = vmul.f32 %v5526_v54, %v5538_v10  ;;  %v1947_v0 = vld [vmem:[%s7052_s8 + $0xb8] sm:$0xff]  ;;  %v4435_v7 = vpack.c.bf16 %v1942_v51, %v1940_v50 }
 0x55e   :  { %v1870_v52 = vmul.f32 %v1858_v41, %v5534_v1 }
 0x55f   :  { %1861 = vadd.xlane.f32.xlu0 %v1860_v43  ;;  %v1872_v9 = vadd.f32 %v1869_v16, %v1868_v15  ;;  %v1863_v40 = vadd.f32 %v1859_v30, %v1858_v41  ;;  %v1871_v36 = vmul.f32 %v1859_v30, %v5538_v10  ;;  %v4437_v15 = vpack.c.bf16 %v1947_v0, %v1945_v27  ;;  %v1944_v41 = vld [vmem:[%s7052_s8 + $0xa0] sm:$0xff]  ;;  %v1946_v43 = vld [vmem:[%s7052_s8 + $0xb0] sm:$0xff]  ;;  %v1949_v16 = vld [vmem:[%s7052_s8 + $0xc8] sm:$0xff] }
 0x560   :  { %v1951_v30 = vld [vmem:[%s7052_s8 + $0xd8] sm:$0xff] }
 0x561   :  { %1873 = vadd.xlane.f32.xlu1 %v1872_v9  ;;  %v1875_v18 = vadd.f32 %v1871_v36, %v1870_v52  ;;  %v4439_v52 = vpack.c.bf16 %v1946_v43, %v1944_v41  ;;  %v4441_v9 = vpack.c.bf16 %v1951_v30, %v1949_v16  ;;  %v1950_v36 = vld [vmem:[%s7052_s8 + $0xd0] sm:$0xff] }
 0x563   :  { %1864 = vadd.xlane.f32.xlu0 %v1863_v40  ;;  %v1948_v40 = vld [vmem:[%s7052_s8 + $0xc0] sm:$0xff] }
 0x567   :  { %1876 = vadd.xlane.f32.xlu0 %v1875_v18  ;;  %v4443_v18 = vpack.c.bf16 %v1950_v36, %v1948_v40 }
 0x57d   :  { %1909 = vperm.xlu0 %4644, %v5060_v59   ;;  %v1929_v59 = vld [vmem:[%s7052_s8 + $0x28] sm:$0xff] }
 0x57e   :  { %v4421_v11 = vpack.c.bf16 %v1931_v8, %v1929_v59 }
 0x580   :  { %4422 = vmatprep.subr.bf16.mxu0 %v4421_v11  ;;  %4454 = vmatprep.subr.bf16.mxu1 %v4421_v11 }
 0x581   :  { %4424 = vmatpush1.bf16.msra.mxu0 %v4423_v34  ;;  %4456 = vmatpush1.bf16.msra.mxu1 %v4423_v34 }
 0x582   :  { %4426 = vmatprep.subr.bf16.mxu0 %v4425_v23  ;;  %4458 = vmatprep.subr.bf16.mxu1 %v4425_v23 }
 0x585   :  { %4428 = vmatpush1.bf16.msra.mxu0 %v4427_v39  ;;  %4460 = vmatpush1.bf16.msra.mxu1 %v4427_v39 }
 0x586   :  { %4430 = vmatprep.subr.bf16.mxu0 %v4429_v25  ;;  %4462 = vmatprep.subr.bf16.mxu1 %v4429_v25  ;;  %v1952_v25 = vld [vmem:[%s7052_s8 + $0xe0] sm:$0xff] }
 0x587   :  { %v4447_v20 = vpack.c.bf16 %v1954_v47, %v1952_v25 }
 0x589   :  { %4432 = vmatpush1.bf16.msra.mxu0 %v4431_v46  ;;  %4464 = vmatpush1.bf16.msra.mxu1 %v4431_v46 }
 0x58a   :  { %4434 = vmatprep.subr.bf16.mxu0 %v4433_v48  ;;  %4466 = vmatprep.subr.bf16.mxu1 %v4433_v48 }
 0x58d   :  { %4436 = vmatpush1.bf16.msra.mxu0 %v4435_v7  ;;  %4468 = vmatpush1.bf16.msra.mxu1 %v4435_v7 }
 0x58e   :  { %4438 = vmatprep.subr.bf16.mxu0 %v4437_v15  ;;  %4470 = vmatprep.subr.bf16.mxu1 %v4437_v15 }
 0x591   :  { %4440 = vmatpush1.bf16.msra.mxu0 %v4439_v52  ;;  %4472 = vmatpush1.bf16.msra.mxu1 %v4439_v52 }
 0x592   :  { %4442 = vmatprep.subr.bf16.mxu0 %v4441_v9  ;;  %4474 = vmatprep.subr.bf16.mxu1 %v4441_v9 }
 0x595   :  { %4444 = vmatpush1.bf16.msra.mxu0 %v4443_v18  ;;  %4476 = vmatpush1.bf16.msra.mxu1 %v4443_v18 }
 0x5ec   :  { %v1862_v22 = vpop.xlane.xlu0 %1861 }
 0x5ed   :  { %v1866_v12 = vmul.f32 0.0078125, %v1862_v22 }
 0x5ee   :  { %v1874_v33 = vpop.xlane.xlu1 %1873 }
 0x5ef   :  { %v1878_v37 = vmul.f32 0.0078125, %v1874_v33  ;;  %v1880_v38 = vmul.f32 %v1866_v12, %v1866_v12  ;;  %v1890_v59 = vsub.f32 %v5528_v58, %v1866_v12  ;;  %v1891_v8 = vsub.f32 %v5530_v63, %v1866_v12  ;;  %v5642_v58 = vld [vmem:[%s7048_s5] sm:$0xff] }
 0x5f0   :  { %v1865_v13 = vpop.xlane.xlu0 %1864 }
 0x5f1   :  { %v1882_v11 = vsub.f32 %v1878_v37, %v1880_v38  ;;  %v1867_v28 = vmul.f32 0.0078125, %v1865_v13 }
 0x5f3   :  { %v1884_v29 = vadd.f32 1e-05, %v1882_v11  ;;  %v1892_v19 = vsub.f32 %v5534_v1, %v1867_v28  ;;  %v1893_v17 = vsub.f32 %v5538_v10, %v1867_v28  ;;  %v1881_v23 = vmul.f32 %v1867_v28, %v1867_v28  ;;  %v1953_v1 = vld [vmem:[%s7052_s8 + $0xe8] sm:$0xff]  ;;  %v1955_v10 = vld [vmem:[%s7052_s8 + $0xf8] sm:$0xff] }
 0x5f4   :  { %v1877_v34 = vpop.xlane.xlu0 %1876  ;;  %v4445_v39 = vpack.c.bf16 %v1955_v10, %v1953_v1 }
 0x5f5   :  { %4705 = vrsqrt.f32 %v1884_v29  ;;  %v1879_v31 = vmul.f32 0.0078125, %v1877_v34  ;;  %v4700_v29 = vld [vmem:[%s7053_s3 + $0x4] ss:$8 sps:$4 sm:$0xff]  }
 0x5f6   :  { %4446 = vmatprep.subr.bf16.mxu0 %v4445_v39  ;;  %4478 = vmatprep.subr.bf16.mxu1 %v4445_v39 }
 0x5f7   :  { %v1883_v35 = vsub.f32 %v1879_v31, %v1881_v23  ;;  %4448 = vmatpush1.bf16.msra.mxu0 %v4447_v20  ;;  %4480 = vmatpush1.bf16.msra.mxu1 %v4447_v20 }
 0x5f9   :  { %v1885_v24 = vadd.f32 1e-05, %v1883_v35 }
 0x5fb   :  { %4707 = vrsqrt.f32 %v1885_v24 }
 0x5fc   :  { %v1910_v48 = vpop.permute.xlu0 %1909 }
 0x5ff   :  { %v4706_v56 = vpop.eup %4705 }
 0x600   :  { %v1888_v63 = vmul.f32 %v5642_v58, %v4706_v56 }
 0x602   :  { %1896 = vperm.xlu1 %4645, %v1888_v63  }
 0x605   :  { %v4708_v21 = vpop.eup %4707 }
 0x606   :  { %v1889_v26 = vmul.f32 %v4708_v21, %v5292_v55 }
 0x608   :  { %1901 = vperm.xlu1 %4645, %v1889_v26  }
 0x60c   :  { %4646 = vset.pattern.permute.xlu1 %v7061_v49 }
 0x60d   :  { %1913 = vperm.xlu1 %4646, %v5292_v55  }
 0x681   :  { %v1897_v46 = vpop.permute.xlu1 %1896 }
 0x682   :  { %v1904_v50 = vmul.f32 %v1897_v46, %v1890_v59  ;;  %v1905_v51 = vmul.f32 %v1897_v46, %v1891_v8 }
 0x684   :  { %v1916_v27 = vadd.f32 %v1910_v48, %v1904_v50  ;;  %v1917_v0 = vadd.f32 %v1910_v48, %v1905_v51 }
 0x686   :  { %v1920_v7 = vmax.f32 %v1916_v27, 0.0  ;;  %v1921_v15 = vmax.f32 %v1917_v0, 0.0 }
 0x687   :  { %v1902_v41 = vpop.permute.xlu1 %1901 }
 0x688   :  { %2021 = vmatmul.mubr.f32.vlgmr.msra.gmra.mrb[20].mxu0 %v1920_v7  ;;  %2102 = vmatmul.mubr.f32.vlgmr.msra.gmra.mrb[16].mxu1 %v1921_v15  ;;  %v1906_v43 = vmul.f32 %v1902_v41, %v1892_v19  ;;  %v1907_v16 = vmul.f32 %v1902_v41, %v1893_v17 }
 0x689   :  { %2026 = vmatprep.mubr.f32.mxu0 %v7059_v57  ;;  %2107 = vmatprep.mubr.f32.mxu1 %v7059_v57 }
 0x68c   :  { %v1914_v30 = vpop.permute.xlu1 %1913 }
 0x68d   :  { %v1918_v52 = vadd.f32 %v1914_v30, %v1906_v43  ;;  %v1919_v55 = vadd.f32 %v1914_v30, %v1907_v16 }
 0x68f   :  { %v1922_v9 = vmax.f32 %v1918_v52, 0.0  ;;  %v1923_v40 = vmax.f32 %v1919_v55, 0.0 }
 0x691   :  { %2027 = vmatmul.mubr.f32.gmra.mrb[22].mxu0 %v1922_v9  ;;  %2108 = vmatmul.mubr.f32.gmra.mrb[18].mxu1 %v1923_v40 }
 0x692   :  { %2638 = vmatprep.mubr.f32.mxu1 %v7059_v57  ;;  %4182 = vmatprep.mubr.msk.bf16.mxu0 %vm1798_vm10, %v4700_v29 }
 0x75b   :  { %v2022_v36 = vpop.f32.mrb[20].mxu0  ;;  %v2103_v18 = vpop.f32.mrb[16].mxu1 }
 0x75c   :  { %v2024_v22 = vpop.f32.mrb[21].mxu0  ;;  %v2105_v12 = vpop.f32.mrb[17].mxu1 }
 0x764   :  { %v2028_v33 = vpop.f32.mrb[22].mxu0  ;;  %v2109_v37 = vpop.f32.mrb[18].mxu1 }
 0x765   :  { %v2121_v38 = vpack.c.bf16 %v2028_v33, %v2022_v36  ;;  %v2245_v59 = vpack.c.bf16 %v2109_v37, %v2103_v18  ;;  %v2030_v8 = vpop.f32.mrb[23].mxu0  ;;  %v2111_v13 = vpop.f32.mrb[19].mxu1 }
 0x766   :  { %v2128_v11 = vpack.c.bf16 %v2030_v8, %v2024_v22  ;;  %v2252_v28 = vpack.c.bf16 %v2111_v13, %v2105_v12 }
 0x767   :  { %2255 = vrot.lane.b32.xlu1 %v2245_v59, %s4743_s30  ;;  %2399 = vmatprep.subr.bf16.mxu0 %v2245_v59 }
 0x768   :  { %2272 = vrot.lane.b32.xlu0 %v2252_v28, %s4742_s29  ;;  %2400 = vmatpush1.bf16.msra.mxu0 %v2121_v38 }
 0x76b   :  { %2131 = vrot.lane.b32.xlu1 %v2121_v38, %s4743_s30 }
 0x76c   :  { %2148 = vrot.lane.b32.xlu0 %v2128_v11, %s4742_s29 }
 0x76f   :  { %2270 = vrot.lane.b32.xlu1 %v2245_v59, %s4742_s29 }
 0x770   :  { %2287 = vrot.lane.b32.xlu0 %v2252_v28, %s4753_s6 }
 0x773   :  { %2146 = vrot.lane.b32.xlu1 %v2121_v38, %s4742_s29 }
 0x774   :  { %2163 = vrot.lane.b32.xlu0 %v2128_v11, %s4753_s6 }
 0x777   :  { %2285 = vrot.lane.b32.xlu1 %v2245_v59, %s4753_s6 }
 0x778   :  { %2302 = vrot.lane.b32.xlu0 %v2252_v28, %s4754_s27 }
 0x77b   :  { %2161 = vrot.lane.b32.xlu1 %v2121_v38, %s4753_s6 }
 0x77c   :  { %2178 = vrot.lane.b32.xlu0 %v2128_v11, %s4754_s27 }
 0x77f   :  { %2300 = vrot.lane.b32.xlu1 %v2245_v59, %s4754_s27 }
 0x780   :  { %2317 = vrot.lane.b32.xlu0 %v2252_v28, %s4755_s28 }
 0x783   :  { %2176 = vrot.lane.b32.xlu1 %v2121_v38, %s4754_s27 }
 0x784   :  { %2193 = vrot.lane.b32.xlu0 %v2128_v11, %s4755_s28 }
 0x787   :  { %2315 = vrot.lane.b32.xlu1 %v2245_v59, %s4755_s28 }
 0x788   :  { %2332 = vrot.lane.b32.xlu0 %v2252_v28, %s4756_s16 }
 0x78b   :  { %2257 = vrot.lane.b32.xlu1 %v2252_v28, %s4743_s30 }
 0x78c   :  { %2208 = vrot.lane.b32.xlu0 %v2128_v11, %s4756_s16 }
 0x78f   :  { %2133 = vrot.lane.b32.xlu1 %v2128_v11, %s4743_s30 }
 0x790   :  { %2347 = vrot.lane.b32.xlu0 %v2252_v28, %s4757_s17 }
 0x793   :  { %2191 = vrot.lane.b32.xlu1 %v2121_v38, %s4755_s28 }
 0x794   :  { %2223 = vrot.lane.b32.xlu0 %v2128_v11, %s4757_s17 }
 0x797   :  { %2330 = vrot.lane.b32.xlu1 %v2245_v59, %s4756_s16 }
 0x798   :  { %2362 = vrot.lane.b32.xlu0 %v2252_v28, %s4758_s19 }
 0x79b   :  { %2206 = vrot.lane.b32.xlu1 %v2121_v38, %s4756_s16 }
 0x79c   :  { %2238 = vrot.lane.b32.xlu0 %v2128_v11, %s4758_s19 }
 0x79f   :  { %2345 = vrot.lane.b32.xlu1 %v2245_v59, %s4757_s17 }
 0x7a3   :  { %2221 = vrot.lane.b32.xlu1 %v2121_v38, %s4757_s17 }
 0x7a7   :  { %2360 = vrot.lane.b32.xlu1 %v2245_v59, %s4758_s19 }
 0x7ab   :  { %2236 = vrot.lane.b32.xlu1 %v2121_v38, %s4758_s19 }
 0x7d9   :  { %v2256_v19 = vpop.permute.xlu1 %2255 }
 0x7da   :  { %v2273_v17 = vpop.permute.xlu0 %2272 }
 0x7dd   :  { %v2132_v34 = vpop.permute.xlu1 %2131 }
 0x7de   :  { %v2149_v23 = vpop.permute.xlu0 %2148 }
 0x7e1   :  { %v2271_v31 = vpop.permute.xlu1 %2270 }
 0x7e2   :  { %v2288_v35 = vpop.permute.xlu0 %2287  ;;  %v2274_v0 = vsel %vm119_vm1, %v2271_v31, %v2273_v17 }
 0x7e5   :  { %v2147_v24 = vpop.permute.xlu1 %2146 }
 0x7e6   :  { %v2164_v56 = vpop.permute.xlu0 %2163  ;;  %v2150_v41 = vsel %vm119_vm1, %v2147_v24, %v2149_v23 }
 0x7e9   :  { %v2286_v63 = vpop.permute.xlu1 %2285 }
 0x7ea   :  { %v2303_v1 = vpop.permute.xlu0 %2302  ;;  %v2289_v43 = vsel %vm1561_vm11, %v2286_v63, %v2288_v35 }
 0x7ed   :  { %v2162_v10 = vpop.permute.xlu1 %2161 }
 0x7ee   :  { %v2179_v39 = vpop.permute.xlu0 %2178  ;;  %v2165_v30 = vsel %vm1561_vm11, %v2162_v10, %v2164_v56 }
 0x7f1   :  { %v2301_v25 = vpop.permute.xlu1 %2300 }
 0x7f2   :  { %v2318_v47 = vpop.permute.xlu0 %2317  ;;  %v2304_v55 = vsel %vm1577_vm12, %v2301_v25, %v2303_v1 }
 0x7f5   :  { %v2177_v20 = vpop.permute.xlu1 %2176 }
 0x7f6   :  { %v2194_v21 = vpop.permute.xlu0 %2193  ;;  %v2180_v40 = vsel %vm1577_vm12, %v2177_v20, %v2179_v39 }
 0x7f9   :  { %v2316_v26 = vpop.permute.xlu1 %2315 }
 0x7fa   :  { %v2333_v50 = vpop.permute.xlu0 %2332  ;;  %v2319_v36 = vsel %vm1593_vm13, %v2316_v26, %v2318_v47 }
 0x7fd   :  { %v2258_v46 = vpop.permute.xlu1 %2257 }
 0x7fe   :  { %v2259_v48 = vsel %vm87_vm2, %v2256_v19, %v2258_v46  ;;  %v2209_v7 = vpop.permute.xlu0 %2208 }
 0x7ff   :  { %2401 = vmatprep.subr.bf16.mxu0 %v2259_v48 }
 0x801   :  { %v2134_v51 = vpop.permute.xlu1 %2133 }
 0x802   :  { %v2135_v27 = vsel %vm87_vm2, %v2132_v34, %v2134_v51  ;;  %v2348_v52 = vpop.permute.xlu0 %2347  ;;  %v4698_v34 = vld [vmem:[%s7053_s3] ss:$8 sps:$4 sm:$0xff]  }
 0x803   :  { %2402 = vmatpush1.bf16.msra.mxu0 %v2135_v27  ;;  %v2511_v51 = vld [vmem:[%s7054_s7 + $0x8] sm:$0xff] }
 0x804   :  { %2403 = vmatprep.subr.bf16.mxu0 %v2274_v0  ;;  %v2515_v27 = vld [vmem:[%s7054_s7 + $0x28] sm:$0xff]  ;;  %v2513_v0 = vld [vmem:[%s7054_s7 + $0x18] sm:$0xff] }
 0x805   :  { %v2192_v15 = vpop.permute.xlu1 %2191 }
 0x806   :  { %v2224_v18 = vpop.permute.xlu0 %2223  ;;  %v2195_v12 = vsel %vm1593_vm13, %v2192_v15, %v2194_v21  ;;  %v2517_v15 = vld [vmem:[%s7054_s7 + $0x38] sm:$0xff] }
 0x807   :  { %2404 = vmatpush1.bf16.msra.mxu0 %v2150_v41  ;;  %v2510_v41 = vld [vmem:[%s7054_s7] sm:$0xff] }
 0x808   :  { %2405 = vmatprep.subr.bf16.mxu0 %v2289_v43  ;;  %v2514_v43 = vld [vmem:[%s7054_s7 + $0x20] sm:$0xff] }
 0x809   :  { %v2331_v16 = vpop.permute.xlu1 %2330 }
 0x80a   :  { %v2334_v33 = vsel %vm1609_vm14, %v2331_v16, %v2333_v50  ;;  %v2363_v59 = vpop.permute.xlu0 %2362  ;;  %v4762_v50 = vmov 4   ;;  %v5769_v16 = vpack.c.bf16 %v2517_v15, %v2513_v0  ;;  %v2536_v15 = vld [vmem:[%s7054_s7 + $0xd0] sm:$0xff] }
 0x80b   :  { %2406 = vmatpush1.bf16.msra.mxu0 %v2165_v30  ;;  %4647 = vset.pattern.permute.xlu0 %v4762_v50  ;;  %v5771_v30 = vpack.c.bf16 %v2514_v43, %v2510_v41  ;;  %v2540_v41 = vld [vmem:[%s7054_s7 + $0xf0] sm:$0xff]  ;;  %v2543_v43 = vld [vmem:[%s7054_s7 + $0x108] sm:$0xff] }
 0x80c   :  { %2407 = vmatprep.subr.bf16.mxu0 %v2304_v55  ;;  %v2516_v55 = vld [vmem:[%s7054_s7 + $0x30] sm:$0xff] }
 0x80d   :  { %v2207_v9 = vpop.permute.xlu1 %2206 }
 0x80e   :  { %v2210_v38 = vsel %vm1609_vm14, %v2207_v9, %v2209_v7  ;;  %v2239_v29 = vpop.permute.xlu0 %2238  ;;  %v5758_v7 = vpack.c.bf16 %v2515_v27, %v2511_v51  ;;  %v2519_v9 = vld [vmem:[%s7054_s7 + $0x48] sm:$0xff]  ;;  %v2534_v51 = vld [vmem:[%s7054_s7 + $0xc0] sm:$0xff] }
 0x80f   :  { %2408 = vmatpush1.bf16.msra.mxu0 %v2180_v40  ;;  %v2538_v27 = vld [vmem:[%s7054_s7 + $0xe0] sm:$0xff] }
 0x810   :  { %2409 = vmatprep.subr.bf16.mxu0 %v2319_v36  ;;  %4482 = vmatprep.subr.bf16.mxu1 %v5758_v7  ;;  %v2523_v36 = vld [vmem:[%s7054_s7 + $0x68] sm:$0xff] }
 0x811   :  { %v2346_v22 = vpop.permute.xlu1 %2345  ;;  %4484 = vmatpush1.bf16.msra.mxu1 %v5771_v30 }
 0x812   :  { %v2349_v8 = vsel %vm1625_vm15, %v2346_v22, %v2348_v52  ;;  %v2512_v52 = vld [vmem:[%s7054_s7 + $0x10] sm:$0xff]  ;;  %v2525_v22 = vld [vmem:[%s7054_s7 + $0x78] sm:$0xff] }
 0x813   :  { %2410 = vmatpush1.bf16.msra.mxu0 %v2195_v12  ;;  %v5783_v40 = vpack.c.bf16 %v2516_v55, %v2512_v52  ;;  %v5796_v12 = vpack.c.bf16 %v2523_v36, %v2519_v9  ;;  %v2547_v52 = vld [vmem:[%s7054_s7 + $0x128] sm:$0xff]  ;;  %v2545_v55 = vld [vmem:[%s7054_s7 + $0x118] sm:$0xff]  ;;  %v5896_v36 = vpack.c.bf16 %v2538_v27, %v2534_v51  ;;  %v2556_v51 = vld [vmem:[%s7054_s7 + $0x170] sm:$0xff] }
 0x814   :  { %2411 = vmatprep.subr.bf16.mxu0 %v2334_v33  ;;  %v2549_v9 = vld [vmem:[%s7054_s7 + $0x138] sm:$0xff]  ;;  %v2559_v27 = vld [vmem:[%s7054_s7 + $0x188] sm:$0xff] }
 0x815   :  { %v2222_v37 = vpop.permute.xlu1 %2221  ;;  %4486 = vmatprep.subr.bf16.mxu1 %v5796_v12 }
 0x816   :  { %v2225_v11 = vsel %vm1625_vm15, %v2222_v37, %v2224_v18  ;;  %v2521_v18 = vld [vmem:[%s7054_s7 + $0x58] sm:$0xff]  ;;  %v2518_v37 = vld [vmem:[%s7054_s7 + $0x40] sm:$0xff] }
 0x817   :  { %2412 = vmatpush1.bf16.msra.mxu0 %v2210_v38  ;;  %v5798_v33 = vpack.c.bf16 %v2525_v22, %v2521_v18  ;;  %v2522_v38 = vld [vmem:[%s7054_s7 + $0x60] sm:$0xff]  ;;  %v5900_v18 = vpack.c.bf16 %v2540_v41, %v2536_v15  ;;  %v5902_v22 = vpack.c.bf16 %v2547_v52, %v2543_v43  ;;  %v2563_v15 = vld [vmem:[%s7054_s7 + $0x1a8] sm:$0xff]  ;;  %v2561_v41 = vld [vmem:[%s7054_s7 + $0x198] sm:$0xff] }
 0x818   :  { %2413 = vmatprep.subr.bf16.mxu0 %v2349_v8  ;;  %v5810_v8 = vpack.c.bf16 %v2522_v38, %v2518_v37  ;;  %v2542_v37 = vld [vmem:[%s7054_s7 + $0x100] sm:$0xff]  ;;  %v2565_v43 = vld [vmem:[%s7054_s7 + $0x1b8] sm:$0xff] }
 0x819   :  { %v2361_v13 = vpop.permute.xlu1 %2360  ;;  %v2546_v38 = vld [vmem:[%s7054_s7 + $0x120] sm:$0xff] }
 0x81a   :  { %v2364_v28 = vsel %vm1641_vm0, %v2361_v13, %v2363_v59  ;;  %v2520_v59 = vld [vmem:[%s7054_s7 + $0x50] sm:$0xff]  ;;  %4488 = vmatpush1.bf16.msra.mxu1 %v5810_v8 }
 0x81b   :  { %2414 = vmatpush1.bf16.msra.mxu0 %v2225_v11  ;;  %v2524_v13 = vld [vmem:[%s7054_s7 + $0x70] sm:$0xff]  ;;  %v2527_v11 = vld [vmem:[%s7054_s7 + $0x88] sm:$0xff] }
 0x81c   :  { %2415 = vmatprep.subr.bf16.mxu0 %v2364_v28  ;;  %v2531_v28 = vld [vmem:[%s7054_s7 + $0xa8] sm:$0xff] }
 0x81d   :  { %v2237_v19 = vpop.permute.xlu1 %2236 }
 0x81e   :  { %v2240_v17 = vsel %vm1641_vm0, %v2237_v19, %v2239_v29  ;;  %v5823_v29 = vpack.c.bf16 %v2524_v13, %v2520_v59  ;;  %v5825_v19 = vpack.c.bf16 %v2531_v28, %v2527_v11  ;;  %v2544_v59 = vld [vmem:[%s7054_s7 + $0x110] sm:$0xff]  ;;  %v5914_v13 = vpack.c.bf16 %v2549_v9, %v2545_v55  ;;  %v2551_v28 = vld [vmem:[%s7054_s7 + $0x148] sm:$0xff] }
 0x81f   :  { %2416 = vmatpush1.bf16.msra.mxu0 %v2240_v17  ;;  %v2529_v17 = vld [vmem:[%s7054_s7 + $0x98] sm:$0xff]  ;;  %v2548_v11 = vld [vmem:[%s7054_s7 + $0x130] sm:$0xff]  ;;  %v5974_v9 = vpack.c.bf16 %v2563_v15, %v2559_v27 }
 0x820   :  { %4514 = vmatprep.subr.bf16.mxu0 %v5769_v16  ;;  %4490 = vmatprep.subr.bf16.mxu1 %v5825_v19 }
 0x822   :  { %2432 = vmatmul.mubr.bf16.vlgmr.msra.gmra.mrb[24].mxu0 %v4698_v34  ;;  %v2533_v34 = vld [vmem:[%s7054_s7 + $0xb8] sm:$0xff] }
 0x823   :  { %2715 = vmatprep.mubr.f32.mxu0 %v7059_v57  ;;  %4516 = vmatpush1.bf16.msra.mxu0 %v5783_v40 }
 0x824   :  { %4518 = vmatprep.subr.bf16.mxu0 %v5798_v33 }
 0x827   :  { %4520 = vmatpush1.bf16.msra.mxu0 %v5823_v29 }
 0x8f5   :  { %v5719_v23 = vpop.f32.mrb[24].mxu0 }
 0x8f6   :  { %v2442_v31 = vmul.f32 %v5719_v23, %v5522_v53  ;;  %v5723_v35 = vpop.f32.mrb[25].mxu0 }
 0x8f7   :  { %v2443_v24 = vmul.f32 %v5723_v35, %v5526_v54  ;;  %v5727_v56 = vpop.f32.mrb[26].mxu0 }
 0x8f8   :  { %v2454_v63 = vmul.f32 %v2442_v31, %v5719_v23  ;;  %v2444_v1 = vmul.f32 %v5727_v56, %v5522_v53  ;;  %v5732_v10 = vpop.f32.mrb[27].mxu0  ;;  %v4761_v53 = vmov 5  }
 0x8f9   :  { %v2455_v39 = vmul.f32 %v2443_v24, %v5723_v35  ;;  %v2445_v25 = vmul.f32 %v5732_v10, %v5526_v54  ;;  %v2446_v47 = vadd.f32 %v2443_v24, %v2442_v31  ;;  %4648 = vset.pattern.permute.xlu1 %v4761_v53  ;;  %v5745_v54 = vld [vmem:[%s7048_s5 + $0x8] sm:$0xff]  ;;  %v2526_v31 = vld [vmem:[%s7054_s7 + $0x80] sm:$0xff]  ;;  %v5836_v24 = vpack.c.bf16 %v2533_v34, %v2529_v17  ;;  %v2553_v34 = vld [vmem:[%s7054_s7 + $0x158] sm:$0xff] }
 0x8fa   :  { %v2456_v20 = vmul.f32 %v2444_v1, %v5727_v56  ;;  %v2555_v17 = vld [vmem:[%s7054_s7 + $0x168] sm:$0xff] }
 0x8fb   :  { %v2457_v21 = vmul.f32 %v2445_v25, %v5732_v10  ;;  %2447 = vadd.xlane.f32.xlu1 %v2446_v47  ;;  %v2458_v26 = vadd.f32 %v2455_v39, %v2454_v63  ;;  %v2449_v46 = vadd.f32 %v2445_v25, %v2444_v1  ;;  %v2530_v63 = vld [vmem:[%s7054_s7 + $0xa0] sm:$0xff]  ;;  %v2528_v1 = vld [vmem:[%s7054_s7 + $0x90] sm:$0xff]  ;;  %v2535_v47 = vld [vmem:[%s7054_s7 + $0xc8] sm:$0xff]  ;;  %4522 = vmatprep.subr.bf16.mxu0 %v5836_v24 }
 0x8fc   :  { %v2532_v39 = vld [vmem:[%s7054_s7 + $0xb0] sm:$0xff]  ;;  %v5848_v25 = vpack.c.bf16 %v2530_v63, %v2526_v31  ;;  %v2557_v31 = vld [vmem:[%s7054_s7 + $0x178] sm:$0xff]  ;;  %v5932_v63 = vpack.c.bf16 %v2546_v38, %v2542_v37  ;;  %v2558_v37 = vld [vmem:[%s7054_s7 + $0x180] sm:$0xff] }
 0x8fd   :  { %2459 = vadd.xlane.f32.xlu0 %v2458_v26  ;;  %v2461_v48 = vadd.f32 %v2457_v21, %v2456_v20  ;;  %v2539_v20 = vld [vmem:[%s7054_s7 + $0xe8] sm:$0xff]  ;;  %v2537_v21 = vld [vmem:[%s7054_s7 + $0xd8] sm:$0xff]  ;;  %v5861_v26 = vpack.c.bf16 %v2532_v39, %v2528_v1  ;;  %v5936_v1 = vpack.c.bf16 %v2548_v11, %v2544_v59  ;;  %v5938_v39 = vpack.c.bf16 %v2555_v17, %v2551_v28  ;;  %v2562_v38 = vld [vmem:[%s7054_s7 + $0x1a0] sm:$0xff] }
 0x8fe   :  { %4492 = vmatpush1.bf16.msra.mxu1 %v5848_v25  ;;  %v5983_v59 = vpack.c.bf16 %v2565_v43, %v2561_v41  ;;  %v2560_v11 = vld [vmem:[%s7054_s7 + $0x190] sm:$0xff]  ;;  %v5992_v17 = vpack.c.bf16 %v2562_v38, %v2558_v37 }
 0x8ff   :  { %2462 = vadd.xlane.f32.xlu1 %v2461_v48  ;;  %v2541_v48 = vld [vmem:[%s7054_s7 + $0xf8] sm:$0xff]  ;;  %4524 = vmatpush1.bf16.msra.mxu0 %v5861_v26  ;;  %v2564_v28 = vld [vmem:[%s7054_s7 + $0x1b0] sm:$0xff] }
 0x900   :  { %v5875_v0 = vpack.c.bf16 %v2541_v48, %v2537_v21  ;;  %v2552_v21 = vld [vmem:[%s7054_s7 + $0x150] sm:$0xff]  ;;  %v5950_v48 = vpack.c.bf16 %v2557_v31, %v2553_v34  ;;  %v5996_v34 = vpack.c.bf16 %v2564_v28, %v2560_v11 }
 0x901   :  { %2450 = vadd.xlane.f32.xlu0 %v2449_v46  ;;  %v5863_v46 = vpack.c.bf16 %v2539_v20, %v2535_v47  ;;  %v2550_v47 = vld [vmem:[%s7054_s7 + $0x140] sm:$0xff]  ;;  %v5972_v55 = vpack.c.bf16 %v2556_v51, %v2552_v21 }
 0x902   :  { %4526 = vmatprep.subr.bf16.mxu0 %v5875_v0  ;;  %v2554_v20 = vld [vmem:[%s7054_s7 + $0x160] sm:$0xff] }
 0x903   :  { %4494 = vmatprep.subr.bf16.mxu1 %v5863_v46  ;;  %4528 = vmatpush1.bf16.msra.mxu0 %v5900_v18  ;;  %v5968_v52 = vpack.c.bf16 %v2554_v20, %v2550_v47 }
 0x904   :  { %4496 = vmatpush1.bf16.msra.mxu1 %v5896_v36  ;;  %4530 = vmatprep.subr.bf16.mxu0 %v5914_v13 }
 0x905   :  { %4498 = vmatprep.subr.bf16.mxu1 %v5902_v22 }
 0x907   :  { %4532 = vmatpush1.bf16.msra.mxu0 %v5936_v1 }
 0x908   :  { %4500 = vmatpush1.bf16.msra.mxu1 %v5932_v63  ;;  %4534 = vmatprep.subr.bf16.mxu0 %v5950_v48 }
 0x909   :  { %4502 = vmatprep.subr.bf16.mxu1 %v5938_v39 }
 0x90b   :  { %4536 = vmatpush1.bf16.msra.mxu0 %v5972_v55 }
 0x90c   :  { %4504 = vmatpush1.bf16.msra.mxu1 %v5968_v52  ;;  %4538 = vmatprep.subr.bf16.mxu0 %v5983_v59 }
 0x90d   :  { %4506 = vmatprep.subr.bf16.mxu1 %v5974_v9 }
 0x90f   :  { %4540 = vmatpush1.bf16.msra.mxu0 %v5996_v34 }
 0x910   :  { %2495 = vperm.xlu1 %4648, %v5642_v58   ;;  %4508 = vmatpush1.bf16.msra.mxu1 %v5992_v17 }
 0x914   :  { %2499 = vperm.xlu1 %4648, %v5745_v54  }
 0x918   :  { %4649 = vset.pattern.permute.xlu1 %v4762_v50 }
 0x988   :  { %v2448_v31 = vpop.xlane.xlu1 %2447 }
 0x989   :  { %v6001_v47 = vmul.f32 0.0078125, %v2448_v31 }
 0x98a   :  { %v2460_v20 = vpop.xlane.xlu0 %2459 }
 0x98b   :  { %v2464_v21 = vmul.f32 0.0078125, %v2460_v20  ;;  %v2466_v51 = vmul.f32 %v6001_v47, %v6001_v47  ;;  %v2477_v15 = vsub.f32 %v5723_v35, %v6001_v47 }
 0x98c   :  { %v2463_v43 = vpop.xlane.xlu1 %2462 }
 0x98d   :  { %v2468_v41 = vsub.f32 %v2464_v21, %v2466_v51  ;;  %v2465_v28 = vmul.f32 0.0078125, %v2463_v43  ;;  %v2571_v43 = vld [vmem:[%s7054_s7 + $0x1e8] sm:$0xff] }
 0x98e   :  { %v2451_v37 = vpop.xlane.xlu0 %2450 }
 0x98f   :  { %v2470_v38 = vadd.f32 1e-05, %v2468_v41  ;;  %v6009_v11 = vmul.f32 0.0078125, %v2451_v37  ;;  %v2567_v41 = vld [vmem:[%s7054_s7 + $0x1c8] sm:$0xff]  ;;  %v2569_v37 = vld [vmem:[%s7054_s7 + $0x1d8] sm:$0xff] }
 0x991   :  { %4709 = vrsqrt.f32 %v2470_v38  ;;  %v2467_v31 = vmul.f32 %v6009_v11, %v6009_v11  ;;  %v2478_v20 = vsub.f32 %v5727_v56, %v6009_v11  ;;  %v2479_v57 = vsub.f32 %v5732_v10, %v6009_v11 }
 0x992   :  { %v6027_v38 = vpack.c.bf16 %v2571_v43, %v2567_v41 }
 0x993   :  { %v2469_v27 = vsub.f32 %v2465_v28, %v2467_v31 }
 0x994   :  { %4510 = vmatprep.subr.bf16.mxu1 %v6027_v38 }
 0x995   :  { %v2471_v49 = vadd.f32 1e-05, %v2469_v27  ;;  %v2570_v27 = vld [vmem:[%s7054_s7 + $0x1e0] sm:$0xff] }
 0x997   :  { %4711 = vrsqrt.f32 %v2471_v49  ;;  %v2573_v49 = vld [vmem:[%s7054_s7 + $0x1f8] sm:$0xff] }
 0x998   :  { %v6038_v28 = vpack.c.bf16 %v2573_v49, %v2569_v37  ;;  %v2899_v49 = vld [vmem:[%s7055_s4] sm:$0xff] }
 0x99a   :  { %4542 = vmatprep.subr.bf16.mxu0 %v6038_v28 }
 0x99b   :  { %v4710_v21 = vpop.eup %4709 }
 0x99c   :  { %v2474_v51 = vmul.f32 %v5642_v58, %v4710_v21  ;;  %v2566_v58 = vld [vmem:[%s7054_s7 + $0x1c0] sm:$0xff]  ;;  %v2568_v21 = vld [vmem:[%s7054_s7 + $0x1d0] sm:$0xff] }
 0x99d   :  { %v6040_v31 = vpack.c.bf16 %v2570_v27, %v2566_v58 }
 0x99e   :  { %2482 = vperm.xlu0 %4647, %v2474_v51   ;;  %v2572_v51 = vld [vmem:[%s7054_s7 + $0x1f0] sm:$0xff] }
 0x99f   :  { %v6049_v41 = vpack.c.bf16 %v2572_v51, %v2568_v21  ;;  %4512 = vmatpush1.bf16.msra.mxu1 %v6040_v31  ;;  %v7093_v21 = vsub.f32 %v5719_v23, %v6001_v47  ;;  %v7094_v23 = vmov 0.0  }
 0x9a0   :  { %4546 = vmatprep.subr.bf16.mxu1 %v5758_v7  ;;  %v7092_v7 = vmov 3  }
 0x9a1   :  { %v4712_v43 = vpop.eup %4711  ;;  %4544 = vmatpush1.bf16.msra.mxu0 %v6049_v41 }
 0x9a2   :  { %v2475_v37 = vmul.f32 %v5745_v54, %v4712_v43  ;;  %4578 = vmatprep.subr.bf16.mxu0 %v5769_v16  ;;  %4653 = vset.pattern.permute.xlu0 %v4759_v32  ;;  %v2900_v54 = vld [vmem:[%s7055_s4 + $0x8] sm:$0xff]  ;;  %v4764_v16 = vmov 7   ;;  %s7101_s4 = smov 78  }
 0x9a3   :  { %2995 = vperm.xlu0 %4653, %v2900_v54  }
 0x9a4   :  { %2487 = vperm.xlu1 %4649, %v2475_v37  }
 0x9a7   :  { %4655 = vset.pattern.permute.xlu0 %v4762_v50 }
 0x9a8   :  { %4650 = vset.pattern.permute.xlu1 %v4750_v14  ;;  %3109 = vperm.xlu0 %4655, %v2899_v49   ;;  %v4763_v14 = vmov 8  }
 0x9a9   :  { %2909 = vperm.xlu1 %4650, %v2899_v49  }
 0x9ac   :  { %4658 = vset.pattern.permute.xlu0 %v4761_v53 }
 0x9ad   :  { %2914 = vperm.xlu1 %4650, %v2900_v54   ;;  %3172 = vperm.xlu0 %4658, %v2900_v54  }
 0x9b1   :  { %4651 = vset.pattern.permute.xlu1 %v4751_v60  ;;  %4662 = vset.pattern.permute.xlu0 %v4763_v14  ;;  %v4765_v60 = vmov 6  }
 0x9b2   :  { %2932 = vperm.xlu1 %4651, %v2899_v49   ;;  %3349 = vperm.xlu0 %4662, %v2900_v54  }
 0x9b6   :  { %2936 = vperm.xlu1 %4651, %v2900_v54   ;;  %4663 = vset.pattern.permute.xlu0 %v4764_v16 }
 0x9b7   :  { %3286 = vperm.xlu0 %4663, %v2899_v49  }
 0x9ba   :  { %4652 = vset.pattern.permute.xlu1 %v4759_v32  ;;  %v2496_v32 = vpop.permute.xlu1 %2495 }
 0x9bb   :  { %2991 = vperm.xlu1 %4652, %v2899_v49  }
 0x9be   :  { %v2500_v27 = vpop.permute.xlu1 %2499 }
 0x9bf   :  { %4654 = vset.pattern.permute.xlu1 %v7092_v7 }
 0x9c0   :  { %3050 = vperm.xlu1 %4654, %v2899_v49  }
 0x9c4   :  { %3054 = vperm.xlu1 %4654, %v2900_v54  }
 0x9c8   :  { %4656 = vset.pattern.permute.xlu1 %v4762_v50 }
 0x9c9   :  { %3113 = vperm.xlu1 %4656, %v2900_v54  }
 0x9cd   :  { %4657 = vset.pattern.permute.xlu1 %v4761_v53 }
 0x9ce   :  { %3168 = vperm.xlu1 %4657, %v2899_v49  }
 0x9d2   :  { %4659 = vset.pattern.permute.xlu1 %v4765_v60 }
 0x9d3   :  { %3227 = vperm.xlu1 %4659, %v2899_v49  }
 0x9d7   :  { %3231 = vperm.xlu1 %4659, %v2900_v54  }
 0x9db   :  { %4660 = vset.pattern.permute.xlu1 %v4764_v16 }
 0x9dc   :  { %3290 = vperm.xlu1 %4660, %v2900_v54  }
 0x9e0   :  { %4661 = vset.pattern.permute.xlu1 %v4763_v14 }
 0x9e1   :  { %3345 = vperm.xlu1 %4661, %v2899_v49  }
 0x9e5   :  { %4664 = vset.pattern.permute.xlu1 %v4765_v60 }
 0xa1d   :  { %v2483_v58 = vpop.permute.xlu0 %2482 }
 0xa1e   :  { %v2490_v50 = vmul.f32 %v2483_v58, %v7093_v21  ;;  %v2491_v56 = vmul.f32 %v2483_v58, %v2477_v15 }
 0xa20   :  { %v2502_v51 = vadd.f32 %v2496_v32, %v2490_v50 }
 0xa22   :  { %v2506_v43 = vmax.f32 %v2502_v51, 0.0 }
 0xa23   :  { %v2488_v53 = vpop.permute.xlu1 %2487 }
 0xa24   :  { %v2492_v37 = vmul.f32 %v2488_v53, %v2478_v20  ;;  %2639 = vmatmul.mubr.f32.vlgmr.msra.gmra.mrb[20].mxu1 %v2506_v43  ;;  %2716 = vmatmul.mubr.f32.vlgmr.msra.gmra.mrb[28].mxu0 %v2506_v43 }
 0xa25   :  { %4548 = vmatpush1.bf16.msra.mxu1 %v5771_v30  ;;  %4580 = vmatpush1.bf16.msra.mxu0 %v5783_v40  ;;  %v2503_v30 = vadd.f32 %v2496_v32, %v2491_v56  ;;  %v2493_v40 = vmul.f32 %v2488_v53, %v2479_v57 }
 0xa26   :  { %4550 = vmatprep.subr.bf16.mxu1 %v5796_v12  ;;  %4582 = vmatprep.subr.bf16.mxu0 %v5798_v33  ;;  %v2504_v49 = vadd.f32 %v2500_v27, %v2492_v37 }
 0xa27   :  { %2644 = vmatprep.mubr.f32.mxu1 %v7094_v23  ;;  %2721 = vmatprep.mubr.f32.mxu0 %v7094_v23  ;;  %v2507_v35 = vmax.f32 %v2503_v30, 0.0  ;;  %v2505_v12 = vadd.f32 %v2500_v27, %v2493_v40 }
 0xa28   :  { %v2508_v54 = vmax.f32 %v2504_v49, 0.0  ;;  %v6120_v57 = vpop.permute.xlu1 %2909 }
 0xa29   :  { %4552 = vmatpush1.bf16.msra.mxu1 %v5810_v8  ;;  %4584 = vmatpush1.bf16.msra.mxu0 %v5823_v29  ;;  %v2509_v33 = vmax.f32 %v2505_v12, 0.0 }
 0xa2a   :  { %2645 = vmatmul.mubr.f32.gmra.mrb[22].mxu1 %v2508_v54  ;;  %2722 = vmatmul.mubr.f32.gmra.mrb[30].mxu0 %v2508_v54 }
 0xa2b   :  { %4554 = vmatprep.subr.bf16.mxu1 %v5825_v19  ;;  %4586 = vmatprep.subr.bf16.mxu0 %v5836_v24 }
 0xa2c   :  { %2800 = vmatprep.mubr.f32.mxu1 %v7094_v23  ;;  %2877 = vmatprep.mubr.f32.mxu0 %v7094_v23  ;;  %v6122_v10 = vpop.permute.xlu1 %2914 }
 0xa2d   :  { %4556 = vmatpush1.bf16.msra.mxu1 %v5848_v25  ;;  %4588 = vmatpush1.bf16.msra.mxu0 %v5861_v26  ;;  %7095 = vst [vmem:[#allocation17_spill] sm:$0xff] %v6122_v10 }
 0xa2e   :  { %4558 = vmatprep.subr.bf16.mxu1 %v5863_v46  ;;  %4590 = vmatprep.subr.bf16.mxu0 %v5875_v0 }
 0xa31   :  { %4560 = vmatpush1.bf16.msra.mxu1 %v5896_v36  ;;  %4592 = vmatpush1.bf16.msra.mxu0 %v5900_v18  ;;  %v6124_v8 = vpop.permute.xlu1 %2932 }
 0xa32   :  { %4562 = vmatprep.subr.bf16.mxu1 %v5902_v22  ;;  %4594 = vmatprep.subr.bf16.mxu0 %v5914_v13 }
 0xa35   :  { %4564 = vmatpush1.bf16.msra.mxu1 %v5932_v63  ;;  %4596 = vmatpush1.bf16.msra.mxu0 %v5936_v1  ;;  %v6126_v29 = vpop.permute.xlu1 %2936  ;;  %v6150_v63 = vpop.permute.xlu0 %2995 }
 0xa36   :  { %4566 = vmatprep.subr.bf16.mxu1 %v5938_v39  ;;  %4598 = vmatprep.subr.bf16.mxu0 %v5950_v48 }
 0xa39   :  { %4568 = vmatpush1.bf16.msra.mxu1 %v5968_v52  ;;  %4600 = vmatpush1.bf16.msra.mxu0 %v5972_v55 }
 0xa3a   :  { %4570 = vmatprep.subr.bf16.mxu1 %v5974_v9  ;;  %4602 = vmatprep.subr.bf16.mxu0 %v5983_v59  ;;  %v6128_v19 = vpop.permute.xlu1 %2991 }
 0xa3d   :  { %4572 = vmatpush1.bf16.msra.mxu1 %v5992_v17  ;;  %4604 = vmatpush1.bf16.msra.mxu0 %v5996_v34  ;;  %v6172_v34 = vpop.permute.xlu0 %3109 }
 0xa3e   :  { %4574 = vmatprep.subr.bf16.mxu1 %v6027_v38  ;;  %4606 = vmatprep.subr.bf16.mxu0 %v6038_v28 }
 0xa3f   :  { %v6130_v24 = vpop.permute.xlu1 %3050 }
 0xa41   :  { %4576 = vmatpush1.bf16.msra.mxu1 %v6040_v31  ;;  %4608 = vmatpush1.bf16.msra.mxu0 %v6049_v41  ;;  %v6194_v14 = vpop.permute.xlu0 %3172 }
 0xa43   :  { %v6132_v25 = vpop.permute.xlu1 %3054 }
 0xa44   :  { %2801 = vmatmul.mubr.f32.vlgmr.msra.gmra.mrb[24].mxu1 %v2507_v35  ;;  %2878 = vmatmul.mubr.f32.vlgmr.msra.gmra.mrb[32].mxu0 %v2507_v35 }
 0xa45   :  { %2806 = vmatprep.mubr.f32.mxu1 %v7094_v23  ;;  %2883 = vmatprep.mubr.f32.mxu0 %v7094_v23  ;;  %v6206_v32 = vpop.permute.xlu0 %3349 }
 0xa48   :  { %2807 = vmatmul.mubr.f32.gmra.mrb[26].mxu1 %v2509_v33  ;;  %2884 = vmatmul.mubr.f32.gmra.mrb[34].mxu0 %v2509_v33  ;;  %v6148_v13 = vpop.permute.xlu1 %3113 }
 0xa49   :  { %v6228_v23 = vpop.permute.xlu0 %3286 }
 0xa4d   :  { %v6174_v47 = vpop.permute.xlu1 %3168 }
 0xa52   :  { %v6186_v28 = vpop.permute.xlu1 %3227 }
 0xa56   :  { %v6198_v7 = vpop.permute.xlu1 %3231 }
 0xa5b   :  { %v6212_v21 = vpop.permute.xlu1 %3290 }
 0xa60   :  { %v6244_v33 = vpop.permute.xlu1 %3345 }
 0xa61   :  { %7100 = vst [vmem:[#allocation22_spill] sm:$0xff] %v6244_v33 }
 0xaf7   :  { %v6134_v26 = vpop.f32.mrb[20].mxu1  ;;  %v6136_v46 = vpop.f32.mrb[28].mxu0 }
 0xaf8   :  { %v6138_v0 = vpop.f32.mrb[21].mxu1  ;;  %v6140_v36 = vpop.f32.mrb[29].mxu0  ;;  %v3000_v18 = vmul.f32 %v6128_v19, %v6136_v46  ;;  %v2939_v22 = vmul.f32 %v6124_v8, %v6134_v26  ;;  %v3057_v1 = vmul.f32 %v6130_v24, %v6134_v26  ;;  %v2941_v39 = vmul.f32 %v6124_v8, %v6136_v46 }
 0xaf9   :  { %v3059_v59 = vmul.f32 %v6130_v24, %v6136_v46  ;;  %v2998_v17 = vmul.f32 %v6128_v19, %v6134_v26  ;;  %v2999_v15 = vmul.f32 %v6128_v19, %v6138_v0  ;;  %v3116_v11 = vmul.f32 %v6172_v34, %v6134_v26 }
 0xafa   :  { %3018 = vrot.lane.b32.xlu0 %v3000_v18, %s4742_s29  ;;  %2955 = vrot.lane.b32.xlu1 %v2939_v22, %s4743_s30  ;;  %v3001_v20 = vmul.f32 %v6128_v19, %v6140_v36  ;;  %v3118_v38 = vmul.f32 %v6172_v34, %v6136_v46  ;;  %v3058_v31 = vmul.f32 %v6130_v24, %v6138_v0 }
 0xafb   :  { %v3175_v41 = vmul.f32 %v6174_v47, %v6134_v26  ;;  %v3117_v16 = vmul.f32 %v6172_v34, %v6138_v0  ;;  %v3177_v60 = vmul.f32 %v6174_v47, %v6136_v46  ;;  %v3176_v58 = vmul.f32 %v6174_v47, %v6138_v0 }
 0xafc   :  { %v3234_v27 = vmul.f32 %v6186_v28, %v6134_v26  ;;  %v3235_v37 = vmul.f32 %v6186_v28, %v6138_v0  ;;  %v3236_v49 = vmul.f32 %v6186_v28, %v6136_v46  ;;  %v3294_v35 = vmul.f32 %v6228_v23, %v6138_v0 }
 0xafd   :  { %v6156_v48 = vpop.f32.mrb[22].mxu1  ;;  %v6158_v52 = vpop.f32.mrb[30].mxu0  ;;  %v3293_v12 = vmul.f32 %v6228_v23, %v6134_v26  ;;  %v3353_v18 = vmul.f32 %v6244_v33, %v6138_v0  ;;  %v3295_v22 = vmul.f32 %v6228_v23, %v6136_v46 }
 0xafe   :  { %v6160_v55 = vpop.f32.mrb[31].mxu0  ;;  %3073 = vrot.lane.b32.xlu0 %v3057_v1, %s4744_s12  ;;  %2959 = vrot.lane.b32.xlu1 %v2941_v39, %s4743_s30  ;;  %v6164_v9 = vpop.f32.mrb[23].mxu1  ;;  %v2943_v1 = vmul.f32 %v6126_v29, %v6156_v48  ;;  %v3352_v39 = vmul.f32 %v6244_v33, %v6134_v26 }
 0xb02   :  { %3077 = vrot.lane.b32.xlu0 %v3059_v59, %s4744_s12  ;;  %3014 = vrot.lane.b32.xlu1 %v2998_v17, %s4742_s29  ;;  %v2945_v59 = vmul.f32 %v6126_v29, %v6158_v52  ;;  %v3354_v17 = vmul.f32 %v6244_v33, %v6136_v46 }
 0xb06   :  { %3016 = vrot.lane.b32.xlu1 %v2999_v15, %s4742_s29  ;;  %3132 = vrot.lane.b32.xlu0 %v3116_v11, %s4745_s13  ;;  %v3061_v15 = vmul.f32 %v6132_v25, %v6156_v48  ;;  %v2940_v11 = vmul.f32 %v6124_v8, %v6138_v0 }
 0xb0a   :  { %3020 = vrot.lane.b32.xlu1 %v3001_v20, %s4742_s29  ;;  %3136 = vrot.lane.b32.xlu0 %v3118_v38, %s4745_s13  ;;  %v3063_v20 = vmul.f32 %v6132_v25, %v6158_v52  ;;  %v2942_v38 = vmul.f32 %v6124_v8, %v6140_v36 }
 0xb0e   :  { %3075 = vrot.lane.b32.xlu1 %v3058_v31, %s4744_s12  ;;  %3191 = vrot.lane.b32.xlu0 %v3175_v41, %s4746_s14  ;;  %v3120_v31 = vmul.f32 %v6148_v13, %v6156_v48  ;;  %v3060_v41 = vmul.f32 %v6130_v24, %v6140_v36 }
 0xb12   :  { %3134 = vrot.lane.b32.xlu1 %v3117_v16, %s4745_s13  ;;  %3195 = vrot.lane.b32.xlu0 %v3177_v60, %s4746_s14  ;;  %v3122_v16 = vmul.f32 %v6148_v13, %v6158_v52  ;;  %v3119_v60 = vmul.f32 %v6172_v34, %v6140_v36 }
 0xb16   :  { %3193 = vrot.lane.b32.xlu1 %v3176_v58, %s4746_s14  ;;  %3250 = vrot.lane.b32.xlu0 %v3234_v27, %s4747_s15  ;;  %v3179_v58 = vmul.f32 %v6194_v14, %v6156_v48  ;;  %v3178_v27 = vmul.f32 %v6174_v47, %v6140_v36 }
 0xb17   :  { %v6216_v50 = vpop.f32.mrb[24].mxu1  ;;  %v6218_v51 = vpop.f32.mrb[32].mxu0 }
 0xb18   :  { %7096 = vst [vmem:[#allocation18_spill] sm:$0xff] %v6216_v50  ;;  %7097 = vst [vmem:[#allocation19_spill] sm:$0xff] %v6218_v51  ;;  %v6220_v43 = vpop.f32.mrb[25].mxu1  ;;  %v6222_v53 = vpop.f32.mrb[33].mxu0 }
 0xb19   :  { %7098 = vst [vmem:[#allocation20_spill] sm:$0xff] %v6220_v43 }
 0xb1a   :  { %3252 = vrot.lane.b32.xlu1 %v3235_v37, %s4747_s15  ;;  %3254 = vrot.lane.b32.xlu0 %v3236_v49, %s4747_s15  ;;  %v3181_v37 = vmul.f32 %v6194_v14, %v6158_v52  ;;  %v3237_v49 = vmul.f32 %v6186_v28, %v6140_v36 }
 0xb1b   :  { %v6232_v54 = vpop.f32.mrb[26].mxu1  ;;  %v6234_v56 = vpop.f32.mrb[34].mxu0 }
 0xb1c   :  { %7099 = vst [vmem:[#allocation21_spill] sm:$0xff] %v6232_v54  ;;  %v6236_v30 = vpop.f32.mrb[27].mxu1  ;;  %v6238_v40 = vpop.f32.mrb[35].mxu0 }
 0xb1e   :  { %3311 = vrot.lane.b32.xlu1 %v3294_v35, %s4748_s18  ;;  %3309 = vrot.lane.b32.xlu0 %v3293_v12, %s4748_s18  ;;  %v3238_v35 = vmul.f32 %v6198_v7, %v6156_v48  ;;  %v3296_v12 = vmul.f32 %v6228_v23, %v6140_v36 }
 0xb22   :  { %3370 = vrot.lane.b32.xlu1 %v3353_v18, %s7101_s4  ;;  %3313 = vrot.lane.b32.xlu0 %v3295_v22, %s4748_s18  ;;  %v3240_v18 = vmul.f32 %v6198_v7, %v6158_v52  ;;  %v3355_v22 = vmul.f32 %v6244_v33, %v6140_v36  ;;  %v3004_v36 = vmul.f32 %v6150_v63, %v6158_v52 }
 0xb26   :  { %2963 = vrot.lane.b32.xlu1 %v2943_v1, %s4743_s30  ;;  %3368 = vrot.lane.b32.xlu0 %v3352_v39, %s7101_s4  ;;  %v3297_v1 = vmul.f32 %v6212_v21, %v6156_v48  ;;  %v3002_v39 = vmul.f32 %v6150_v63, %v6156_v48 }
 0xb2a   :  { %2967 = vrot.lane.b32.xlu1 %v2945_v59, %s4743_s30  ;;  %3372 = vrot.lane.b32.xlu0 %v3354_v17, %s7101_s4  ;;  %v3299_v59 = vmul.f32 %v6212_v21, %v6158_v52  ;;  %v3356_v17 = vmul.f32 %v6206_v32, %v6156_v48 }
 0xb2e   :  { %3081 = vrot.lane.b32.xlu1 %v3061_v15, %s4744_s12  ;;  %2957 = vrot.lane.b32.xlu0 %v2940_v11, %s4743_s30  ;;  %v2944_v15 = vmul.f32 %v6126_v29, %v6164_v9  ;;  %v3358_v11 = vmul.f32 %v6206_v32, %v6158_v52 }
 0xb32   :  { %3085 = vrot.lane.b32.xlu1 %v3063_v20, %s4744_s12  ;;  %2961 = vrot.lane.b32.xlu0 %v2942_v38, %s4743_s30  ;;  %v2946_v20 = vmul.f32 %v6126_v29, %v6160_v55  ;;  %v3003_v38 = vmul.f32 %v6150_v63, %v6164_v9 }
 0xb36   :  { %3140 = vrot.lane.b32.xlu1 %v3120_v31, %s4745_s13  ;;  %3079 = vrot.lane.b32.xlu0 %v3060_v41, %s4744_s12  ;;  %v3062_v31 = vmul.f32 %v6132_v25, %v6164_v9  ;;  %v3005_v41 = vmul.f32 %v6150_v63, %v6160_v55 }
 0xb3a   :  { %3144 = vrot.lane.b32.xlu1 %v3122_v16, %s4745_s13  ;;  %3138 = vrot.lane.b32.xlu0 %v3119_v60, %s4745_s13  ;;  %v3121_v16 = vmul.f32 %v6148_v13, %v6164_v9  ;;  %v3064_v60 = vmul.f32 %v6132_v25, %v6160_v55 }
 0xb3e   :  { %3199 = vrot.lane.b32.xlu1 %v3179_v58, %s4746_s14  ;;  %3197 = vrot.lane.b32.xlu0 %v3178_v27, %s4746_s14  ;;  %v3180_v58 = vmul.f32 %v6194_v14, %v6164_v9  ;;  %v3123_v27 = vmul.f32 %v6148_v13, %v6160_v55 }
 0xb42   :  { %3203 = vrot.lane.b32.xlu1 %v3181_v37, %s4746_s14  ;;  %3256 = vrot.lane.b32.xlu0 %v3237_v49, %s4747_s15  ;;  %v3239_v37 = vmul.f32 %v6198_v7, %v6164_v9 }
 0xb46   :  { %3258 = vrot.lane.b32.xlu1 %v3238_v35, %s4747_s15  ;;  %3315 = vrot.lane.b32.xlu0 %v3296_v12, %s4748_s18  ;;  %v3182_v12 = vmul.f32 %v6194_v14, %v6160_v55 }
 0xb4a   :  { %3262 = vrot.lane.b32.xlu1 %v3240_v18, %s4747_s15  ;;  %3374 = vrot.lane.b32.xlu0 %v3355_v22, %s7101_s4  ;;  %v3298_v18 = vmul.f32 %v6212_v21, %v6164_v9 }
 0xb4e   :  { %3317 = vrot.lane.b32.xlu1 %v3297_v1, %s4748_s18  ;;  %3022 = vrot.lane.b32.xlu0 %v3002_v39, %s4742_s29  ;;  %v3241_v39 = vmul.f32 %v6198_v7, %v6160_v55 }
 0xb52   :  { %3321 = vrot.lane.b32.xlu1 %v3299_v59, %s4748_s18  ;;  %3026 = vrot.lane.b32.xlu0 %v3004_v36, %s4742_s29  ;;  %v3357_v59 = vmul.f32 %v6206_v32, %v6164_v9 }
 0xb56   :  { %3376 = vrot.lane.b32.xlu1 %v3356_v17, %s7101_s4  ;;  %2965 = vrot.lane.b32.xlu0 %v2944_v15, %s4743_s30  ;;  %v3300_v15 = vmul.f32 %v6212_v21, %v6160_v55 }
 0xb5a   :  { %3380 = vrot.lane.b32.xlu1 %v3358_v11, %s7101_s4  ;;  %2969 = vrot.lane.b32.xlu0 %v2946_v20, %s4743_s30  ;;  %v3438_v11 = vmul.f32 %v6124_v8, %v6216_v50 }
 0xb5e   :  { %3024 = vrot.lane.b32.xlu1 %v3003_v38, %s4742_s29  ;;  %3083 = vrot.lane.b32.xlu0 %v3062_v31, %s4744_s12  ;;  %v3359_v31 = vmul.f32 %v6206_v32, %v6160_v55 }
 0xb62   :  { %3028 = vrot.lane.b32.xlu1 %v3005_v41, %s4742_s29  ;;  %3142 = vrot.lane.b32.xlu0 %v3121_v16, %s4745_s13  ;;  %v3440_v41 = vmul.f32 %v6124_v8, %v6218_v51 }
 0xb66   :  { %3087 = vrot.lane.b32.xlu1 %v3064_v60, %s4744_s12  ;;  %3201 = vrot.lane.b32.xlu0 %v3180_v58, %s4746_s14  ;;  %v3488_v58 = vmul.f32 %v6128_v19, %v6216_v50 }
 0xb6a   :  { %3146 = vrot.lane.b32.xlu1 %v3123_v27, %s4745_s13  ;;  %3260 = vrot.lane.b32.xlu0 %v3239_v37, %s4747_s15  ;;  %v3538_v27 = vmul.f32 %v6130_v24, %v6216_v50 }
 0xb6c   :  { %v6362_v49 = vpop.permute.xlu1 %2955  ;;  %v6364_v35 = vpop.permute.xlu0 %3018 }
 0xb6e   :  { %3205 = vrot.lane.b32.xlu1 %v3182_v12, %s4746_s14  ;;  %3319 = vrot.lane.b32.xlu0 %v3298_v18, %s4748_s18  ;;  %v3490_v12 = vmul.f32 %v6128_v19, %v6218_v51  ;;  %v3540_v18 = vmul.f32 %v6130_v24, %v6218_v51 }
 0xb70   :  { %v6372_v22 = vpop.permute.xlu1 %2959  ;;  %v6374_v1 = vpop.permute.xlu0 %3073 }
 0xb72   :  { %3264 = vrot.lane.b32.xlu1 %v3241_v39, %s4747_s15  ;;  %3378 = vrot.lane.b32.xlu0 %v3357_v59, %s7101_s4 }
 0xb74   :  { %v6382_v36 = vpop.permute.xlu1 %3014  ;;  %v6384_v17 = vpop.permute.xlu0 %3077 }
 0xb76   :  { %3323 = vrot.lane.b32.xlu1 %v3300_v15, %s4748_s18  ;;  %3454 = vrot.lane.b32.xlu0 %v3438_v11, %s4743_s30  ;;  %v3439_v15 = vmul.f32 %v6124_v8, %v6220_v43  ;;  %v3588_v11 = vmul.f32 %v6172_v34, %v6216_v50 }
 0xb78   :  { %v6392_v20 = vpop.permute.xlu1 %3016  ;;  %v6394_v38 = vpop.permute.xlu0 %3132 }
 0xb7a   :  { %3382 = vrot.lane.b32.xlu1 %v3359_v31, %s7101_s4  ;;  %3458 = vrot.lane.b32.xlu0 %v3440_v41, %s4743_s30 }
 0xb7c   :  { %v6402_v16 = vpop.permute.xlu1 %3020  ;;  %v6404_v60 = vpop.permute.xlu0 %3136 }
 0xb7e   :  { %3504 = vrot.lane.b32.xlu1 %v3488_v58, %s4742_s29  ;;  %3554 = vrot.lane.b32.xlu0 %v3538_v27, %s4744_s12  ;;  %v3441_v58 = vmul.f32 %v6124_v8, %v6222_v53  ;;  %v3590_v27 = vmul.f32 %v6172_v34, %v6218_v51 }
 0xb80   :  { %v6412_v55 = vpop.permute.xlu1 %3075  ;;  %v6414_v37 = vpop.permute.xlu0 %3191 }
 0xb82   :  { %3508 = vrot.lane.b32.xlu1 %v3490_v12, %s4742_s29  ;;  %3558 = vrot.lane.b32.xlu0 %v3540_v18, %s4744_s12 }
 0xb84   :  { %v6422_v39 = vpop.permute.xlu1 %3134  ;;  %v6424_v59 = vpop.permute.xlu0 %3195 }
 0xb86   :  { %3456 = vrot.lane.b32.xlu1 %v3439_v15, %s4743_s30  ;;  %3604 = vrot.lane.b32.xlu0 %v3588_v11, %s4745_s13  ;;  %v3539_v15 = vmul.f32 %v6130_v24, %v6220_v43  ;;  %v3638_v11 = vmul.f32 %v6174_v47, %v6216_v50 }
 0xb88   :  { %v6432_v31 = vpop.permute.xlu1 %3193  ;;  %v6434_v41 = vpop.permute.xlu0 %3250 }
 0xb8a   :  { %3460 = vrot.lane.b32.xlu1 %v3441_v58, %s4743_s30  ;;  %3608 = vrot.lane.b32.xlu0 %v3590_v27, %s4745_s13  ;;  %v3589_v58 = vmul.f32 %v6172_v34, %v6220_v43  ;;  %v3640_v27 = vmul.f32 %v6174_v47, %v6218_v51 }
 0xb8c   :  { %v6442_v12 = vpop.permute.xlu1 %3252  ;;  %v6444_v18 = vpop.permute.xlu0 %3254 }
 0xb8e   :  { %3556 = vrot.lane.b32.xlu1 %v3539_v15, %s4744_s12  ;;  %3654 = vrot.lane.b32.xlu0 %v3638_v11, %s4746_s14  ;;  %v3639_v15 = vmul.f32 %v6174_v47, %v6220_v43  ;;  %v3688_v11 = vmul.f32 %v6186_v28, %v6216_v50 }
 0xb90   :  { %v6452_v8 = vpop.permute.xlu1 %3311  ;;  %v6454_v4 = vpop.permute.xlu0 %3309 }
 0xb92   :  { %3606 = vrot.lane.b32.xlu1 %v3589_v58, %s4745_s13  ;;  %3658 = vrot.lane.b32.xlu0 %v3640_v27, %s4746_s14  ;;  %v3689_v58 = vmul.f32 %v6186_v28, %v6220_v43  ;;  %v3690_v27 = vmul.f32 %v6186_v28, %v6218_v51 }
 0xb94   :  { %v6462_v2 = vpop.permute.xlu1 %3370  ;;  %v6464_v6 = vpop.permute.xlu0 %3313 }
 0xb95   :  { %7102 = vst [vmem:[#allocation23_spill] sm:$0xff] %v6462_v2  ;;  %7103 = vst [vmem:[#allocation24_spill] sm:$0xff] %v6464_v6 }
 0xb96   :  { %3656 = vrot.lane.b32.xlu1 %v3639_v15, %s4746_s14  ;;  %3704 = vrot.lane.b32.xlu0 %v3688_v11, %s4747_s15  ;;  %v3739_v15 = vmul.f32 %v6228_v23, %v6220_v43  ;;  %v3738_v11 = vmul.f32 %v6228_v23, %v6216_v50 }
 0xb98   :  { %v6472_v3 = vpop.permute.xlu1 %2963  ;;  %v6474_v62 = vpop.permute.xlu0 %3368 }
 0xb99   :  { %7104 = vst [vmem:[#allocation25_spill] sm:$0xff] %v6474_v62 }
 0xb9a   :  { %3706 = vrot.lane.b32.xlu1 %v3689_v58, %s4747_s15  ;;  %3708 = vrot.lane.b32.xlu0 %v3690_v27, %s4747_s15  ;;  %v3789_v58 = vmul.f32 %v6244_v33, %v6220_v43  ;;  %v3740_v27 = vmul.f32 %v6228_v23, %v6218_v51 }
 0xb9c   :  { %v6482_v61 = vpop.permute.xlu1 %2967  ;;  %v6484_v42 = vpop.permute.xlu0 %3372 }
 0xb9d   :  { %7105 = vst [vmem:[#allocation26_spill] sm:$0xff] %v6484_v42 }
 0xb9e   :  { %3756 = vrot.lane.b32.xlu1 %v3739_v15, %s4748_s18  ;;  %3754 = vrot.lane.b32.xlu0 %v3738_v11, %s4748_s18  ;;  %v3442_v15 = vmul.f32 %v6126_v29, %v6232_v54  ;;  %v3788_v11 = vmul.f32 %v6244_v33, %v6216_v50 }
 0xba0   :  { %v6492_v5 = vpop.permute.xlu1 %3081  ;;  %v2958_v45 = vpop.permute.xlu0 %2957 }
 0xba2   :  { %3806 = vrot.lane.b32.xlu1 %v3789_v58, %s7101_s4  ;;  %3758 = vrot.lane.b32.xlu0 %v3740_v27, %s4748_s18  ;;  %v3444_v58 = vmul.f32 %v6126_v29, %v6234_v56  ;;  %v3790_v27 = vmul.f32 %v6244_v33, %v6218_v51 }
 0xba4   :  { %v6500_v44 = vpop.permute.xlu1 %3085  ;;  %v6502_v42 = vpop.permute.xlu0 %2961 }
 0xba6   :  { %3462 = vrot.lane.b32.xlu1 %v3442_v15, %s4743_s30  ;;  %3804 = vrot.lane.b32.xlu0 %v3788_v11, %s7101_s4  ;;  %v3542_v15 = vmul.f32 %v6132_v25, %v6232_v54  ;;  %v3489_v11 = vmul.f32 %v6128_v19, %v6220_v43 }
 0xba8   :  { %v6510_v62 = vpop.permute.xlu1 %3140  ;;  %v6512_v2 = vpop.permute.xlu0 %3079 }
 0xba9   :  { %7106 = vst [vmem:[#allocation27_spill] sm:$0xff] %v6512_v2 }
 0xbaa   :  { %3466 = vrot.lane.b32.xlu1 %v3444_v58, %s4743_s30  ;;  %3808 = vrot.lane.b32.xlu0 %v3790_v27, %s7101_s4  ;;  %v3544_v58 = vmul.f32 %v6132_v25, %v6234_v56  ;;  %v3491_v27 = vmul.f32 %v6128_v19, %v6222_v53 }
 0xbac   :  { %v6520_v6 = vpop.permute.xlu1 %3144  ;;  %v6522_v50 = vpop.permute.xlu0 %3138 }
 0xbae   :  { %3562 = vrot.lane.b32.xlu1 %v3542_v15, %s4744_s12  ;;  %3506 = vrot.lane.b32.xlu0 %v3489_v11, %s4742_s29  ;;  %v3592_v15 = vmul.f32 %v6148_v13, %v6232_v54  ;;  %v3541_v11 = vmul.f32 %v6130_v24, %v6222_v53 }
 0xbb0   :  { %v6530_v2 = vpop.permute.xlu1 %3199  ;;  %v6532_v51 = vpop.permute.xlu0 %3197 }
 0xbb1   :  { %7107 = vst [vmem:[#allocation28_spill] sm:$0xff] %v6532_v51 }
 0xbb2   :  { %3566 = vrot.lane.b32.xlu1 %v3544_v58, %s4744_s12  ;;  %3510 = vrot.lane.b32.xlu0 %v3491_v27, %s4742_s29  ;;  %v3594_v58 = vmul.f32 %v6148_v13, %v6234_v56  ;;  %v3591_v27 = vmul.f32 %v6172_v34, %v6222_v53 }
 0xbb4   :  { %v6540_v33 = vpop.permute.xlu1 %3203  ;;  %v6542_v43 = vpop.permute.xlu0 %3256 }
 0xbb5   :  { %7108 = vst [vmem:[#allocation29_spill] sm:$0xff] %v6542_v43 }
 0xbb6   :  { %3612 = vrot.lane.b32.xlu1 %v3592_v15, %s4745_s13  ;;  %3560 = vrot.lane.b32.xlu0 %v3541_v11, %s4744_s12  ;;  %v3642_v15 = vmul.f32 %v6194_v14, %v6232_v54  ;;  %v3641_v11 = vmul.f32 %v6174_v47, %v6222_v53  ;;  %v2972_v47 = vsel %vm87_vm2, %v6362_v49, %v2958_v45 }
 0xbb8   :  { %v6550_v51 = vpop.permute.xlu1 %3258  ;;  %v6552_v19 = vpop.permute.xlu0 %3315 }
 0xbb9   :  { %7109 = vst [vmem:[#allocation30_spill] sm:$0xff] %v6550_v51  ;;  %7110 = vst [vmem:[#allocation31_spill] sm:$0xff] %v6552_v19 }
 0xbba   :  { %3616 = vrot.lane.b32.xlu1 %v3594_v58, %s4745_s13  ;;  %3610 = vrot.lane.b32.xlu0 %v3591_v27, %s4745_s13  ;;  %v3644_v58 = vmul.f32 %v6194_v14, %v6234_v56  ;;  %v3691_v27 = vmul.f32 %v6186_v28, %v6222_v53  ;;  %v2917_v28 = vmul.f32 %v6120_v57, %v6134_v26 }
 0xbbb   :  { %v3492_v26 = vmul.f32 %v6150_v63, %v6232_v54 }
 0xbbc   :  { %v6560_v43 = vpop.permute.xlu1 %3262  ;;  %v6562_v24 = vpop.permute.xlu0 %3374  ;;  %v2984_v49 = vadd.f32 %v2972_v47, %v2917_v28 }
 0xbbd   :  { %7111 = vst [vmem:[#allocation32_spill] sm:$0xff] %v6560_v43  ;;  %7112 = vst [vmem:[#allocation33_spill] sm:$0xff] %v6562_v24 }
 0xbbe   :  { %3662 = vrot.lane.b32.xlu1 %v3642_v15, %s4746_s14  ;;  %3660 = vrot.lane.b32.xlu0 %v3641_v11, %s4746_s14  ;;  %v3692_v11 = vmul.f32 %v6198_v7, %v6232_v54 }
 0xbc0   :  { %v6570_v19 = vpop.permute.xlu1 %3317  ;;  %v3023_v34 = vpop.permute.xlu0 %3022 }
 0xbc1   :  { %7113 = vst [vmem:[#allocation34_spill] sm:$0xff] %v6570_v19  ;;  %v3741_v19 = vmul.f32 %v6228_v23, %v6222_v53  ;;  %v3694_v23 = vmul.f32 %v6198_v7, %v6234_v56 }
 0xbc2   :  { %3666 = vrot.lane.b32.xlu1 %v3644_v58, %s4746_s14  ;;  %3710 = vrot.lane.b32.xlu0 %v3691_v27, %s4747_s15  ;;  %v2973_v58 = vsel %vm87_vm2, %v2958_v45, %v6372_v22  ;;  %v2918_v27 = vmul.f32 %v6120_v57, %v6138_v0  ;;  %v3031_v45 = vsel %vm119_vm1, %v6382_v36, %v6392_v20 }
 0xbc3   :  { %v3032_v0 = vsel %vm119_vm1, %v6392_v20, %v6364_v35  ;;  %v3494_v36 = vmul.f32 %v6150_v63, %v6234_v56  ;;  %v3091_v20 = vsel %vm151_vm3, %v6412_v55, %v6384_v17 }
 0xbc4   :  { %v6580_v24 = vpop.permute.xlu1 %3321  ;;  %v6582_v15 = vpop.permute.xlu0 %3026 }
 0xbc5   :  { %7114 = vst [vmem:[#allocation35_spill] sm:$0xff] %v6580_v24  ;;  %v2985_v24 = vadd.f32 %v2973_v58, %v2918_v27  ;;  %v3742_v58 = vmul.f32 %v6212_v21, %v6232_v54  ;;  %v3090_v27 = vsel %vm151_vm3, %v6374_v1, %v6412_v55  ;;  %v3744_v1 = vmul.f32 %v6212_v21, %v6234_v56 }
 0xbc6   :  { %3712 = vrot.lane.b32.xlu1 %v3692_v11, %s4747_s15  ;;  %3760 = vrot.lane.b32.xlu0 %v3741_v19, %s4748_s18  ;;  %v3043_v19 = vadd.f32 %v3031_v45, %v2984_v49  ;;  %v2919_v49 = vmul.f32 %v6120_v57, %v6136_v46 }
 0xbc7   :  { %v3044_v47 = vadd.f32 %v3032_v0, %v2985_v24 }
 0xbc8   :  { %v6596_v43 = vpop.permute.xlu1 %3376  ;;  %v2966_v51 = vpop.permute.xlu0 %2965  ;;  %v3102_v24 = vadd.f32 %v3090_v27, %v3043_v19  ;;  %v3149_v19 = vsel %vm183_vm4, %v6394_v38, %v6422_v39 }
 0xbc9   :  { %v2975_v55 = vsel %vm87_vm2, %v6472_v3, %v2966_v51  ;;  %v2976_v46 = vsel %vm87_vm2, %v2966_v51, %v6482_v61  ;;  %v3445_v3 = vmul.f32 %v6126_v29, %v6238_v40  ;;  %v3150_v51 = vsel %vm183_vm4, %v6422_v39, %v6404_v60 }
 0xbca   :  { %3716 = vrot.lane.b32.xlu1 %v3694_v23, %s4747_s15  ;;  %3512 = vrot.lane.b32.xlu0 %v3492_v26, %s4742_s29  ;;  %v3103_v23 = vadd.f32 %v3091_v20, %v3044_v47  ;;  %v2920_v26 = vmul.f32 %v6122_v10, %v6156_v48  ;;  %v6642_v48 = vmul.f32 %v6122_v10, %v6158_v52 }
 0xbcb   :  { %v3161_v52 = vadd.f32 %v3149_v19, %v3102_v24  ;;  %v3543_v39 = vmul.f32 %v6132_v25, %v6236_v30  ;;  %v3593_v24 = vmul.f32 %v6148_v13, %v6236_v30 }
 0xbcc   :  { %v6610_v11 = vpop.permute.xlu1 %3380  ;;  %v6612_v28 = vpop.permute.xlu0 %2969  ;;  %v3162_v27 = vadd.f32 %v3150_v51, %v3103_v23  ;;  %v2987_v20 = vadd.f32 %v2975_v55, %v2920_v26  ;;  %v3208_v23 = vsel %vm215_vm5, %v6414_v37, %v6432_v31  ;;  %v3643_v55 = vmul.f32 %v6194_v14, %v6236_v30 }
 0xbce   :  { %3762 = vrot.lane.b32.xlu1 %v3742_v58, %s4748_s18  ;;  %3516 = vrot.lane.b32.xlu0 %v3494_v36, %s4742_s29  ;;  %v3443_v58 = vmul.f32 %v6126_v29, %v6236_v30  ;;  %v2921_v36 = vmul.f32 %v6122_v10, %v6164_v9  ;;  %v3792_v9 = vmul.f32 %v6206_v32, %v6232_v54 }
 0xbcf   :  { %v3794_v54 = vmul.f32 %v6206_v32, %v6234_v56  ;;  %v2974_v29 = vsel %vm87_vm2, %v6372_v22, %v6502_v42  ;;  %v3209_v42 = vsel %vm215_vm5, %v6432_v31, %v6424_v59  ;;  %v3220_v22 = vadd.f32 %v3208_v23, %v3161_v52 }
 0xbd0   :  { %v3025_v45 = vpop.permute.xlu1 %3024  ;;  %v3084_v0 = vpop.permute.xlu0 %3083  ;;  %v2986_v19 = vadd.f32 %v2974_v29, %v2919_v49  ;;  %v3033_v31 = vsel %vm119_vm1, %v6364_v35, %v6402_v16  ;;  %v3326_v35 = vsel %vm279_vm7, %v6454_v4, %v6452_v8  ;;  %v7118_v4 = vld [vmem:[#allocation27_spill] sm:$0xff] }
 0xbd1   :  { %v3034_v47 = vsel %vm119_vm1, %v3023_v34, %v3025_v45  ;;  %v3035_v38 = vsel %vm119_vm1, %v3025_v45, %v6582_v15  ;;  %v3493_v34 = vmul.f32 %v6150_v63, %v6236_v30  ;;  %v3093_v49 = vsel %vm151_vm3, %v6492_v5, %v3084_v0 }
 0xbd2   :  { %3766 = vrot.lane.b32.xlu1 %v3744_v1, %s4748_s18  ;;  %3464 = vrot.lane.b32.xlu0 %v3443_v58, %s4743_s30  ;;  %v2988_v1 = vadd.f32 %v2976_v46, %v2921_v36  ;;  %v3046_v26 = vadd.f32 %v3034_v47, %v2987_v20  ;;  %v3495_v36 = vmul.f32 %v6150_v63, %v6238_v40  ;;  %v7117_v20 = vld [vmem:[#allocation25_spill] sm:$0xff] }
 0xbd3   :  { %v3221_v46 = vadd.f32 %v3209_v42, %v3162_v27  ;;  %v3267_v63 = vsel %vm247_vm6, %v6434_v41, %v6442_v12  ;;  %v3094_v52 = vsel %vm151_vm3, %v3084_v0, %v6500_v44  ;;  %v7115_v0 = vld [vmem:[#allocation24_spill] sm:$0xff]  ;;  %v7116_v27 = vld [vmem:[#allocation23_spill] sm:$0xff] }
 0xbd4   :  { %v3029_v58 = vpop.permute.xlu1 %3028  ;;  %v3143_v10 = vpop.permute.xlu0 %3142  ;;  %v3047_v45 = vadd.f32 %v3035_v38, %v2988_v1  ;;  %v3105_v47 = vadd.f32 %v3093_v49, %v3046_v26  ;;  %v3279_v41 = vadd.f32 %v3267_v63, %v3220_v22  ;;  %v3045_v1 = vadd.f32 %v3033_v31, %v2986_v19 }
 0xbd5   :  { %v3152_v5 = vsel %vm183_vm4, %v6510_v62, %v3143_v10  ;;  %v3153_v16 = vsel %vm183_vm4, %v3143_v10, %v6520_v6  ;;  %v3092_v62 = vsel %vm151_vm3, %v6384_v17, %v7118_v4  ;;  %v2977_v10 = vsel %vm87_vm2, %v6482_v61, %v6612_v28  ;;  %v7119_v61 = vld [vmem:[#allocation30_spill] sm:$0xff]  ;;  %v7124_v4 = vld [vmem:[#allocation28_spill] sm:$0xff] }
 0xbd6   :  { %3812 = vrot.lane.b32.xlu1 %v3792_v9, %s7101_s4  ;;  %3468 = vrot.lane.b32.xlu0 %v3445_v3, %s4743_s30  ;;  %v6684_v9 = vmul.f32 %v6132_v25, %v6238_v40  ;;  %v6688_v3 = vmul.f32 %v6198_v7, %v6236_v30  ;;  %v3268_v25 = vsel %vm247_vm6, %v6442_v12, %v6444_v18 }
 0xbd7   :  { %v3106_v38 = vadd.f32 %v3094_v52, %v3047_v45  ;;  %v3327_v12 = vsel %vm279_vm7, %v6452_v8, %v7115_v0  ;;  %v3280_v23 = vadd.f32 %v3268_v25, %v3221_v46  ;;  %v3151_v45 = vsel %vm183_vm4, %v6404_v60, %v6522_v50  ;;  %v7121_v52 = vld [vmem:[#allocation34_spill] sm:$0xff] }
 0xbd8   :  { %v3088_v37 = vpop.permute.xlu1 %3087  ;;  %v3202_v51 = vpop.permute.xlu0 %3201  ;;  %v3164_v42 = vadd.f32 %v3152_v5, %v3105_v47  ;;  %v3036_v17 = vsel %vm119_vm1, %v6582_v15, %v3029_v58  ;;  %v3338_v19 = vadd.f32 %v3326_v35, %v3279_v41  ;;  %v7122_v58 = vld [vmem:[#allocation35_spill] sm:$0xff] }
 0xbd9   :  { %v3211_v26 = vsel %vm215_vm5, %v6530_v2, %v3202_v51  ;;  %v3212_v8 = vsel %vm215_vm5, %v3202_v51, %v6540_v33  ;;  %v3165_v22 = vadd.f32 %v3153_v16, %v3106_v38  ;;  %v7120_v2 = vld [vmem:[#allocation32_spill] sm:$0xff]  ;;  %v2989_v51 = vadd.f32 %v2977_v10, %v6642_v48  ;;  %v7123_v48 = vld [vmem:[#allocation26_spill] sm:$0xff]  ;;  %v7125_v10 = vld [vmem:[#allocation29_spill] sm:$0xff] }
 0xbda   :  { %3816 = vrot.lane.b32.xlu1 %v3794_v54, %s7101_s4  ;;  %3564 = vrot.lane.b32.xlu0 %v3543_v39, %s4744_s12  ;;  %v3385_v54 = vsel %vm311_vm8, %v7117_v20, %v7116_v27  ;;  %v3223_v31 = vadd.f32 %v3211_v26, %v3164_v42  ;;  %v3339_v49 = vadd.f32 %v3327_v12, %v3280_v23 }
 0xbdb   :  { %v3224_v50 = vadd.f32 %v3212_v8, %v3165_v22  ;;  %v3048_v47 = vadd.f32 %v3036_v17, %v2989_v51  ;;  %v3386_v5 = vsel %vm311_vm8, %v7116_v27, %v7123_v48  ;;  %v3743_v26 = vmul.f32 %v6212_v21, %v6236_v30 }
 0xbdc   :  { %v3147_v29 = vpop.permute.xlu1 %3146  ;;  %v3261_v39 = vpop.permute.xlu0 %3260 }
 0xbdd   :  { %v3270_v28 = vsel %vm247_vm6, %v7119_v61, %v3261_v39  ;;  %v3271_v46 = vsel %vm247_vm6, %v3261_v39, %v7120_v2  ;;  %v3398_v39 = vadd.f32 %v3386_v5, %v3339_v49 }
 0xbde   :  { %3514 = vrot.lane.b32.xlu1 %v3493_v34, %s4742_s29  ;;  %3614 = vrot.lane.b32.xlu0 %v3593_v24, %s4745_s13  ;;  %v3104_v34 = vadd.f32 %v3092_v62, %v3045_v1  ;;  %v3095_v24 = vsel %vm151_vm3, %v6500_v44, %v3088_v37  ;;  %v3282_v38 = vadd.f32 %v3270_v28, %v3223_v31 }
 0xbdf   :  { %v3283_v35 = vadd.f32 %v3271_v46, %v3224_v50  ;;  %v3154_v44 = vsel %vm183_vm4, %v6520_v6, %v3147_v29  ;;  %v3397_v37 = vadd.f32 %v3385_v54, %v3338_v19  ;;  %v3107_v41 = vadd.f32 %v3095_v24, %v3048_v47  ;;  %v7128_v47 = vld [vmem:[#allocation22_spill] sm:$0xff] }
 0xbe0   :  { %v3206_v60 = vpop.permute.xlu1 %3205  ;;  %v3320_v63 = vpop.permute.xlu0 %3319  ;;  %v3163_v16 = vadd.f32 %v3151_v45, %v3104_v34 }
 0xbe1   :  { %v3329_v15 = vsel %vm279_vm7, %v7121_v52, %v3320_v63  ;;  %v3330_v25 = vsel %vm279_vm7, %v3320_v63, %v7122_v58  ;;  %v3166_v54 = vadd.f32 %v3154_v44, %v3107_v41 }
 0xbe2   :  { %3518 = vrot.lane.b32.xlu1 %v3495_v36, %s4742_s29  ;;  %3664 = vrot.lane.b32.xlu0 %v3643_v55, %s4746_s14  ;;  %v3341_v12 = vadd.f32 %v3329_v15, %v3282_v38  ;;  %v3342_v20 = vadd.f32 %v3330_v25, %v3283_v35  ;;  %v3210_v36 = vsel %vm215_vm5, %v6424_v59, %v7124_v4 }
 0xbe3   :  { %v3213_v55 = vsel %vm215_vm5, %v6540_v33, %v3206_v60  ;;  %v3269_v59 = vsel %vm247_vm6, %v6444_v18, %v7125_v10  ;;  %v3222_v8 = vadd.f32 %v3210_v36, %v3163_v16  ;;  %v3793_v60 = vmul.f32 %v6206_v32, %v6236_v30  ;;  %v7131_v10 = vld [vmem:[#allocation19_spill] sm:$0xff] }
 0xbe4   :  { %v3265_v1 = vpop.permute.xlu1 %3264  ;;  %v3379_v23 = vpop.permute.xlu0 %3378  ;;  %v3225_v45 = vadd.f32 %v3213_v55, %v3166_v54  ;;  %v3791_v38 = vmul.f32 %v7128_v47, %v6222_v53  ;;  %v3795_v36 = vmul.f32 %v6206_v32, %v6238_v40 }
 0xbe5   :  { %v3388_v27 = vsel %vm311_vm8, %v6596_v43, %v3379_v23  ;;  %v3389_v6 = vsel %vm311_vm8, %v3379_v23, %v6610_v11  ;;  %v3272_v33 = vsel %vm247_vm6, %v7120_v2, %v3265_v1  ;;  %v3595_v43 = vmul.f32 %v6148_v13, %v6238_v40  ;;  %v7127_v13 = vld [vmem:[#allocation33_spill] sm:$0xff]  ;;  %v7130_v1 = vld [vmem:[#allocation20_spill] sm:$0xff] }
 0xbe6   :  { %v3400_v29 = vadd.f32 %v3388_v27, %v3341_v12  ;;  %v3401_v62 = vadd.f32 %v3389_v6, %v3342_v20  ;;  %3568 = vrot.lane.b32.xlu1 %v6684_v9, %s4744_s12  ;;  %3714 = vrot.lane.b32.xlu0 %v6688_v3, %s4747_s15  ;;  %v7126_v3 = vld [vmem:[#allocation31_spill] sm:$0xff]  ;;  %v3281_v28 = vadd.f32 %v3269_v59, %v3222_v8  ;;  %v7129_v12 = vld [vmem:[#allocation18_spill] sm:$0xff] }
 0xbe7   :  { %v3328_v61 = vsel %vm279_vm7, %v7115_v0, %v7126_v3  ;;  %v3284_v2 = vadd.f32 %v3272_v33, %v3225_v45  ;;  %v3387_v46 = vsel %vm311_vm8, %v7123_v48, %v7127_v13  ;;  %v3645_v0 = vmul.f32 %v6194_v14, %v6238_v40 }
 0xbe8   :  { %v3403_v42 = vadd.f32 %v3400_v29, %v3397_v37  ;;  %v3410_v9 = vadd.f32 %v3401_v62, %v3398_v39  ;;  %v3324_v22 = vpop.permute.xlu1 %3323  ;;  %v3455_v17 = vpop.permute.xlu0 %3454  ;;  %v3340_v19 = vadd.f32 %v3328_v61, %v3281_v28  ;;  %v3695_v14 = vmul.f32 %v6198_v7, %v6238_v40 }
 0xbe9   :  { %v3331_v18 = vsel %vm279_vm7, %v7122_v58, %v3324_v22  ;;  %v3745_v37 = vmul.f32 %v6212_v21, %v6238_v40  ;;  %v3430_v20 = vmul.f32 %v6120_v57, %v7129_v12  ;;  %v3431_v39 = vmul.f32 %v6120_v57, %v7130_v1 }
 0xbea   :  { %3618 = vrot.lane.b32.xlu1 %v3595_v43, %s4745_s13  ;;  %3764 = vrot.lane.b32.xlu0 %v3743_v26, %s4748_s18  ;;  %v3343_v51 = vadd.f32 %v3331_v18, %v3284_v2  ;;  %v3399_v49 = vadd.f32 %v3387_v46, %v3340_v19  ;;  %v3404_v34 = vrot.slane %v3403_v42, 4  ;;  %v3411_v24 = vrot.slane %v3410_v9, 4  ;;  %v7132_v46 = vld [vmem:[#allocation8_spill] sm:$0xff] }
 0xbeb   :  { %v3432_v59 = vmul.f32 %v6120_v57, %v7131_v10 }
 0xbec   :  { %v3383_v31 = vpop.permute.xlu1 %3382  ;;  %v3459_v50 = vpop.permute.xlu0 %3458  ;;  %v3405_v35 = vadd.f32 %v3404_v34, %v3403_v42 }
 0xbed   :  { %v3390_v63 = vsel %vm311_vm8, %v6610_v11, %v3383_v31  ;;  %v3412_v11 = vadd.f32 %v3411_v24, %v3410_v9 }
 0xbee   :  { %v3402_v52 = vadd.f32 %v3390_v63, %v3343_v51  ;;  %3668 = vrot.lane.b32.xlu1 %v3645_v0, %s4746_s14  ;;  %3814 = vrot.lane.b32.xlu0 %v3793_v60, %s7101_s4  ;;  %v3406_v41 = vrot.slane %v3405_v35, 2  ;;  %v7133_v51 = vld [vmem:[#allocation9_spill] sm:$0xff]  ;;  %v7134_v60 = vld [vmem:[#allocation12_spill] sm:$0xff] }
 0xbef   :  { %v3413_v7 = vrot.slane %v3412_v11, 2 }
 0xbf0   :  { %v3417_v15 = vadd.f32 %v3402_v52, %v3399_v49  ;;  %v6793_v58 = vpop.permute.xlu1 %3504  ;;  %v3555_v25 = vpop.permute.xlu0 %3554  ;;  %v3407_v27 = vadd.f32 %v3406_v41, %v3405_v35 }
 0xbf1   :  { %v3414_v6 = vadd.f32 %v3413_v7, %v3412_v11 }
 0xbf2   :  { %v3418_v48 = vrot.slane %v3417_v15, 4  ;;  %3718 = vrot.lane.b32.xlu1 %v3695_v14, %s4747_s15  ;;  %3810 = vrot.lane.b32.xlu0 %v3791_v38, %s7101_s4  ;;  %v3408_v40 = vrot.slane %v3407_v27, 1 }
 0xbf3   :  { %v3415_v26 = vrot.slane %v3414_v6, 1 }
 0xbf4   :  { %v3419_v5 = vadd.f32 %v3418_v48, %v3417_v15  ;;  %v6801_v16 = vpop.permute.xlu1 %3508  ;;  %v6803_v44 = vpop.permute.xlu0 %3558  ;;  %v6831_v3 = vadd.f32 %v3408_v40, %v3407_v27 }
 0xbf5   :  { %v6833_v57 = vadd.f32 %v3415_v26, %v3414_v6 }
 0xbf6   :  { %3768 = vrot.lane.b32.xlu1 %v3745_v37, %s4748_s18  ;;  %v3420_v53 = vrot.slane %v3419_v5, 2  ;;  %v3859_v19 = vmul.f32 %v6831_v3, %v7132_v46 }
 0xbf7   :  { %v3860_v31 = vmul.f32 %v6833_v57, %v7133_v51 }
 0xbf8   :  { %v3457_v23 = vpop.permute.xlu1 %3456  ;;  %v3605_v4 = vpop.permute.xlu0 %3604  ;;  %v3421_v62 = vadd.f32 %v3420_v53, %v3419_v5  ;;  %v3863_v24 = vsel %vm3862_vm9, %v3859_v19, 0.0  ;;  %v3871_v15 = vmul.f32 %v3859_v19, %v6831_v3 }
 0xbf9   :  { %v3470_v55 = vsel %vm87_vm2, %v3455_v17, %v3457_v23  ;;  %v3471_v21 = vsel %vm87_vm2, %v3457_v23, %v3459_v50  ;;  %v3864_v52 = vsel %vm3862_vm9, %v3860_v31, 0.0 }
 0xbfa   :  { %v6816_v54 = vadd.f32 %v3470_v55, %v3430_v20  ;;  %v6818_v29 = vadd.f32 %v3471_v21, %v3431_v39  ;;  %3818 = vrot.lane.b32.xlu1 %v3795_v36, %s7101_s4  ;;  %v3422_v45 = vrot.slane %v3421_v62, 1  ;;  %v3865_v5 = vadd.f32 %v3864_v52, %v3863_v24 }
 0xbfb   :  { %v3874_v37 = vsel %vm3862_vm9, %v3871_v15, 0.0 }
 0xbfc   :  { %v3461_v33 = vpop.permute.xlu1 %3460  ;;  %v6823_v43 = vpop.permute.xlu0 %3608  ;;  %v6835_v61 = vadd.f32 %v3422_v45, %v3421_v62 }
 0xbfd   :  { %v3472_v32 = vsel %vm87_vm2, %v3459_v50, %v3461_v33 }
 0xbfe   :  { %v6826_v8 = vadd.f32 %v3472_v32, %v3432_v59  ;;  %v3861_v63 = vmul.f32 %v6835_v61, %v7134_v60 }
 0xc00   :  { %v3557_v42 = vpop.permute.xlu1 %3556  ;;  %v3655_v9 = vpop.permute.xlu0 %3654  ;;  %v3866_v38 = vsel %vm3862_vm9, %v3861_v63, 0.0  ;;  %v3873_v35 = vmul.f32 %v3861_v63, %v6835_v61 }
 0xc01   :  { %v3570_v22 = vsel %vm151_vm3, %v3555_v25, %v3557_v42  ;;  %v3571_v17 = vsel %vm151_vm3, %v3557_v42, %v6803_v44  ;;  %v3872_v25 = vmul.f32 %v3860_v31, %v6833_v57  ;;  %v3867_v7 = vadd.f32 %v3866_v38, %v3865_v5 }
 0xc02   :  { %v3877_v20 = vsel %vm3862_vm9, %v3873_v35, 0.0 }
 0xc03   :  { %v3875_v41 = vsel %vm3862_vm9, %v3872_v25, 0.0 }
 0xc04   :  { %v3607_v18 = vpop.permute.xlu1 %3606  ;;  %v6837_v28 = vpop.permute.xlu0 %3658  ;;  %v3876_v39 = vadd.f32 %v3875_v41, %v3874_v37 }
 0xc05   :  { %v3620_v2 = vsel %vm183_vm4, %v3605_v4, %v3607_v18  ;;  %v3621_v13 = vsel %vm183_vm4, %v3607_v18, %v6823_v43 }
 0xc06   :  { %v3878_v23 = vadd.f32 %v3877_v20, %v3876_v39 }
 0xc08   :  { %v3657_v50 = vpop.permute.xlu1 %3656  ;;  %v3705_v0 = vpop.permute.xlu0 %3704 }
 0xc09   :  { %v3670_v49 = vsel %vm215_vm5, %v3655_v9, %v3657_v50  ;;  %v3671_v34 = vsel %vm215_vm5, %v3657_v50, %v6837_v28 }
 0xc0c   :  { %v3707_v14 = vpop.permute.xlu1 %3706  ;;  %v6855_v47 = vpop.permute.xlu0 %3708 }
 0xc0d   :  { %v3720_v11 = vsel %vm247_vm6, %v3705_v0, %v3707_v14  ;;  %v3721_v48 = vsel %vm247_vm6, %v3707_v14, %v6855_v47 }
 0xc10   :  { %v3757_v53 = vpop.permute.xlu1 %3756  ;;  %v3755_v12 = vpop.permute.xlu0 %3754 }
 0xc11   :  { %v3770_v1 = vsel %vm279_vm7, %v3755_v12, %v3757_v53  ;;  %3868 = vadd.xlane.f32.xlu0 %v3867_v7 }
 0xc14   :  { %v3807_v4 = vpop.permute.xlu1 %3806  ;;  %v3759_v36 = vpop.permute.xlu0 %3758 }
 0xc15   :  { %v3771_v55 = vsel %vm279_vm7, %v3757_v53, %v3759_v36  ;;  %3879 = vadd.xlane.f32.xlu0 %v3878_v23 }
 0xc18   :  { %v3463_v21 = vpop.permute.xlu1 %3462  ;;  %v3805_v27 = vpop.permute.xlu0 %3804 }
 0xc19   :  { %v3820_v6 = vsel %vm311_vm8, %v3805_v27, %v3807_v4  ;;  %v7136_v27 = vld [vmem:[#allocation17_spill] sm:$0xff] }
 0xc1c   :  { %v3467_v62 = vpop.permute.xlu1 %3466  ;;  %v6868_v10 = vpop.permute.xlu0 %3808 }
 0xc20   :  { %v6870_v59 = vpop.permute.xlu1 %3562  ;;  %v3507_v33 = vpop.permute.xlu0 %3506 }
 0xc21   :  { %v3520_v32 = vsel %vm119_vm1, %v6793_v58, %v3507_v33  ;;  %v3521_v40 = vsel %vm119_vm1, %v3507_v33, %v6801_v16 }
 0xc22   :  { %v3532_v26 = vadd.f32 %v3520_v32, %v6816_v54  ;;  %v3533_v45 = vadd.f32 %v3521_v40, %v6818_v29 }
 0xc24   :  { %v3582_v42 = vadd.f32 %v3570_v22, %v3532_v26  ;;  %v3583_v9 = vadd.f32 %v3571_v17, %v3533_v45  ;;  %v6878_v18 = vpop.permute.xlu1 %3566  ;;  %v3511_v19 = vpop.permute.xlu0 %3510 }
 0xc25   :  { %v3522_v31 = vsel %vm119_vm1, %v6801_v16, %v3511_v19  ;;  %v3821_v16 = vsel %vm311_vm8, %v3807_v4, %v6868_v10 }
 0xc26   :  { %v3632_v50 = vadd.f32 %v3620_v2, %v3582_v42  ;;  %v3633_v0 = vadd.f32 %v3621_v13, %v3583_v9  ;;  %v3534_v63 = vadd.f32 %v3522_v31, %v6826_v8  ;;  %v3435_v42 = vmul.f32 %v7136_v27, %v6234_v56 }
 0xc28   :  { %v3682_v58 = vadd.f32 %v3670_v49, %v3632_v50  ;;  %v3683_v24 = vadd.f32 %v3671_v34, %v3633_v0  ;;  %v3613_v52 = vpop.permute.xlu1 %3612  ;;  %v3561_v15 = vpop.permute.xlu0 %3560 }
 0xc29   :  { %v3572_v54 = vsel %vm151_vm3, %v6803_v44, %v3561_v15 }
 0xc2a   :  { %v3584_v29 = vadd.f32 %v3572_v54, %v3534_v63  ;;  %v3732_v22 = vadd.f32 %v3720_v11, %v3682_v58  ;;  %v3733_v17 = vadd.f32 %v3721_v48, %v3683_v24 }
 0xc2c   :  { %v6885_v25 = vpop.permute.xlu1 %3616  ;;  %v3611_v14 = vpop.permute.xlu0 %3610  ;;  %v3782_v38 = vadd.f32 %v3770_v1, %v3732_v22  ;;  %v3783_v35 = vadd.f32 %v3771_v55, %v3733_v17  ;;  %v7135_v55 = vld [vmem:[#allocation21_spill] sm:$0xff] }
 0xc2d   :  { %v3622_v8 = vsel %vm183_vm4, %v6823_v43, %v3611_v14 }
 0xc2e   :  { %v3634_v2 = vadd.f32 %v3622_v8, %v3584_v29  ;;  %v6891_v13 = vadd.f32 %v3820_v6, %v3782_v38  ;;  %v6893_v49 = vadd.f32 %v3821_v16, %v3783_v35  ;;  %v3433_v6 = vmul.f32 %v7136_v27, %v7135_v55 }
 0xc30   :  { %v3663_v44 = vpop.permute.xlu1 %3662  ;;  %v3661_v34 = vpop.permute.xlu0 %3660 }
 0xc31   :  { %v3672_v11 = vsel %vm215_vm5, %v6837_v28, %v3661_v34 }
 0xc32   :  { %v3684_v48 = vadd.f32 %v3672_v11, %v3634_v2 }
 0xc34   :  { %v6897_v5 = vpop.permute.xlu1 %3666  ;;  %v3711_v37 = vpop.permute.xlu0 %3710 }
 0xc35   :  { %v3722_v41 = vsel %vm247_vm6, %v6855_v47, %v3711_v37  ;;  %v3434_v47 = vmul.f32 %v7136_v27, %v6236_v30 }
 0xc36   :  { %v3734_v7 = vadd.f32 %v3722_v41, %v3684_v48 }
 0xc38   :  { %v3713_v53 = vpop.permute.xlu1 %3712  ;;  %v3761_v43 = vpop.permute.xlu0 %3760 }
 0xc39   :  { %v3772_v12 = vsel %vm279_vm7, %v3759_v36, %v3761_v43 }
 0xc3a   :  { %v6902_v20 = vadd.f32 %v3772_v12, %v3734_v7 }
 0xc3c   :  { %v6904_v1 = vpop.permute.xlu1 %3716  ;;  %v3513_v39 = vpop.permute.xlu0 %3512 }
 0xc40   :  { %v3763_v23 = vpop.permute.xlu1 %3762  ;;  %v3517_v4 = vpop.permute.xlu0 %3516 }
 0xc44   :  { %v6906_v28 = vpop.permute.xlu1 %3766  ;;  %v3465_v33 = vpop.permute.xlu0 %3464 }
 0xc45   :  { %v3473_v32 = vsel %vm87_vm2, %v3463_v21, %v3465_v33  ;;  %v3474_v36 = vsel %vm87_vm2, %v3465_v33, %v3467_v62 }
 0xc46   :  { %v3485_v40 = vadd.f32 %v3473_v32, %v3433_v6  ;;  %v3486_v26 = vadd.f32 %v3474_v36, %v3434_v47 }
 0xc48   :  { %v3813_v45 = vpop.permute.xlu1 %3812  ;;  %v3469_v9 = vpop.permute.xlu0 %3468 }
 0xc49   :  { %v3475_v19 = vsel %vm87_vm2, %v3467_v62, %v3469_v9 }
 0xc4a   :  { %v3487_v31 = vadd.f32 %v3475_v19, %v3435_v42 }
 0xc4c   :  { %v6917_v50 = vpop.permute.xlu1 %3816  ;;  %v3565_v0 = vpop.permute.xlu0 %3564 }
 0xc4d   :  { %v3573_v54 = vsel %vm151_vm3, %v6870_v59, %v3565_v0  ;;  %v3574_v56 = vsel %vm151_vm3, %v3565_v0, %v6878_v18 }
 0xc50   :  { %v3515_v63 = vpop.permute.xlu1 %3514  ;;  %v3615_v30 = vpop.permute.xlu0 %3614 }
 0xc51   :  { %v3523_v58 = vsel %vm119_vm1, %v3513_v39, %v3515_v63  ;;  %v3524_v21 = vsel %vm119_vm1, %v3515_v63, %v3517_v4  ;;  %v3623_v14 = vsel %vm183_vm4, %v3613_v52, %v3615_v30  ;;  %v3624_v38 = vsel %vm183_vm4, %v3615_v30, %v6885_v25 }
 0xc52   :  { %v3535_v24 = vadd.f32 %v3523_v58, %v3485_v40  ;;  %v3536_v15 = vadd.f32 %v3524_v21, %v3486_v26 }
 0xc54   :  { %v3585_v29 = vadd.f32 %v3573_v54, %v3535_v24  ;;  %v3586_v62 = vadd.f32 %v3574_v56, %v3536_v15  ;;  %v3519_v22 = vpop.permute.xlu1 %3518  ;;  %v3665_v17 = vpop.permute.xlu0 %3664 }
 0xc55   :  { %v3673_v34 = vsel %vm215_vm5, %v3663_v44, %v3665_v17  ;;  %v3674_v59 = vsel %vm215_vm5, %v3665_v17, %v6897_v5  ;;  %v3525_v44 = vsel %vm119_vm1, %v3517_v4, %v3519_v22 }
 0xc56   :  { %v3635_v35 = vadd.f32 %v3623_v14, %v3585_v29  ;;  %v3636_v16 = vadd.f32 %v3624_v38, %v3586_v62 }
 0xc58   :  { %v3569_v8 = vpop.permute.xlu1 %3568  ;;  %v3715_v2 = vpop.permute.xlu0 %3714  ;;  %v3685_v11 = vadd.f32 %v3673_v34, %v3635_v35  ;;  %v3686_v48 = vadd.f32 %v3674_v59, %v3636_v16 }
 0xc59   :  { %v3723_v37 = vsel %vm247_vm6, %v3713_v53, %v3715_v2  ;;  %v3724_v41 = vsel %vm247_vm6, %v3715_v2, %v6904_v1  ;;  %v3575_v53 = vsel %vm151_vm3, %v6878_v18, %v3569_v8 }
 0xc5a   :  { %v3735_v39 = vadd.f32 %v3723_v37, %v3685_v11  ;;  %v3736_v55 = vadd.f32 %v3724_v41, %v3686_v48 }
 0xc5c   :  { %v3619_v52 = vpop.permute.xlu1 %3618  ;;  %v3765_v7 = vpop.permute.xlu0 %3764 }
 0xc5d   :  { %v3773_v43 = vsel %vm279_vm7, %v3763_v23, %v3765_v7  ;;  %v3774_v12 = vsel %vm279_vm7, %v3765_v7, %v6906_v28  ;;  %v3537_v23 = vadd.f32 %v3525_v44, %v3487_v31  ;;  %v3625_v42 = vsel %vm183_vm4, %v6885_v25, %v3619_v52 }
 0xc5e   :  { %v3785_v27 = vadd.f32 %v3773_v43, %v3735_v39  ;;  %v3786_v6 = vadd.f32 %v3774_v12, %v3736_v55 }
 0xc5f   :  { %v3587_v9 = vadd.f32 %v3575_v53, %v3537_v23  ;;  %v4741_v53 = vld [vmem:[%s7048_s5] sm:$0xff] }
 0xc60   :  { %v3669_v47 = vpop.permute.xlu1 %3668  ;;  %v3815_v33 = vpop.permute.xlu0 %3814 }
 0xc61   :  { %v3823_v32 = vsel %vm311_vm8, %v3813_v45, %v3815_v33  ;;  %v3824_v36 = vsel %vm311_vm8, %v3815_v33, %v6917_v50  ;;  %v3675_v18 = vsel %vm215_vm5, %v6897_v5, %v3669_v47  ;;  %v3637_v63 = vadd.f32 %v3625_v42, %v3587_v9 }
 0xc62   :  { %v3835_v40 = vadd.f32 %v3823_v32, %v3785_v27  ;;  %v3836_v26 = vadd.f32 %v3824_v36, %v3786_v6 }
 0xc63   :  { %v3687_v58 = vadd.f32 %v3675_v18, %v3637_v63 }
 0xc64   :  { %v3838_v4 = vadd.f32 %v3835_v40, %v6891_v13  ;;  %v3845_v19 = vadd.f32 %v3836_v26, %v6893_v49  ;;  %v3719_v0 = vpop.permute.xlu1 %3718  ;;  %v3811_v15 = vpop.permute.xlu0 %3810 }
 0xc65   :  { %v3725_v31 = vsel %vm247_vm6, %v6904_v1, %v3719_v0  ;;  %v3822_v5 = vsel %vm311_vm8, %v6868_v10, %v3811_v15  ;;  %v4185_v15 = vld [vmem:[%s7045_s0 + $0x30] sm:$0xf] }
 0xc66   :  { %v3839_v45 = vrot.slane %v3838_v4, 4  ;;  %v3846_v30 = vrot.slane %v3845_v19, 4  ;;  %v3737_v56 = vadd.f32 %v3725_v31, %v3687_v58  ;;  %v3834_v35 = vadd.f32 %v3822_v5, %v6902_v20  ;;  %v3945_v31 = vld [vmem:[%s7045_s0 + $0x8] sm:$0xf]  ;;  %v3946_v58 = vld [vmem:[%s7045_s0 + $0x10] sm:$0xf] }
 0xc68   :  { %v3840_v21 = vadd.f32 %v3839_v45, %v3838_v4  ;;  %v3847_v24 = vadd.f32 %v3846_v30, %v3845_v19  ;;  %v3769_v25 = vpop.permute.xlu1 %3768  ;;  %v3944_v30 = vld [vmem:[%s7045_s0] sm:$0xf] }
 0xc69   :  { %v3775_v13 = vsel %vm279_vm7, %v6906_v28, %v3769_v25  ;;  %v3947_v25 = vld [vmem:[%s7045_s0 + $0x18] sm:$0xf] }
 0xc6a   :  { %v3841_v54 = vrot.slane %v3840_v21, 2  ;;  %v3848_v49 = vrot.slane %v3847_v24, 2  ;;  %v3787_v22 = vadd.f32 %v3775_v13, %v3737_v56 }
 0xc6c   :  { %v3842_v29 = vadd.f32 %v3841_v54, %v3840_v21  ;;  %v3849_v62 = vadd.f32 %v3848_v49, %v3847_v24  ;;  %v3819_v17 = vpop.permute.xlu1 %3818  ;;  %v4183_v21 = vld [vmem:[%s7045_s0 + $0x20] sm:$0xf]  ;;  %v4184_v24 = vld [vmem:[%s7045_s0 + $0x28] sm:$0xf] }
 0xc6d   :  { %v3825_v1 = vsel %vm311_vm8, %v6917_v50, %v3819_v17 }
 0xc6e   :  { %v3843_v14 = vrot.slane %v3842_v29, 1  ;;  %v3850_v38 = vrot.slane %v3849_v62, 1  ;;  %v3837_v16 = vadd.f32 %v3825_v1, %v3787_v22 }
 0xc70   :  { %v3852_v8 = vadd.f32 %v3837_v16, %v3834_v35  ;;  %v6958_v28 = vadd.f32 %v3843_v14, %v3842_v29  ;;  %v6960_v2 = vadd.f32 %v3850_v38, %v3849_v62 }
 0xc72   :  { %v3853_v34 = vrot.slane %v3852_v8, 4  ;;  %v3882_v11 = vmul.f32 %v6958_v28, %v7132_v46  ;;  %v3883_v48 = vmul.f32 %v6960_v2, %v7133_v51 }
 0xc74   :  { %v3854_v59 = vadd.f32 %v3853_v34, %v3852_v8  ;;  %v3893_v41 = vmul.f32 %v3882_v11, %v6958_v28  ;;  %v3894_v20 = vmul.f32 %v3883_v48, %v6960_v2  ;;  %v3885_v7 = vsel %vm3862_vm9, %v3882_v11, 0.0 }
 0xc75   :  { %v3886_v43 = vsel %vm3862_vm9, %v3883_v48, 0.0 }
 0xc76   :  { %v3855_v10 = vrot.slane %v3854_v59, 2  ;;  %v3896_v39 = vsel %vm3862_vm9, %v3893_v41, 0.0  ;;  %v3897_v46 = vsel %vm3862_vm9, %v3894_v20, 0.0  ;;  %v3887_v55 = vadd.f32 %v3886_v43, %v3885_v7 }
 0xc77   :  { %v3898_v6 = vadd.f32 %v3897_v46, %v3896_v39 }
 0xc78   :  { %v3856_v50 = vadd.f32 %v3855_v10, %v3854_v59 }
 0xc7a   :  { %v3857_v37 = vrot.slane %v3856_v50, 1 }
 0xc7c   :  { %v3858_v52 = vadd.f32 %v3857_v37, %v3856_v50 }
 0xc7e   :  { %v3884_v12 = vmul.f32 %v3858_v52, %v7134_v60  ;;  %v4186_v60 = vld [vmem:[%s7045_s0 + $0x38] sm:$0xf] }
 0xc80   :  { %v3888_v51 = vsel %vm3862_vm9, %v3884_v12, 0.0  ;;  %v3895_v44 = vmul.f32 %v3884_v12, %v3858_v52 }
 0xc81   :  { %v3889_v27 = vadd.f32 %v3888_v51, %v3887_v55 }
 0xc82   :  { %v3899_v47 = vsel %vm3862_vm9, %v3895_v44, 0.0 }
 0xc83   :  { %3890 = vadd.xlane.f32.xlu1 %v3889_v27  ;;  %v3900_v33 = vadd.f32 %v3899_v47, %v3898_v6 }
 0xc85   :  { %3901 = vadd.xlane.f32.xlu0 %v3900_v33 }
 0xc9b   :  { %3923 = vperm.xlu0 %4663, %v4741_v53  }
 0xc9e   :  { %v3869_v32 = vpop.xlane.xlu0 %3868 }
 0xc9f   :  { %4043 = vrot.lane.b32.xlu0 %v4186_v60, %s4745_s13 }
 0xca2   :  { %v3880_v36 = vpop.xlane.xlu0 %3879 }
 0xd10   :  { %v3891_v23 = vpop.xlane.xlu1 %3890 }
 0xd11   :  { %v3892_v40 = vadd.f32 %v3891_v23, %v3869_v32 }
 0xd12   :  { %v3902_v26 = vpop.xlane.xlu0 %3901 }
 0xd13   :  { %v3904_v42 = vmul.f32 0.001953125, %v3892_v40  ;;  %v3903_v9 = vadd.f32 %v3902_v26, %v3880_v36 }
 0xd15   :  { %v3906_v4 = vmul.f32 %v3904_v42, %v3904_v42  ;;  %v3905_v19 = vmul.f32 0.001953125, %v3903_v9  ;;  %v3911_v13 = vsub.f32 %v6831_v3, %v3904_v42  ;;  %v3912_v54 = vsub.f32 %v6833_v57, %v3904_v42 }
 0xd16   :  { %v3913_v49 = vsub.f32 %v6835_v61, %v3904_v42  ;;  %v3990_v56 = vsub.f32 %v6958_v28, %v3904_v42  ;;  %v3991_v5 = vsub.f32 %v6960_v2, %v3904_v42  ;;  %v3992_v29 = vsub.f32 %v3858_v52, %v3904_v42 }
 0xd17   :  { %v3907_v0 = vsub.f32 %v3905_v19, %v3906_v4  ;;  %v7137_v19 = vld [vmem:[#allocation7_spill] sm:$0xff] }
 0xd19   :  { %v3908_v18 = vadd.f32 1e-05, %v3907_v0 }
 0xd1a   :  { %v3924_v38 = vpop.permute.xlu0 %3923 }
 0xd1b   :  { %4713 = vrsqrt.f32 %v3908_v18 }
 0xd25   :  { %v4714_v63 = vpop.eup %4713 }
 0xd26   :  { %v3910_v45 = vmul.f32 %v4741_v53, %v4714_v63 }
 0xd28   :  { %3916 = vperm.xlu1 %4664, %v3910_v45  }
 0xd2c   :  { %3967 = vrot.lane.b32.xlu1 %v3944_v30, %s4745_s13  ;;  %v7138_v30 = vld [vmem:[#allocation10_spill] sm:$0xff] }
 0xd30   :  { %3969 = vrot.lane.b32.xlu1 %v3945_v31, %s4745_s13 }
 0xd34   :  { %3971 = vrot.lane.b32.xlu1 %v3946_v58, %s4745_s13 }
 0xd38   :  { %4037 = vrot.lane.b32.xlu1 %v4183_v21, %s4745_s13 }
 0xd3c   :  { %4039 = vrot.lane.b32.xlu1 %v4184_v24, %s4745_s13 }
 0xd40   :  { %4041 = vrot.lane.b32.xlu1 %v4185_v15, %s4745_s13 }
 0xd44   :  { %3973 = vrot.lane.b32.xlu1 %v3947_v25, %s4745_s13  ;;  %v7139_v25 = vld [vmem:[#allocation11_spill] sm:$0xff] }
 0xda7   :  { %v3917_v62 = vpop.permute.xlu1 %3916 }
 0xda8   :  { %v3919_v22 = vmul.f32 %v3917_v62, %v3911_v13  ;;  %v3920_v17 = vmul.f32 %v3917_v62, %v3912_v54  ;;  %v3921_v1 = vmul.f32 %v3917_v62, %v3913_v49  ;;  %v3993_v14 = vmul.f32 %v3990_v56, %v3917_v62 }
 0xda9   :  { %v3994_v35 = vmul.f32 %v3991_v5, %v3917_v62  ;;  %v3995_v16 = vmul.f32 %v3992_v29, %v3917_v62  ;;  %v7140_v62 = vld [vmem:[#allocation14_spill] sm:$0xff] }
 0xdaa   :  { %v3926_v8 = vadd.f32 %v3924_v38, %v3919_v22  ;;  %v3927_v34 = vadd.f32 %v3924_v38, %v3920_v17  ;;  %v3928_v3 = vadd.f32 %v3924_v38, %v3921_v1  ;;  %v3996_v59 = vadd.f32 %v3993_v14, %v3924_v38  ;;  %v7141_v1 = vld [vmem:[#allocation16_spill] sm:$0xff] }
 0xdab   :  { %v3997_v57 = vadd.f32 %v3994_v35, %v3924_v38  ;;  %v3998_v10 = vadd.f32 %v3995_v16, %v3924_v38  ;;  %v3968_v61 = vpop.permute.xlu1 %3967  ;;  %v4044_v16 = vpop.permute.xlu0 %4043 }
 0xdac   :  { %v3929_v11 = vsub.f32 0.0, %v3926_v8  ;;  %v3930_v28 = vsub.f32 0.0, %v3927_v34  ;;  %v3931_v48 = vsub.f32 0.0, %v3928_v3  ;;  %v3999_v2 = vsub.f32 0.0, %v3996_v59  ;;  %v7142_v34 = vld [vmem:[#allocation13_spill] sm:$0xff] }
 0xdad   :  { %v4000_v50 = vsub.f32 0.0, %v3997_v57  ;;  %v4001_v37 = vsub.f32 0.0, %v3998_v10 }
 0xdae   :  { %v3932_v41 = vmul.f32 1.442695, %v3929_v11  ;;  %v3934_v20 = vmul.f32 1.442695, %v3930_v28  ;;  %v3936_v52 = vmul.f32 1.442695, %v3931_v48 }
 0xdaf   :  { %v4002_v7 = vmul.f32 1.442695, %v3999_v2  ;;  %v3970_v43 = vpop.permute.xlu1 %3969  ;;  %v4004_v12 = vmul.f32 1.442695, %v4000_v50  ;;  %v4006_v39 = vmul.f32 1.442695, %v4001_v37 }
 0xdb0   :  { %4715 = vpow2.f32 %v3932_v41  ;;  %v3975_v15 = vsel %vm183_vm4, %v3968_v61, %v3970_v43  ;;  %v7143_v11 = vld [vmem:[#allocation15_spill] sm:$0xff] }
 0xdb1   :  { %4717 = vpow2.f32 %v3934_v20 }
 0xdb2   :  { %4719 = vpow2.f32 %v3936_v52 }
 0xdb3   :  { %4721 = vpow2.f32 %v4002_v7  ;;  %v3972_v46 = vpop.permute.xlu1 %3971 }
 0xdb4   :  { %4723 = vpow2.f32 %v4004_v12  ;;  %v3976_v5 = vsel %vm183_vm4, %v3970_v43, %v3972_v46 }
 0xdb5   :  { %4725 = vpow2.f32 %v4006_v39 }
 0xdb7   :  { %v4038_v55 = vpop.permute.xlu1 %4037 }
 0xdba   :  { %v4716_v51 = vpop.eup %4715 }
 0xdbb   :  { %v4718_v44 = vpop.eup %4717  ;;  %v3938_v27 = vadd.f32 1.0, %v4716_v51  ;;  %v4040_v36 = vpop.permute.xlu1 %4039 }
 0xdbc   :  { %v4720_v6 = vpop.eup %4719  ;;  %v3939_v47 = vadd.f32 1.0, %v4718_v44  ;;  %v4045_v8 = vsel %vm183_vm4, %v4038_v55, %v4040_v36 }
 0xdbd   :  { %v4722_v33 = vpop.eup %4721  ;;  %v3940_v53 = vadd.f32 1.0, %v4720_v6  ;;  %4727 = vrcp.f32 %v3938_v27 }
 0xdbe   :  { %v4724_v60 = vpop.eup %4723  ;;  %v4008_v32 = vadd.f32 1.0, %v4722_v33  ;;  %4729 = vrcp.f32 %v3939_v47 }
 0xdbf   :  { %v4726_v23 = vpop.eup %4725  ;;  %v4009_v40 = vadd.f32 1.0, %v4724_v60  ;;  %4731 = vrcp.f32 %v3940_v53  ;;  %v4042_v42 = vpop.permute.xlu1 %4041 }
 0xdc0   :  { %v4010_v26 = vadd.f32 1.0, %v4726_v23  ;;  %4733 = vrcp.f32 %v4008_v32  ;;  %v4046_v61 = vsel %vm183_vm4, %v4040_v36, %v4042_v42  ;;  %v4047_v2 = vsel %vm183_vm4, %v4042_v42, %v4044_v16 }
 0xdc1   :  { %4735 = vrcp.f32 %v4009_v40 }
 0xdc2   :  { %4737 = vrcp.f32 %v4010_v26 }
 0xdc3   :  { %v3974_v58 = vpop.permute.xlu1 %3973 }
 0xdc4   :  { %v3977_v38 = vsel %vm183_vm4, %v3972_v46, %v3974_v58 }
 0xdc7   :  { %v4728_v9 = vpop.eup %4727 }
 0xdc8   :  { %v4730_v4 = vpop.eup %4729  ;;  %v3951_v0 = vrot.slane %v4728_v9, %v7137_v19 }
 0xdc9   :  { %v4732_v18 = vpop.eup %4731  ;;  %v3955_v63 = vrot.slane %v4730_v4, %v7137_v19 }
 0xdca   :  { %v4734_v45 = vpop.eup %4733  ;;  %v3960_v31 = vmul.f32 %v3951_v0, %v7138_v30  ;;  %v3959_v21 = vrot.slane %v4732_v18, %v7137_v19 }
 0xdcb   :  { %v4736_v24 = vpop.eup %4735  ;;  %v3961_v13 = vmul.f32 %v3955_v63, %v7139_v25  ;;  %v4021_v54 = vrot.slane %v4734_v45, %v7137_v19 }
 0xdcc   :  { %v4738_v49 = vpop.eup %4737  ;;  %v3981_v56 = vadd.f32 %v3975_v15, %v3960_v31  ;;  %v4025_v29 = vrot.slane %v4736_v24, %v7137_v19  ;;  %v3962_v22 = vmul.f32 %v3959_v21, %v7140_v62 }
 0xdcd   :  { %v3982_v17 = vadd.f32 %v3976_v5, %v3961_v13  ;;  %v4030_v14 = vmul.f32 %v4021_v54, %v7141_v1  ;;  %v4029_v35 = vrot.slane %v4738_v49, %v7137_v19 }
 0xdce   :  { %v4031_v3 = vmul.f32 %v4025_v29, %v7142_v34  ;;  %v3983_v59 = vadd.f32 %v3977_v38, %v3962_v22 }
 0xdcf   :  { %v3986_v57 = vcombine.low %v3981_v56, %v3982_v17  ;;  %v4051_v10 = vadd.f32 %v4045_v8, %v4030_v14  ;;  %v4032_v28 = vmul.f32 %v4029_v35, %v7143_v11 }
 0xdd0   :  { %v4052_v48 = vadd.f32 %v4046_v61, %v4031_v3  ;;  %3989 = vst [vmem:[%s7056_s11 + $0x8] sm:$0xf] %v3983_v59 }
 0xdd1   :  { %3988 = vst [vmem:[%s7056_s11] sm:$0xff] %v3986_v57  ;;  %v4053_v50 = vadd.f32 %v4047_v2, %v4032_v28 }
 0xdd2   :  { %v4056_v37 = vcombine.low %v4051_v10, %v4052_v48 }
 0xdd3   :  { %4188 = vst [vmem:[%s7056_s11 + $0x14] sm:$0xf] %v4053_v50 }
 0xdd4   :  { %4187 = vst [vmem:[%s7056_s11 + $0xc] sm:$0xff] %v4056_v37 }

</bundles_post_ra>
